<compile_context>
chip_gen: v7x
topology: tpu7x:2x2x1
jax: 0.10.0
libtpu: 0.0.40
codegen_flags: <defaults>
</compile_context>

<pallas_src>
import functools

import jax
import jax.numpy as jnp
from jax.experimental import pallas as pl
from jax.experimental.pallas import tpu as pltpu


# ---------------------------- Pallas kernels ----------------------------

def conv_pool_relu_kernel(x_ref, w_ref, b_ref, o_ref):
    # x_ref: (1, K, 4*BM)  im2col patches, 4 pool offsets concatenated on lanes
    # w_ref: (1, Cout, K)  per-branch conv weight (matmul-ready)
    # b_ref: (1, Cout, 1)  per-branch bias
    # o_ref: (1, Cout, BM) pooled output, BM = pad(B*(H/2)*(W/2), 128) lane-dense
    bm = o_ref.shape[-1]
    # ONE wide MXU matmul instead of 4 small ones (Cout=32 underfills MXU rows;
    # keep the systolic array busy on the N axis instead).
    y = jnp.dot(w_ref[0], x_ref[0], preferred_element_type=jnp.float32)
    # max over the 2x2 pool window = max over the 4 lane-aligned column groups
    # (cheap VPU maxes; commutes with +bias and ReLU since both are monotone).
    m = jnp.maximum(jnp.maximum(y[:, 0 * bm:1 * bm], y[:, 1 * bm:2 * bm]),
                    jnp.maximum(y[:, 2 * bm:3 * bm], y[:, 3 * bm:4 * bm]))
    o_ref[0] = jnp.maximum(m + b_ref[0], 0.0).astype(o_ref.dtype)


def fc1_kernel(x_ref, w1_ref, b1_ref, h1_ref, acc_ref):
    # K-tiled fc1: accumulate in f32 scratch, bias + ReLU on the last step.
    # w1_ref is bf16 (HBM-bandwidth saver); math is done in f32.
    k = pl.program_id(0)

    @pl.when(k == 0)
    def _():
        acc_ref[...] = jnp.zeros_like(acc_ref)

    acc_ref[...] += jnp.dot(x_ref[...], w1_ref[...].astype(jnp.float32),
                            preferred_element_type=jnp.float32)

    @pl.when(k == pl.num_programs(0) - 1)
    def _():
        h1_ref[...] = jnp.maximum(acc_ref[...] + b1_ref[...],
                                  0.0).astype(h1_ref.dtype)


def fc_tail_kernel(h1_ref, act_ref, w2a_ref, w2b_ref, b2_ref, w3_ref, b3_ref,
                   o_ref):
    # concat(h1, action) @ w2  ==  h1 @ w2[:1024] + action @ w2[1024:]
    h2 = jnp.dot(h1_ref[...], w2a_ref[...], preferred_element_type=jnp.float32)
    h2 = h2 + jnp.dot(act_ref[...], w2b_ref[...],
                      preferred_element_type=jnp.float32)
    h2 = jnp.maximum(h2 + b2_ref[...], 0.0)
    y = jnp.dot(h2, w3_ref[...], preferred_element_type=jnp.float32)
    o_ref[...] = (y + b3_ref[...]).astype(o_ref.dtype)


# ------------------------------ wrappers --------------------------------

def _round_up(x, m):
    return ((x + m - 1) // m) * m


def _im2col_pool4(x, n_br, batch, bmp):
    """x: (n_br*B, C, H, W) branch-major -> (n_br, 9*C, 4*bmp) patches.

    Within each of the 4 pool-offset column groups (width bmp, zero padded at
    the end), column order is (b, h2*(W//2)+w2) (NCHW order).  K-row order is
    c*9 + dy*3 + dx, matching w.reshape(Cout, C*9).
    """
    nb, c, h, w = x.shape
    h2, w2 = h // 2, w // 2
    bm = batch * h2 * w2
    xp = jnp.pad(x, ((0, 0), (0, 0), (1, 1), (1, 1)))
    cols = [xp[:, :, dy:dy + h, dx:dx + w] for dy in range(3) for dx in range(3)]
    col = jnp.stack(cols, axis=2)                       # (NB, C, 9, H, W)
    col = col.reshape(n_br, batch, c, 9, h2, 2, w2, 2)
    # -> (n_br, pool_dy, pool_dx, C, 9, B, H2, W2)
    col = jnp.transpose(col, (0, 5, 7, 2, 3, 1, 4, 6))
    col = col.reshape(n_br, 4, c * 9, bm)
    if bmp != bm:
        col = jnp.pad(col, ((0, 0), (0, 0), (0, 0), (0, bmp - bm)))
    # concatenate the 4 offsets along the last (lane) axis -> lane-aligned slices
    return jnp.transpose(col, (0, 2, 1, 3)).reshape(n_br, c * 9, 4 * bmp)


def conv_pool_relu(x, w, b, n_br, batch):
    """Fused conv3x3(pad=1) + ReLU + maxpool2x2 for all branches in one call.

    x: (n_br*B, Cin, H, W) branch-major
    w: (n_br, Cout, Cin, 3, 3); b: (n_br, Cout)
    returns (n_br*B, Cout, H//2, W//2)
    """
    nb, cin, h, w_sp = x.shape
    cout = w.shape[1]
    h2, w2 = h // 2, w_sp // 2
    m = h2 * w2
    bm = batch * m
    bmp = _round_up(bm, 128)                   # lane-dense output stores
    k = 9 * cin

    xcol = _im2col_pool4(x, n_br, batch, bmp)  # (n_br, K, 4*bmp)
    wmat = w.reshape(n_br, cout, k)            # free reshape (no transpose)
    bmat = b.reshape(n_br, cout, 1)

    out = pl.pallas_call(
        conv_pool_relu_kernel,
        out_shape=jax.ShapeDtypeStruct((n_br, cout, bmp), jnp.float32),
        grid=(n_br,),
        in_specs=[
            pl.BlockSpec((1, k, 4 * bmp), lambda i: (i, 0, 0)),
            pl.BlockSpec((1, cout, k), lambda i: (i, 0, 0)),
            pl.BlockSpec((1, cout, 1), lambda i: (i, 0, 0)),
        ],
        out_specs=pl.BlockSpec((1, cout, bmp), lambda i: (i, 0, 0)),
        compiler_params=pltpu.CompilerParams(
            dimension_semantics=("parallel",)),
    )(xcol, wmat, bmat)

    # strip lane padding, back to NCHW per (branch, batch) for the next stage
    out = out[:, :, :bm].reshape(n_br, cout, batch, h2, w2)
    return jnp.transpose(out, (0, 2, 1, 3, 4)).reshape(n_br * batch, cout, h2, w2)


def _pick_tile_k(kp, max_tile=1536):
    """Largest multiple-of-128 divisor of kp that is <= max_tile (kp % 128 == 0).

    Never falls back to kp itself when kp > max_tile, so the fc1 weight is
    never staged whole in VMEM.  max_tile=1536 keeps the double-buffered bf16
    weight + in-kernel f32 upcast under every generation's default scoped VMEM.
    """
    best = 128
    t = 128
    while t <= min(kp, max_tile):
        if kp % t == 0:
            best = t
        t += 128
    return best


def fc1_matmul(x, w1, b1):
    """h1 = relu(x @ w1 + b1), K-tiled with an f32 accumulator; w1 is bf16."""
    bsz, k = x.shape
    n = w1.shape[1]
    kp = _round_up(k, 128)
    if kp != k:                                # zero rows/cols contribute nothing
        x = jnp.pad(x, ((0, 0), (0, kp - k)))
        w1 = jnp.pad(w1, ((0, kp - k), (0, 0)))
    tk = _pick_tile_k(kp)
    nk = kp // tk

    return pl.pallas_call(
        fc1_kernel,
        out_shape=jax.ShapeDtypeStruct((bsz, n), jnp.float32),
        grid=(nk,),
        in_specs=[
            pl.BlockSpec((bsz, tk), lambda kk: (0, kk)),
            pl.BlockSpec((tk, n), lambda kk: (kk, 0)),
            pl.BlockSpec((1, n), lambda kk: (0, 0)),
        ],
        out_specs=pl.BlockSpec((bsz, n), lambda kk: (0, 0)),
        scratch_shapes=[pltpu.VMEM((bsz, n), jnp.float32)],
        compiler_params=pltpu.CompilerParams(
            dimension_semantics=("arbitrary",)),
    )(x, w1, b1)


def fc_tail(h1, act, params):
    """y = fc3(relu(fc2(concat(h1, action)))) in one tiny single-step kernel."""
    bsz = h1.shape[0]
    a = act.shape[1]
    w2 = params['fc2_w']                       # (1024 + A, 512) pre-transposed
    w2a, w2b = w2[:1024], w2[1024:]
    b2 = params['fc2_b'].reshape(1, -1)
    w3 = params['fc3_w']                       # (512, 1) pre-transposed
    b3 = params['fc3_b'].reshape(1, -1)

    return pl.pallas_call(
        fc_tail_kernel,
        out_shape=jax.ShapeDtypeStruct((bsz, 1), jnp.float32),
        grid=(1,),
        in_specs=[
            pl.BlockSpec((bsz, 1024), lambda i: (0, 0)),
            pl.BlockSpec((bsz, a), lambda i: (0, 0)),
            pl.BlockSpec((1024, 512), lambda i: (0, 0)),
            pl.BlockSpec((a, 512), lambda i: (0, 0)),
            pl.BlockSpec((1, 512), lambda i: (0, 0)),
            pl.BlockSpec((512, 1), lambda i: (0, 0)),
            pl.BlockSpec((1, 1), lambda i: (0, 0)),
        ],
        out_specs=pl.BlockSpec((bsz, 1), lambda i: (0, 0)),
    )(h1, act, w2a, w2b, b2, w3, b3)


# ------------------------------ Critic ----------------------------------

def critic_forward(params, heatmap, depthmap, action, option='both'):
    bsz = heatmap.shape[0]
    act = action.reshape(bsz, -1)              # nn.Flatten()(action)

    if option == 'both':
        x = jnp.concatenate([heatmap, depthmap], axis=0)   # branch-major stack
        n_br = 2
    elif option == 'heatmap':
        x, n_br = heatmap, 1
    else:
        x, n_br = depthmap, 1

    # two fused conv+relu+pool stages, all branches in each launch
    x = conv_pool_relu(x, params['conv1_w'], params['conv1_b'], n_br, bsz)
    x = conv_pool_relu(x, params['conv2_w'], params['conv2_b'], n_br, bsz)

    # (n_br*B, 32, H4, W4) -> (B, n_br*32*H4*W4), matching torch
    # cat(dim=1).view(-1, input_dim).  Tiny activation; glue transpose is free
    # relative to the fc1 weight stream.
    nb, cc, h4, w4 = x.shape
    comb = x.reshape(n_br, bsz, cc * h4 * w4).transpose(1, 0, 2).reshape(bsz, -1)

    h1 = fc1_matmul(comb, params['fc1_w'], params['fc1_b'].reshape(1, -1))
    return fc_tail(h1, act, params)


def init_params(key, state_dim, action_dim, option='both'):
    c0, h, w = state_dim
    n_br = 2 if option == 'both' else 1
    input_dim = n_br * 32 * (h // 4) * (w // 4)

    def uni(k, shape, fan_in):
        bound = 1.0 / float(fan_in) ** 0.5
        return jax.random.uniform(k, shape, jnp.float32, -bound, bound)

    keys = iter(jax.random.split(key, 16))
    p = {
        # conv weights stacked per branch (branch 0 = heatmap, 1 = depthmap)
        'conv1_w': uni(next(keys), (n_br, 32, c0, 3, 3), c0 * 9),
        'conv1_b': uni(next(keys), (n_br, 32), c0 * 9),
        'conv2_w': uni(next(keys), (n_br, 32, 32, 3, 3), 32 * 9),
        'conv2_b': uni(next(keys), (n_br, 32), 32 * 9),
        # fc weights stored pre-transposed, matmul-ready (K, N).
        # fc1_w in bf16: the forward is HBM-bound on streaming this weight.
        'fc1_w': uni(next(keys), (input_dim, 1024), input_dim).astype(jnp.bfloat16),
        'fc1_b': uni(next(keys), (1024,), input_dim),
        'fc2_w': uni(next(keys), (1024 + action_dim, 512), 1024 + action_dim),
        'fc2_b': uni(next(keys), (512,), 1024 + action_dim),
        'fc3_w': uni(next(keys), (512, 1), 512),
        'fc3_b': uni(next(keys), (1,), 512),
    }
    return p, input_dim


# ------------------------- pure-JAX reference ----------------------------

def reference_forward(params, heatmap, depthmap, action, option='both'):
    def conv(x, w, b):                                   # x NCHW, w OIHW
        y = jax.lax.conv_general_dilated(
            x, w, window_strides=(1, 1), padding=((1, 1), (1, 1)),
            dimension_numbers=('NCHW', 'OIHW', 'NCHW'))
        return jax.nn.relu(y + b[None, :, None, None])

    def pool(x):                                         # 2x2 / stride 2
        return jax.lax.reduce_window(x, -jnp.inf, jax.lax.max,
                                     (1, 1, 2, 2), (1, 1, 2, 2), 'VALID')

    def branch(x, br):
        x = pool(conv(x, params['conv1_w'][br], params['conv1_b'][br]))
        return pool(conv(x, params['conv2_w'][br], params['conv2_b'][br]))

    bsz = heatmap.shape[0]
    if option == 'both':
        comb = jnp.concatenate([branch(heatmap, 0), branch(depthmap, 1)], axis=1)
    elif option == 'heatmap':
        comb = branch(heatmap, 0)
    else:
        comb = branch(depthmap, 0)
    comb = comb.reshape(bsz, -1)
    x = jax.nn.relu(comb @ params['fc1_w'].astype(jnp.float32) + params['fc1_b'])
    x = jnp.concatenate([x, action.reshape(bsz, -1)], axis=1)
    x = jax.nn.relu(x @ params['fc2_w'] + params['fc2_b'])
    return x @ params['fc3_w'] + params['fc3_b']


# -------------------------------- main -----------------------------------

if __name__ == "__main__":
    key = jax.random.PRNGKey(0)
    state_dim = (4, 16, 16)      # small (C, H, W); original code assumed (C, 96, 72)
    action_dim = 8
    B = 2

    pkey, hkey, dkey, akey = jax.random.split(key, 4)
    params, input_dim = init_params(pkey, state_dim, action_dim, option='both')

    heatmap = jax.random.normal(hkey, (B,) + state_dim, jnp.float32)
    depthmap = jax.random.normal(dkey, (B,) + state_dim, jnp.float32)
    action = jax.random.normal(akey, (B, action_dim), jnp.float32)

    fwd = jax.jit(functools.partial(critic_forward, option='both'))
    out = jax.block_until_ready(fwd(params, heatmap, depthmap, action))
    assert out.shape == (B, 1), out.shape

    ref = jax.block_until_ready(
        reference_forward(params, heatmap, depthmap, action, option='both'))
    assert jnp.allclose(out, ref, rtol=5e-2, atol=5e-2), (out, ref)

    print("KERNEL_OK")
</pallas_src>

<mosaic_0001>
module attributes {stable_mosaic.version = 11 : i64} {
  func.func @conv_pool_relu_kernel(%arg0: i32, %arg1: memref<1x36x512xf32, #tpu.memory_space<vmem>>, %arg2: memref<1x32x36xf32, #tpu.memory_space<vmem>>, %arg3: memref<1x32x1xf32, #tpu.memory_space<vmem>>, %arg4: memref<1x32x128xf32, #tpu.memory_space<vmem>>) attributes {dimension_semantics = [#tpu.dimension_semantics<parallel>], iteration_bounds = array<i64: 2>, scalar_prefetch = 0 : i64, scratch_operands = 0 : i64, tpu.core_type = #tpu.core_type<tc>, window_params = [{transform_indices = @transform_0, window_bounds = array<i64: 1, 36, 512>}, {transform_indices = @transform_1, window_bounds = array<i64: 1, 32, 36>}, {transform_indices = @transform_2, window_bounds = array<i64: 1, 32, 1>}, {transform_indices = @transform_3, window_bounds = array<i64: 1, 32, 128>}]} {
    %c0 = arith.constant 0 : index
    %c0_0 = arith.constant 0 : index
    %c0_1 = arith.constant 0 : index
    %0 = vector.load %arg2[%c0, %c0_0, %c0_1] : memref<1x32x36xf32, #tpu.memory_space<vmem>>, vector<1x32x36xf32>
    %1 = vector.shape_cast %0 : vector<1x32x36xf32> to vector<32x36xf32>
    %c0_2 = arith.constant 0 : index
    %c0_3 = arith.constant 0 : index
    %c0_4 = arith.constant 0 : index
    %2 = vector.load %arg1[%c0_2, %c0_3, %c0_4] : memref<1x36x512xf32, #tpu.memory_space<vmem>>, vector<1x36x512xf32>
    %3 = vector.shape_cast %2 : vector<1x36x512xf32> to vector<36x512xf32>
    %cst = arith.constant dense<0.000000e+00> : vector<32x512xf32>
    %4 = tpu.matmul %1, %3, %cst {dimension_numbers = #tpu.dot_dimension_numbers<[1], [0], [0], [1], [0, 0, 1, 1], [], []>} : vector<32x36xf32>, vector<36x512xf32>, vector<32x512xf32> -> vector<32x512xf32>
    %5 = vector.extract_strided_slice %4 {offsets = [0, 0], sizes = [32, 128], strides = [1, 1]} : vector<32x512xf32> to vector<32x128xf32>
    %6 = vector.extract_strided_slice %4 {offsets = [0, 128], sizes = [32, 128], strides = [1, 1]} : vector<32x512xf32> to vector<32x128xf32>
    %7 = arith.maximumf %5, %6 : vector<32x128xf32>
    %8 = vector.extract_strided_slice %4 {offsets = [0, 256], sizes = [32, 128], strides = [1, 1]} : vector<32x512xf32> to vector<32x128xf32>
    %9 = vector.extract_strided_slice %4 {offsets = [0, 384], sizes = [32, 128], strides = [1, 1]} : vector<32x512xf32> to vector<32x128xf32>
    %10 = arith.maximumf %8, %9 : vector<32x128xf32>
    %11 = arith.maximumf %7, %10 : vector<32x128xf32>
    %c0_5 = arith.constant 0 : index
    %c0_6 = arith.constant 0 : index
    %c0_7 = arith.constant 0 : index
    %12 = vector.load %arg3[%c0_5, %c0_6, %c0_7] : memref<1x32x1xf32, #tpu.memory_space<vmem>>, vector<1x32x1xf32>
    %13 = vector.shape_cast %12 : vector<1x32x1xf32> to vector<32x1xf32>
    %14 = vector.broadcast %13 : vector<32x1xf32> to vector<32x128xf32>
    %15 = arith.addf %11, %14 : vector<32x128xf32>
    %cst_8 = arith.constant 0.000000e+00 : f32
    %16 = vector.broadcast %cst_8 : f32 to vector<32x128xf32>
    %17 = arith.maximumf %15, %16 : vector<32x128xf32>
    %c0_9 = arith.constant 0 : index
    %c0_10 = arith.constant 0 : index
    %c0_11 = arith.constant 0 : index
    %18 = vector.load %arg4[%c0_9, %c0_10, %c0_11] : memref<1x32x128xf32, #tpu.memory_space<vmem>>, vector<1x32x128xf32>
    %19 = vector.shape_cast %18 : vector<1x32x128xf32> to vector<32x128xf32>
    %20 = vector.shape_cast %17 : vector<32x128xf32> to vector<1x32x128xf32>
    tpu.vector_store %arg4[%c0_9, %c0_10, %c0_11], %20 {strides = array<i32>} : memref<1x32x128xf32, #tpu.memory_space<vmem>>, vector<1x32x128xf32>,
    return
  }
  func.func @transform_0(%arg0: i32) -> (i32, i32, i32) {
    %c0_i32 = arith.constant 0 : i32
    %c0_i32_0 = arith.constant 0 : i32
    %c0_i32_1 = arith.constant 0 : i32
    return %arg0, %c0_i32, %c0_i32_0 : i32, i32, i32
  }
  func.func @transform_1(%arg0: i32) -> (i32, i32, i32) {
    %c0_i32 = arith.constant 0 : i32
    %c0_i32_0 = arith.constant 0 : i32
    %c0_i32_1 = arith.constant 0 : i32
    return %arg0, %c0_i32, %c0_i32_0 : i32, i32, i32
  }
  func.func @transform_2(%arg0: i32) -> (i32, i32, i32) {
    %c0_i32 = arith.constant 0 : i32
    %c0_i32_0 = arith.constant 0 : i32
    %c0_i32_1 = arith.constant 0 : i32
    return %arg0, %c0_i32, %c0_i32_0 : i32, i32, i32
  }
  func.func @transform_3(%arg0: i32) -> (i32, i32, i32) {
    %c0_i32 = arith.constant 0 : i32
    %c0_i32_0 = arith.constant 0 : i32
    %c0_i32_1 = arith.constant 0 : i32
    return %arg0, %c0_i32, %c0_i32_0 : i32, i32, i32
  }
}

module attributes {stable_mosaic.version = 11 : i64} {
  func.func @conv_pool_relu_kernel(%arg0: i32, %arg1: memref<1x288x512xf32, #tpu.memory_space<vmem>>, %arg2: memref<1x32x288xf32, #tpu.memory_space<vmem>>, %arg3: memref<1x32x1xf32, #tpu.memory_space<vmem>>, %arg4: memref<1x32x128xf32, #tpu.memory_space<vmem>>) attributes {dimension_semantics = [#tpu.dimension_semantics<parallel>], iteration_bounds = array<i64: 2>, scalar_prefetch = 0 : i64, scratch_operands = 0 : i64, tpu.core_type = #tpu.core_type<tc>, window_params = [{transform_indices = @transform_0, window_bounds = array<i64: 1, 288, 512>}, {transform_indices = @transform_1, window_bounds = array<i64: 1, 32, 288>}, {transform_indices = @transform_2, window_bounds = array<i64: 1, 32, 1>}, {transform_indices = @transform_3, window_bounds = array<i64: 1, 32, 128>}]} {
    %c0 = arith.constant 0 : index
    %c0_0 = arith.constant 0 : index
    %c0_1 = arith.constant 0 : index
    %0 = vector.load %arg2[%c0, %c0_0, %c0_1] : memref<1x32x288xf32, #tpu.memory_space<vmem>>, vector<1x32x288xf32>
    %1 = vector.shape_cast %0 : vector<1x32x288xf32> to vector<32x288xf32>
    %c0_2 = arith.constant 0 : index
    %c0_3 = arith.constant 0 : index
    %c0_4 = arith.constant 0 : index
    %2 = vector.load %arg1[%c0_2, %c0_3, %c0_4] : memref<1x288x512xf32, #tpu.memory_space<vmem>>, vector<1x288x512xf32>
    %3 = vector.shape_cast %2 : vector<1x288x512xf32> to vector<288x512xf32>
    %cst = arith.constant dense<0.000000e+00> : vector<32x512xf32>
    %4 = tpu.matmul %1, %3, %cst {dimension_numbers = #tpu.dot_dimension_numbers<[1], [0], [0], [1], [0, 0, 1, 1], [], []>} : vector<32x288xf32>, vector<288x512xf32>, vector<32x512xf32> -> vector<32x512xf32>
    %5 = vector.extract_strided_slice %4 {offsets = [0, 0], sizes = [32, 128], strides = [1, 1]} : vector<32x512xf32> to vector<32x128xf32>
    %6 = vector.extract_strided_slice %4 {offsets = [0, 128], sizes = [32, 128], strides = [1, 1]} : vector<32x512xf32> to vector<32x128xf32>
    %7 = arith.maximumf %5, %6 : vector<32x128xf32>
    %8 = vector.extract_strided_slice %4 {offsets = [0, 256], sizes = [32, 128], strides = [1, 1]} : vector<32x512xf32> to vector<32x128xf32>
    %9 = vector.extract_strided_slice %4 {offsets = [0, 384], sizes = [32, 128], strides = [1, 1]} : vector<32x512xf32> to vector<32x128xf32>
    %10 = arith.maximumf %8, %9 : vector<32x128xf32>
    %11 = arith.maximumf %7, %10 : vector<32x128xf32>
    %c0_5 = arith.constant 0 : index
    %c0_6 = arith.constant 0 : index
    %c0_7 = arith.constant 0 : index
    %12 = vector.load %arg3[%c0_5, %c0_6, %c0_7] : memref<1x32x1xf32, #tpu.memory_space<vmem>>, vector<1x32x1xf32>
    %13 = vector.shape_cast %12 : vector<1x32x1xf32> to vector<32x1xf32>
    %14 = vector.broadcast %13 : vector<32x1xf32> to vector<32x128xf32>
    %15 = arith.addf %11, %14 : vector<32x128xf32>
    %cst_8 = arith.constant 0.000000e+00 : f32
    %16 = vector.broadcast %cst_8 : f32 to vector<32x128xf32>
    %17 = arith.maximumf %15, %16 : vector<32x128xf32>
    %c0_9 = arith.constant 0 : index
    %c0_10 = arith.constant 0 : index
    %c0_11 = arith.constant 0 : index
    %18 = vector.load %arg4[%c0_9, %c0_10, %c0_11] : memref<1x32x128xf32, #tpu.memory_space<vmem>>, vector<1x32x128xf32>
    %19 = vector.shape_cast %18 : vector<1x32x128xf32> to vector<32x128xf32>
    %20 = vector.shape_cast %17 : vector<32x128xf32> to vector<1x32x128xf32>
    tpu.vector_store %arg4[%c0_9, %c0_10, %c0_11], %20 {strides = array<i32>} : memref<1x32x128xf32, #tpu.memory_space<vmem>>, vector<1x32x128xf32>,
    return
  }
  func.func @transform_0(%arg0: i32) -> (i32, i32, i32) {
    %c0_i32 = arith.constant 0 : i32
    %c0_i32_0 = arith.constant 0 : i32
    %c0_i32_1 = arith.constant 0 : i32
    return %arg0, %c0_i32, %c0_i32_0 : i32, i32, i32
  }
  func.func @transform_1(%arg0: i32) -> (i32, i32, i32) {
    %c0_i32 = arith.constant 0 : i32
    %c0_i32_0 = arith.constant 0 : i32
    %c0_i32_1 = arith.constant 0 : i32
    return %arg0, %c0_i32, %c0_i32_0 : i32, i32, i32
  }
  func.func @transform_2(%arg0: i32) -> (i32, i32, i32) {
    %c0_i32 = arith.constant 0 : i32
    %c0_i32_0 = arith.constant 0 : i32
    %c0_i32_1 = arith.constant 0 : i32
    return %arg0, %c0_i32, %c0_i32_0 : i32, i32, i32
  }
  func.func @transform_3(%arg0: i32) -> (i32, i32, i32) {
    %c0_i32 = arith.constant 0 : i32
    %c0_i32_0 = arith.constant 0 : i32
    %c0_i32_1 = arith.constant 0 : i32
    return %arg0, %c0_i32, %c0_i32_0 : i32, i32, i32
  }
}

module attributes {stable_mosaic.version = 11 : i64} {
  func.func @fc1_kernel(%arg0: i32, %arg1: memref<2x1024xf32, #tpu.memory_space<vmem>>, %arg2: memref<1024x1024xbf16, #tpu.memory_space<vmem>>, %arg3: memref<1x1024xf32, #tpu.memory_space<vmem>>, %arg4: memref<2x1024xf32, #tpu.memory_space<vmem>>, %arg5: memref<2x1024xf32, #tpu.memory_space<vmem>>) attributes {dimension_semantics = [#tpu.dimension_semantics<arbitrary>], iteration_bounds = array<i64: 1>, scalar_prefetch = 0 : i64, scratch_operands = 1 : i64, tpu.core_type = #tpu.core_type<tc>, window_params = [{transform_indices = @transform_0, window_bounds = array<i64: 2, 1024>}, {transform_indices = @transform_1, window_bounds = array<i64: 1024, 1024>}, {pipeline_mode = #tpu.pipeline_mode<synchronous>, transform_indices = @transform_2, window_bounds = array<i64: 1, 1024>}, {pipeline_mode = #tpu.pipeline_mode<synchronous>, transform_indices = @transform_3, window_bounds = array<i64: 2, 1024>}]} {
    %c0_i32 = arith.constant 0 : i32
    %0 = arith.cmpi eq, %arg0, %c0_i32 : i32
    %1 = arith.extui %0 : i1 to i32
    %c0_i32_0 = arith.constant 0 : i32
    %2 = arith.cmpi ne, %1, %c0_i32_0 : i32
    scf.if %2 {
      %cst_10 = arith.constant 0.000000e+00 : f32
      %13 = vector.broadcast %cst_10 : f32 to vector<2x1024xf32>
      %c0_11 = arith.constant 0 : index
      %c0_12 = arith.constant 0 : index
      %14 = vector.load %arg5[%c0_11, %c0_12] : memref<2x1024xf32, #tpu.memory_space<vmem>>, vector<2x1024xf32>
      tpu.vector_store %arg5[%c0_11, %c0_12], %13 {strides = array<i32>} : memref<2x1024xf32, #tpu.memory_space<vmem>>, vector<2x1024xf32>,
    } else {
    }
    %c0 = arith.constant 0 : index
    %c0_1 = arith.constant 0 : index
    %3 = vector.load %arg5[%c0, %c0_1] : memref<2x1024xf32, #tpu.memory_space<vmem>>, vector<2x1024xf32>
    %c0_2 = arith.constant 0 : index
    %c0_3 = arith.constant 0 : index
    %4 = vector.load %arg1[%c0_2, %c0_3] : memref<2x1024xf32, #tpu.memory_space<vmem>>, vector<2x1024xf32>
    %c0_4 = arith.constant 0 : index
    %c0_5 = arith.constant 0 : index
    %5 = vector.load %arg2[%c0_4, %c0_5] : memref<1024x1024xbf16, #tpu.memory_space<vmem>>, vector<1024x1024xbf16>
    %6 = arith.extf %5 : vector<1024x1024xbf16> to vector<1024x1024xf32>
    %cst = arith.constant dense<0.000000e+00> : vector<2x1024xf32>
    %7 = tpu.matmul %4, %6, %cst {dimension_numbers = #tpu.dot_dimension_numbers<[1], [0], [0], [1], [0, 0, 1, 1], [], []>} : vector<2x1024xf32>, vector<1024x1024xf32>, vector<2x1024xf32> -> vector<2x1024xf32>
    %8 = arith.addf %3, %7 : vector<2x1024xf32>
    %c0_6 = arith.constant 0 : index
    %c0_7 = arith.constant 0 : index
    %9 = vector.load %arg5[%c0_6, %c0_7] : memref<2x1024xf32, #tpu.memory_space<vmem>>, vector<2x1024xf32>
    tpu.vector_store %arg5[%c0_6, %c0_7], %8 {strides = array<i32>} : memref<2x1024xf32, #tpu.memory_space<vmem>>, vector<2x1024xf32>,
    %c0_i32_8 = arith.constant 0 : i32
    %10 = arith.cmpi eq, %arg0, %c0_i32_8 : i32
    %11 = arith.extui %10 : i1 to i32
    %c0_i32_9 = arith.constant 0 : i32
    %12 = arith.cmpi ne, %11, %c0_i32_9 : i32
    scf.if %12 {
      %c0_10 = arith.constant 0 : index
      %c0_11 = arith.constant 0 : index
      %13 = vector.load %arg5[%c0_10, %c0_11] : memref<2x1024xf32, #tpu.memory_space<vmem>>, vector<2x1024xf32>
      %c0_12 = arith.constant 0 : index
      %c0_13 = arith.constant 0 : index
      %14 = vector.load %arg3[%c0_12, %c0_13] : memref<1x1024xf32, #tpu.memory_space<vmem>>, vector<1x1024xf32>
      %15 = vector.broadcast %14 : vector<1x1024xf32> to vector<2x1024xf32>
      %16 = arith.addf %13, %15 : vector<2x1024xf32>
      %cst_14 = arith.constant 0.000000e+00 : f32
      %17 = vector.broadcast %cst_14 : f32 to vector<2x1024xf32>
      %18 = arith.maximumf %16, %17 : vector<2x1024xf32>
      %c0_15 = arith.constant 0 : index
      %c0_16 = arith.constant 0 : index
      %19 = vector.load %arg4[%c0_15, %c0_16] : memref<2x1024xf32, #tpu.memory_space<vmem>>, vector<2x1024xf32>
      tpu.vector_store %arg4[%c0_15, %c0_16], %18 {strides = array<i32>} : memref<2x1024xf32, #tpu.memory_space<vmem>>, vector<2x1024xf32>,
    } else {
    }
    return
  }
  func.func @transform_0(%arg0: i32) -> (i32, i32) {
    %c0_i32 = arith.constant 0 : i32
    %c0_i32_0 = arith.constant 0 : i32
    return %c0_i32, %arg0 : i32, i32
  }
  func.func @transform_1(%arg0: i32) -> (i32, i32) {
    %c0_i32 = arith.constant 0 : i32
    %c0_i32_0 = arith.constant 0 : i32
    return %arg0, %c0_i32 : i32, i32
  }
  func.func @transform_2(%arg0: i32) -> (i32, i32) {
    %c0_i32 = arith.constant 0 : i32
    %c0_i32_0 = arith.constant 0 : i32
    %c0_i32_1 = arith.constant 0 : i32
    return %c0_i32, %c0_i32_0 : i32, i32
  }
  func.func @transform_3(%arg0: i32) -> (i32, i32) {
    %c0_i32 = arith.constant 0 : i32
    %c0_i32_0 = arith.constant 0 : i32
    %c0_i32_1 = arith.constant 0 : i32
    return %c0_i32, %c0_i32_0 : i32, i32
  }
}

module attributes {stable_mosaic.version = 11 : i64} {
  func.func @fc_tail_kernel(%arg0: i32, %arg1: memref<2x1024xf32, #tpu.memory_space<vmem>>, %arg2: memref<2x8xf32, #tpu.memory_space<vmem>>, %arg3: memref<1024x512xf32, #tpu.memory_space<vmem>>, %arg4: memref<8x512xf32, #tpu.memory_space<vmem>>, %arg5: memref<1x512xf32, #tpu.memory_space<vmem>>, %arg6: memref<512x1xf32, #tpu.memory_space<vmem>>, %arg7: memref<1x1xf32, #tpu.memory_space<vmem>>, %arg8: memref<2x1xf32, #tpu.memory_space<vmem>>) attributes {dimension_semantics = [#tpu.dimension_semantics<arbitrary>], iteration_bounds = array<i64: 1>, scalar_prefetch = 0 : i64, scratch_operands = 0 : i64, tpu.core_type = #tpu.core_type<tc>, window_params = [{pipeline_mode = #tpu.pipeline_mode<synchronous>, transform_indices = @transform_0, window_bounds = array<i64: 2, 1024>}, {pipeline_mode = #tpu.pipeline_mode<synchronous>, transform_indices = @transform_1, window_bounds = array<i64: 2, 8>}, {pipeline_mode = #tpu.pipeline_mode<synchronous>, transform_indices = @transform_2, window_bounds = array<i64: 1024, 512>}, {pipeline_mode = #tpu.pipeline_mode<synchronous>, transform_indices = @transform_3, window_bounds = array<i64: 8, 512>}, {pipeline_mode = #tpu.pipeline_mode<synchronous>, transform_indices = @transform_4, window_bounds = array<i64: 1, 512>}, {pipeline_mode = #tpu.pipeline_mode<synchronous>, transform_indices = @transform_5, window_bounds = array<i64: 512, 1>}, {pipeline_mode = #tpu.pipeline_mode<synchronous>, transform_indices = @transform_6, window_bounds = array<i64: 1, 1>}, {pipeline_mode = #tpu.pipeline_mode<synchronous>, transform_indices = @transform_7, window_bounds = array<i64: 2, 1>}]} {
    %c0 = arith.constant 0 : index
    %c0_0 = arith.constant 0 : index
    %0 = vector.load %arg1[%c0, %c0_0] : memref<2x1024xf32, #tpu.memory_space<vmem>>, vector<2x1024xf32>
    %c0_1 = arith.constant 0 : index
    %c0_2 = arith.constant 0 : index
    %1 = vector.load %arg3[%c0_1, %c0_2] : memref<1024x512xf32, #tpu.memory_space<vmem>>, vector<1024x512xf32>
    %cst = arith.constant dense<0.000000e+00> : vector<2x512xf32>
    %2 = tpu.matmul %0, %1, %cst {dimension_numbers = #tpu.dot_dimension_numbers<[1], [0], [0], [1], [0, 0, 1, 1], [], []>} : vector<2x1024xf32>, vector<1024x512xf32>, vector<2x512xf32> -> vector<2x512xf32>
    %c0_3 = arith.constant 0 : index
    %c0_4 = arith.constant 0 : index
    %3 = vector.load %arg2[%c0_3, %c0_4] : memref<2x8xf32, #tpu.memory_space<vmem>>, vector<2x8xf32>
    %c0_5 = arith.constant 0 : index
    %c0_6 = arith.constant 0 : index
    %4 = vector.load %arg4[%c0_5, %c0_6] : memref<8x512xf32, #tpu.memory_space<vmem>>, vector<8x512xf32>
    %cst_7 = arith.constant dense<0.000000e+00> : vector<2x512xf32>
    %5 = tpu.matmul %3, %4, %cst_7 {dimension_numbers = #tpu.dot_dimension_numbers<[1], [0], [0], [1], [0, 0, 1, 1], [], []>} : vector<2x8xf32>, vector<8x512xf32>, vector<2x512xf32> -> vector<2x512xf32>
    %6 = arith.addf %2, %5 : vector<2x512xf32>
    %c0_8 = arith.constant 0 : index
    %c0_9 = arith.constant 0 : index
    %7 = vector.load %arg5[%c0_8, %c0_9] : memref<1x512xf32, #tpu.memory_space<vmem>>, vector<1x512xf32>
    %8 = vector.broadcast %7 : vector<1x512xf32> to vector<2x512xf32>
    %9 = arith.addf %6, %8 : vector<2x512xf32>
    %cst_10 = arith.constant 0.000000e+00 : f32
    %10 = vector.broadcast %cst_10 : f32 to vector<2x512xf32>
    %11 = arith.maximumf %9, %10 : vector<2x512xf32>
    %c0_11 = arith.constant 0 : index
    %c0_12 = arith.constant 0 : index
    %12 = vector.load %arg6[%c0_11, %c0_12] : memref<512x1xf32, #tpu.memory_space<vmem>>, vector<512x1xf32>
    %cst_13 = arith.constant dense<0.000000e+00> : vector<2x1xf32>
    %13 = tpu.matmul %11, %12, %cst_13 {dimension_numbers = #tpu.dot_dimension_numbers<[1], [0], [0], [1], [0, 0, 1, 1], [], []>} : vector<2x512xf32>, vector<512x1xf32>, vector<2x1xf32> -> vector<2x1xf32>
    %c0_14 = arith.constant 0 : index
    %c0_15 = arith.constant 0 : index
    %14 = vector.load %arg7[%c0_14, %c0_15] : memref<1x1xf32, #tpu.memory_space<vmem>>, vector<1x1xf32>
    %15 = vector.broadcast %14 : vector<1x1xf32> to vector<2x1xf32>
    %16 = arith.addf %13, %15 : vector<2x1xf32>
    %c0_16 = arith.constant 0 : index
    %c0_17 = arith.constant 0 : index
    %17 = vector.load %arg8[%c0_16, %c0_17] : memref<2x1xf32, #tpu.memory_space<vmem>>, vector<2x1xf32>
    tpu.vector_store %arg8[%c0_16, %c0_17], %16 {strides = array<i32>} : memref<2x1xf32, #tpu.memory_space<vmem>>, vector<2x1xf32>,
    return
  }
  func.func @transform_0(%arg0: i32) -> (i32, i32) {
    %c0_i32 = arith.constant 0 : i32
    %c0_i32_0 = arith.constant 0 : i32
    %c0_i32_1 = arith.constant 0 : i32
    return %c0_i32, %c0_i32_0 : i32, i32
  }
  func.func @transform_1(%arg0: i32) -> (i32, i32) {
    %c0_i32 = arith.constant 0 : i32
    %c0_i32_0 = arith.constant 0 : i32
    %c0_i32_1 = arith.constant 0 : i32
    return %c0_i32, %c0_i32_0 : i32, i32
  }
  func.func @transform_2(%arg0: i32) -> (i32, i32) {
    %c0_i32 = arith.constant 0 : i32
    %c0_i32_0 = arith.constant 0 : i32
    %c0_i32_1 = arith.constant 0 : i32
    return %c0_i32, %c0_i32_0 : i32, i32
  }
  func.func @transform_3(%arg0: i32) -> (i32, i32) {
    %c0_i32 = arith.constant 0 : i32
    %c0_i32_0 = arith.constant 0 : i32
    %c0_i32_1 = arith.constant 0 : i32
    return %c0_i32, %c0_i32_0 : i32, i32
  }
  func.func @transform_4(%arg0: i32) -> (i32, i32) {
    %c0_i32 = arith.constant 0 : i32
    %c0_i32_0 = arith.constant 0 : i32
    %c0_i32_1 = arith.constant 0 : i32
    return %c0_i32, %c0_i32_0 : i32, i32
  }
  func.func @transform_5(%arg0: i32) -> (i32, i32) {
    %c0_i32 = arith.constant 0 : i32
    %c0_i32_0 = arith.constant 0 : i32
    %c0_i32_1 = arith.constant 0 : i32
    return %c0_i32, %c0_i32_0 : i32, i32
  }
  func.func @transform_6(%arg0: i32) -> (i32, i32) {
    %c0_i32 = arith.constant 0 : i32
    %c0_i32_0 = arith.constant 0 : i32
    %c0_i32_1 = arith.constant 0 : i32
    return %c0_i32, %c0_i32_0 : i32, i32
  }
  func.func @transform_7(%arg0: i32) -> (i32, i32) {
    %c0_i32 = arith.constant 0 : i32
    %c0_i32_0 = arith.constant 0 : i32
    %c0_i32_1 = arith.constant 0 : i32
    return %c0_i32, %c0_i32_0 : i32, i32
  }
}

</mosaic_0001>

<bundles_post_ra>
// kernel: critic_forward.4
= control target key start
LH: loop header
LB: loop body
LE: loop exit
PB: predicated region body
PF: predicated region fallthrough
CT: control target
= control target key end

     0   :  { %s654_s12 = smov 0   ;;  %s730_s0 = inlined_call_operand.vmem [shape: f32[2,36,512], index: 0, kind: input, shape index: {}]   ;;  %s731_s1 = inlined_call_operand.vmem [shape: f32[2,32,36], index: 1, kind: input, shape index: {}]   ;;  %s732_s2 = inlined_call_operand.vmem [shape: f32[2,32,1], index: 2, kind: input, shape index: {}]   ;;  %s733_s3 = inlined_call_operand.vmem [shape: f32[2,32,128], index: 3, kind: output, shape index: {}]  }
   0x1 LB: > { %s566_s13 = sadd.s32 4294967295, %s630_s12   ;;  %p570_p0 = scmp.ge.s32.totalorder %s630_s12, 1  ;;  %s630_s12 = sphi %s654_s12, %s13_s12  }
   0x2   : > { %p157_p1 = scmp.lt.s32.totalorder %s630_s12, 3 }
   0x4   : > { %p158_p2 = pnand %p570_p0, %p157_p1 }
   0x5   : > { %p191_p3 = scmp.lt.s32.totalorder (!%p158_p2), %s566_s13, 1  ;;  %v632_v0 = vmov (!%p158_p2), 0.0   ;;  %v633_v1 = vmov (!%p158_p2), 0   ;;  %vm248_vm0 = vcmask (!%p158_p2), 1043456   ;;  %vm235_vm1 = vcmask (!%p158_p2), 293888  }
   0x6   : > { %161 = sbr.rel (%p158_p2) target bundleno = 266 (0x10a), region = 32  ;;  %325 = vmatprep.mubr.f32.mxu0 (!%p158_p2), %v632_v0  ;;  %414 = vmatprep.mubr.f32.mxu1 (!%p158_p2), %v632_v0 }
   0x7   : > { %622 = vset.pattern.permute.xlu0 (!%p158_p2), %v633_v1  ;;  %623 = vset.pattern.permute.xlu1 (!%p158_p2), %v633_v1 }
   0xd   : > { %s735_s13 = smov (!%p191_p3, %s566_s13), 1 }
   0xe   : > { %s611_s14 = smul.u32 160, %s735_s13  ;;  %s681_s18 = sshll.u32 %s735_s13, 5 }
   0xf   : > { %s205_s21 = scalar_lea.vmem %s732_s2, %s681_s18  ;;  %s697_s24 = scalar_lea.vmem %s731_s1, %s681_s18 }
  0x10   : > { %s667_s17 = scalar_lea.vmem %s730_s0, %s611_s14  ;;  %v451_v28 = vld [vmem:[%s205_s21] sm:$0xff]  ;;  %v453_v29 = vld [vmem:[%s205_s21 + $0x10] sm:$0xff]  ;;  %v452_v31 = vld [vmem:[%s205_s21 + $0x8] sm:$0xff]  ;;  %s210_s27 = scalar_lea.vmem %s733_s3, %s681_s18 }
  0x11   : > { %v216_v2 = vld [vmem:[%s667_s17 + $0x8] sm:$0xff]  ;;  %v218_v4 = vld [vmem:[%s667_s17 + $0x18] sm:$0xff]  ;;  %v215_v7 = vld [vmem:[%s667_s17] sm:$0xff]  ;;  %457 = vperm.xlu0 %622, %v451_v28   ;;  %467 = vperm.xlu1 %623, %v453_v29  }
  0x12   : > { %v220_v3 = vld [vmem:[%s667_s17 + $0x28] sm:$0xff]  ;;  %v222_v6 = vld [vmem:[%s667_s17 + $0x38] sm:$0xff]  ;;  %v219_v8 = vld [vmem:[%s667_s17 + $0x20] sm:$0xff] }
  0x13   : > { %v595_v5 = vpack.c.bf16 %v220_v3, %v216_v2  ;;  %v603_v9 = vpack.c.bf16 %v222_v6, %v218_v4  ;;  %v597_v10 = vpack.c.bf16 %v219_v8, %v215_v7  ;;  %v217_v11 = vld [vmem:[%s667_s17 + $0x10] sm:$0xff]  ;;  %v224_v13 = vld [vmem:[%s667_s17 + $0x48] sm:$0xff]  ;;  %v226_v16 = vld [vmem:[%s667_s17 + $0x58] sm:$0xff] }
  0x14   : > { %v221_v12 = vld [vmem:[%s667_s17 + $0x30] sm:$0xff]  ;;  %v228_v15 = vld [vmem:[%s667_s17 + $0x68] sm:$0xff]  ;;  %v230_v17 = vld [vmem:[%s667_s17 + $0x78] sm:$0xff] }
  0x15   : > { %596 = vmatprep.subr.bf16.mxu0 %v595_v5  ;;  %v605_v14 = vpack.c.bf16 %v221_v12, %v217_v11  ;;  %604 = vmatprep.subr.bf16.mxu1 %v603_v9  ;;  %v599_v18 = vpack.c.bf16 %v228_v15, %v224_v13  ;;  %v607_v19 = vpack.c.bf16 %v230_v17, %v226_v16  ;;  %v223_v20 = vld [vmem:[%s667_s17 + $0x40] sm:$0xff]  ;;  %v225_v22 = vld [vmem:[%s667_s17 + $0x50] sm:$0xff]  ;;  %v232_v26 = vld [vmem:[%s667_s17 + $0x88] sm:$0xf] }
  0x16   : > { %598 = vmatpush1.bf16.msra.mxu0 %v597_v10  ;;  %v227_v21 = vld [vmem:[%s667_s17 + $0x60] sm:$0xff]  ;;  %v229_v24 = vld [vmem:[%s667_s17 + $0x70] sm:$0xff]  ;;  %v234_v27 = vld [vmem:[%s667_s17 + $0x98] sm:$0xf]  ;;  %462 = vperm.xlu0 %622, %v452_v31  }
  0x17   : > { %606 = vmatpush1.bf16.msra.mxu1 %v605_v14  ;;  %v601_v23 = vpack.c.bf16 %v227_v21, %v223_v20  ;;  %600 = vmatprep.subr.bf16.mxu0 %v599_v18  ;;  %v609_v25 = vpack.c.bf16 %v229_v24, %v225_v22  ;;  %v231_v30 = vld [vmem:[%s667_s17 + $0x80] sm:$0xf]  ;;  %v233_v32 = vld [vmem:[%s667_s17 + $0x90] sm:$0xf]  ;;  %v454_v34 = vld [vmem:[%s205_s21 + $0x18] sm:$0xff] }
  0x18   : > { %608 = vmatprep.subr.bf16.mxu1 %v607_v19  ;;  %v211_v33 = vld [vmem:[%s697_s24] sm:$0xff]  ;;  %v212_v35 = vld [vmem:[%s697_s24 + $0x8] sm:$0xff]  ;;  %472 = vperm.xlu1 %623, %v454_v34   ;;  %v213_v36 = vld [vmem:[%s697_s24 + $0x10] sm:$0xff] }
  0x19   : > { %v214_v37 = vld [vmem:[%s697_s24 + $0x18] sm:$0xff] }
  0x1a   : > { %602 = vmatpush1.bf16.msra.mxu0 %v601_v23 }
  0x1b   : > { %610 = vmatpush1.bf16.msra.mxu1 %v609_v25  ;;  %578 = vmatprep.subr.msk.mxu0 %vm248_vm0, %v232_v26 }
  0x1c   : > { %584 = vmatprep.subr.msk.mxu1 %vm248_vm0, %v234_v27 }
  0x1e   : > { %579 = vmatpush1.msk.msra.mxu0 %vm248_vm0, %v231_v30 }
  0x1f   : > { %585 = vmatpush1.msk.msra.mxu1 %vm248_vm0, %v233_v32  ;;  %580 = vmatmul.mubr.msk.f32.vlgmr.msra.gmra.mrb[0].mxu0 %vm235_vm1, %v211_v33 }
  0x20   : > { %586 = vmatmul.mubr.msk.f32.vlgmr.msra.gmra.mrb[0].mxu1 %vm235_vm1, %v211_v33  ;;  %331 = vmatprep.mubr.f32.mxu0 %v632_v0 }
  0x21   : > { %420 = vmatprep.mubr.f32.mxu1 %v632_v0 }
  0x23   : > { %581 = vmatmul.mubr.msk.f32.gmra.mrb[2].mxu0 %vm235_vm1, %v212_v35 }
  0x24   : > { %587 = vmatmul.mubr.msk.f32.gmra.mrb[2].mxu1 %vm235_vm1, %v212_v35  ;;  %337 = vmatprep.mubr.f32.mxu0 %v632_v0 }
  0x25   : > { %426 = vmatprep.mubr.f32.mxu1 %v632_v0 }
  0x27   : > { %582 = vmatmul.mubr.msk.f32.gmra.mrb[4].mxu0 %vm235_vm1, %v213_v36 }
  0x28   : > { %588 = vmatmul.mubr.msk.f32.gmra.mrb[4].mxu1 %vm235_vm1, %v213_v36  ;;  %343 = vmatprep.mubr.f32.mxu0 %v632_v0 }
  0x29   : > { %432 = vmatprep.mubr.f32.mxu1 %v632_v0 }
  0x2b   : > { %583 = vmatmul.mubr.msk.f32.gmra.mrb[6].mxu0 %vm235_vm1, %v214_v37 }
  0x2c   : > { %589 = vmatmul.mubr.msk.f32.gmra.mrb[6].mxu1 %vm235_vm1, %v214_v37 }
  0x90   : > { %v458_v43 = vpop.permute.xlu0 %457  ;;  %v468_v63 = vpop.permute.xlu1 %467 }
  0x95   : > { %v463_v54 = vpop.permute.xlu0 %462 }
  0x97   : > { %v473_v11 = vpop.permute.xlu1 %472 }
  0xf2   : > { %v327_v38 = vpop.f32.mrb[0].mxu0 }
  0xf3   : > { %v416_v39 = vpop.f32.mrb[0].mxu1  ;;  %v329_v40 = vpop.f32.mrb[1].mxu0 }
  0xf4   : > { %v439_v41 = vmax.f32 %v327_v38, %v329_v40  ;;  %v418_v42 = vpop.f32.mrb[1].mxu1 }
  0xf5   : > { %v443_v44 = vmax.f32 %v416_v39, %v418_v42 }
  0xf6   : > { %v333_v45 = vpop.f32.mrb[2].mxu0 }
  0xf7   : > { %v422_v46 = vpop.f32.mrb[2].mxu1  ;;  %v447_v47 = vmax.f32 %v439_v41, %v443_v44  ;;  %v335_v48 = vpop.f32.mrb[3].mxu0 }
  0xf8   : > { %v440_v49 = vmax.f32 %v333_v45, %v335_v48  ;;  %v424_v50 = vpop.f32.mrb[3].mxu1 }
  0xf9   : > { %v475_v51 = vadd.f32 %v458_v43, %v447_v47  ;;  %v444_v52 = vmax.f32 %v422_v46, %v424_v50 }
  0xfa   : > { %v339_v53 = vpop.f32.mrb[4].mxu0 }
  0xfb   : > { %v479_v55 = vmax.f32 %v475_v51, 0.0  ;;  %v428_v56 = vpop.f32.mrb[4].mxu1  ;;  %v448_v57 = vmax.f32 %v440_v49, %v444_v52  ;;  %v341_v58 = vpop.f32.mrb[5].mxu0 }
  0xfc   : > { %v441_v59 = vmax.f32 %v339_v53, %v341_v58  ;;  %v430_v60 = vpop.f32.mrb[5].mxu1 }
  0xfd   : > { %483 = vst [vmem:[%s210_s27] sm:$0xff] %v479_v55  ;;  %v476_v61 = vadd.f32 %v463_v54, %v448_v57  ;;  %v445_v62 = vmax.f32 %v428_v56, %v430_v60 }
  0xfe   : > { %v345_v0 = vpop.f32.mrb[6].mxu0 }
  0xff   : > { %v480_v1 = vmax.f32 %v476_v61, 0.0  ;;  %v449_v2 = vmax.f32 %v441_v59, %v445_v62  ;;  %v434_v3 = vpop.f32.mrb[6].mxu1  ;;  %v347_v4 = vpop.f32.mrb[7].mxu0 }
 0x100   : > { %v442_v5 = vmax.f32 %v345_v0, %v347_v4  ;;  %v436_v6 = vpop.f32.mrb[7].mxu1 }
 0x101   : > { %484 = vst [vmem:[%s210_s27 + $0x8] sm:$0xff] %v480_v1  ;;  %v477_v7 = vadd.f32 %v468_v63, %v449_v2  ;;  %v446_v8 = vmax.f32 %v434_v3, %v436_v6 }
 0x103   : > { %v481_v9 = vmax.f32 %v477_v7, 0.0  ;;  %v450_v10 = vmax.f32 %v442_v5, %v446_v8 }
 0x105   : > { %485 = vst [vmem:[%s210_s27 + $0x10] sm:$0xff] %v481_v9  ;;  %v478_v12 = vadd.f32 %v473_v11, %v450_v10 }
 0x107   : > { %v482_v13 = vmax.f32 %v478_v12, 0.0 }
 0x109   : > { %486 = vst [vmem:[%s210_s27 + $0x18] sm:$0xff] %v482_v13 }
 0x10a PF: > { %s13_s12 = sadd.s32 1, %s630_s12  }
 0x10b   : > { %p10_p4 = scmp.ge.s32.totalorder %s13_s12, 4  }
 0x10d   :  { %12 = sbr.rel (!%p10_p4) target bundleno = 1 (0x1), region = 68 }

// kernel: critic_forward.5
= control target key start
LH: loop header
LB: loop body
LE: loop exit
PB: predicated region body
PF: predicated region fallthrough
CT: control target
= control target key end

     0   :  { %s1090_s12 = smov 0   ;;  %s1296_s0 = inlined_call_operand.vmem [shape: f32[2,288,512], index: 0, kind: input, shape index: {}]   ;;  %s1297_s1 = inlined_call_operand.vmem [shape: f32[2,32,288], index: 1, kind: input, shape index: {}]   ;;  %s1298_s2 = inlined_call_operand.vmem [shape: f32[2,32,1], index: 2, kind: input, shape index: {}]   ;;  %s1299_s3 = inlined_call_operand.vmem [shape: f32[2,32,128], index: 3, kind: output, shape index: {}]  }
   0x1 LB: > { %s863_s13 = sadd.s32 4294967295, %s1066_s12   ;;  %p867_p0 = scmp.ge.s32.totalorder %s1066_s12, 1  ;;  %s1066_s12 = sphi %s1090_s12, %s13_s12  }
   0x2   : > { %p157_p1 = scmp.lt.s32.totalorder %s1066_s12, 3 }
   0x4   : > { %p158_p2 = pnand %p867_p0, %p157_p1 }
   0x5   : > { %p191_p3 = scmp.lt.s32.totalorder (!%p158_p2), %s863_s13, 1  ;;  %v1068_v0 = vmov (!%p158_p2), 0   ;;  %vm367_vm0 = vcmask (!%p158_p2), 261120  }
   0x6   : > { %161 = sbr.rel (%p158_p2) target bundleno = 336 (0x150), region = 32  ;;  %1058 = vset.pattern.permute.xlu0 (!%p158_p2), %v1068_v0  ;;  %1059 = vset.pattern.permute.xlu1 (!%p158_p2), %v1068_v0 }
   0xd   : > { %s1301_s13 = smov (!%p191_p3, %s863_s13), 1 }
   0xe   : > { %s1046_s14 = smul.u32 1152, %s1301_s13  ;;  %s884_s15 = sshll.u32 %s1301_s13, 5 }
   0xf   : > { %s1107_s18 = scalar_lea.vmem %s1298_s2, %s884_s15  ;;  %s1047_s22 = smul.u32 96, %s1301_s13 }
  0x10   : > { %s1112_s21 = scalar_lea.vmem %s1296_s0, %s1046_s14  ;;  %v748_v1 = vld [vmem:[%s1107_s18] sm:$0xff]  ;;  %v750_v2 = vld [vmem:[%s1107_s18 + $0x10] sm:$0xff]  ;;  %v749_v6 = vld [vmem:[%s1107_s18 + $0x8] sm:$0xff]  ;;  %s210_s28 = scalar_lea.vmem %s1299_s3, %s884_s15 }
  0x11   : > { %v224_v3 = vld [vmem:[%s1112_s21 + $0x8] sm:$0xff]  ;;  %v226_v5 = vld [vmem:[%s1112_s21 + $0x18] sm:$0xff]  ;;  %754 = vperm.xlu0 %1058, %v748_v1   ;;  %764 = vperm.xlu1 %1059, %v750_v2   ;;  %v223_v9 = vld [vmem:[%s1112_s21] sm:$0xff]  ;;  %s1213_s25 = scalar_lea.vmem %s1297_s1, %s1047_s22 }
  0x12   : > { %v228_v4 = vld [vmem:[%s1112_s21 + $0x28] sm:$0xff]  ;;  %v230_v8 = vld [vmem:[%s1112_s21 + $0x38] sm:$0xff]  ;;  %v227_v10 = vld [vmem:[%s1112_s21 + $0x20] sm:$0xff] }
  0x13   : > { %v886_v7 = vpack.c.bf16 %v228_v4, %v224_v3  ;;  %v958_v11 = vpack.c.bf16 %v230_v8, %v226_v5  ;;  %v888_v12 = vpack.c.bf16 %v227_v10, %v223_v9  ;;  %v225_v13 = vld [vmem:[%s1112_s21 + $0x10] sm:$0xff]  ;;  %v232_v15 = vld [vmem:[%s1112_s21 + $0x48] sm:$0xff]  ;;  %v234_v18 = vld [vmem:[%s1112_s21 + $0x58] sm:$0xff] }
  0x14   : > { %v229_v14 = vld [vmem:[%s1112_s21 + $0x30] sm:$0xff]  ;;  %v236_v17 = vld [vmem:[%s1112_s21 + $0x68] sm:$0xff]  ;;  %v238_v19 = vld [vmem:[%s1112_s21 + $0x78] sm:$0xff] }
  0x15   : > { %887 = vmatprep.subr.bf16.mxu0 %v886_v7  ;;  %v960_v16 = vpack.c.bf16 %v229_v14, %v225_v13  ;;  %959 = vmatprep.subr.bf16.mxu1 %v958_v11  ;;  %v890_v20 = vpack.c.bf16 %v236_v17, %v232_v15  ;;  %v962_v21 = vpack.c.bf16 %v238_v19, %v234_v18  ;;  %v231_v22 = vld [vmem:[%s1112_s21 + $0x40] sm:$0xff]  ;;  %v233_v24 = vld [vmem:[%s1112_s21 + $0x50] sm:$0xff]  ;;  %v240_v27 = vld [vmem:[%s1112_s21 + $0x88] sm:$0xff] }
  0x16   : > { %889 = vmatpush1.bf16.msra.mxu0 %v888_v12  ;;  %v235_v23 = vld [vmem:[%s1112_s21 + $0x60] sm:$0xff]  ;;  %v237_v26 = vld [vmem:[%s1112_s21 + $0x70] sm:$0xff]  ;;  %v244_v28 = vld [vmem:[%s1112_s21 + $0xa8] sm:$0xff]  ;;  %759 = vperm.xlu0 %1058, %v749_v6  }
  0x17   : > { %961 = vmatpush1.bf16.msra.mxu1 %v960_v16  ;;  %v892_v25 = vpack.c.bf16 %v235_v23, %v231_v22  ;;  %891 = vmatprep.subr.bf16.mxu0 %v890_v20  ;;  %v964_v29 = vpack.c.bf16 %v237_v26, %v233_v24  ;;  %v894_v30 = vpack.c.bf16 %v244_v28, %v240_v27  ;;  %v242_v31 = vld [vmem:[%s1112_s21 + $0x98] sm:$0xff]  ;;  %v239_v33 = vld [vmem:[%s1112_s21 + $0x80] sm:$0xff]  ;;  %v241_v36 = vld [vmem:[%s1112_s21 + $0x90] sm:$0xff] }
  0x18   : > { %963 = vmatprep.subr.bf16.mxu1 %v962_v21  ;;  %v246_v32 = vld [vmem:[%s1112_s21 + $0xb8] sm:$0xff]  ;;  %v243_v35 = vld [vmem:[%s1112_s21 + $0xa0] sm:$0xff]  ;;  %v245_v37 = vld [vmem:[%s1112_s21 + $0xb0] sm:$0xff] }
  0x19   : > { %v966_v34 = vpack.c.bf16 %v246_v32, %v242_v31  ;;  %v896_v38 = vpack.c.bf16 %v243_v35, %v239_v33  ;;  %v248_v39 = vld [vmem:[%s1112_s21 + $0xc8] sm:$0xff]  ;;  %v250_v41 = vld [vmem:[%s1112_s21 + $0xd8] sm:$0xff]  ;;  %v968_v42 = vpack.c.bf16 %v245_v37, %v241_v36  ;;  %v247_v45 = vld [vmem:[%s1112_s21 + $0xc0] sm:$0xff] }
  0x1a   : > { %893 = vmatpush1.bf16.msra.mxu0 %v892_v25  ;;  %v252_v40 = vld [vmem:[%s1112_s21 + $0xe8] sm:$0xff]  ;;  %v254_v44 = vld [vmem:[%s1112_s21 + $0xf8] sm:$0xff]  ;;  %v251_v46 = vld [vmem:[%s1112_s21 + $0xe0] sm:$0xff] }
  0x1b   : > { %965 = vmatpush1.bf16.msra.mxu1 %v964_v29  ;;  %895 = vmatprep.subr.bf16.mxu0 %v894_v30  ;;  %v898_v43 = vpack.c.bf16 %v252_v40, %v248_v39  ;;  %v970_v47 = vpack.c.bf16 %v254_v44, %v250_v41  ;;  %v249_v48 = vld [vmem:[%s1112_s21 + $0xd0] sm:$0xff]  ;;  %v256_v50 = vld [vmem:[%s1112_s21 + $0x108] sm:$0xff]  ;;  %v258_v52 = vld [vmem:[%s1112_s21 + $0x118] sm:$0xff]  ;;  %v900_v54 = vpack.c.bf16 %v251_v46, %v247_v45 }
  0x1c   : > { %967 = vmatprep.subr.bf16.mxu1 %v966_v34  ;;  %v253_v49 = vld [vmem:[%s1112_s21 + $0xf0] sm:$0xff]  ;;  %v260_v51 = vld [vmem:[%s1112_s21 + $0x128] sm:$0xff]  ;;  %v262_v53 = vld [vmem:[%s1112_s21 + $0x138] sm:$0xff] }
  0x1d   : > { %v972_v55 = vpack.c.bf16 %v253_v49, %v249_v48  ;;  %v902_v56 = vpack.c.bf16 %v260_v51, %v256_v50  ;;  %v255_v57 = vld [vmem:[%s1112_s21 + $0x100] sm:$0xff]  ;;  %v257_v59 = vld [vmem:[%s1112_s21 + $0x110] sm:$0xff]  ;;  %v974_v60 = vpack.c.bf16 %v262_v53, %v258_v52  ;;  %v264_v62 = vld [vmem:[%s1112_s21 + $0x148] sm:$0xff] }
  0x1e   : > { %897 = vmatpush1.bf16.msra.mxu0 %v896_v38  ;;  %v259_v58 = vld [vmem:[%s1112_s21 + $0x120] sm:$0xff]  ;;  %v261_v61 = vld [vmem:[%s1112_s21 + $0x130] sm:$0xff]  ;;  %v268_v63 = vld [vmem:[%s1112_s21 + $0x168] sm:$0xff] }
  0x1f   : > { %969 = vmatpush1.bf16.msra.mxu1 %v968_v42  ;;  %899 = vmatprep.subr.bf16.mxu0 %v898_v43  ;;  %v266_v0 = vld [vmem:[%s1112_s21 + $0x158] sm:$0xff]  ;;  %v904_v2 = vpack.c.bf16 %v259_v58, %v255_v57  ;;  %v976_v3 = vpack.c.bf16 %v261_v61, %v257_v59  ;;  %v906_v4 = vpack.c.bf16 %v268_v63, %v264_v62  ;;  %v263_v5 = vld [vmem:[%s1112_s21 + $0x140] sm:$0xff]  ;;  %v265_v7 = vld [vmem:[%s1112_s21 + $0x150] sm:$0xff] }
  0x20   : > { %971 = vmatprep.subr.bf16.mxu1 %v970_v47  ;;  %v270_v1 = vld [vmem:[%s1112_s21 + $0x178] sm:$0xff]  ;;  %v267_v6 = vld [vmem:[%s1112_s21 + $0x160] sm:$0xff]  ;;  %v269_v9 = vld [vmem:[%s1112_s21 + $0x170] sm:$0xff] }
  0x21   : > { %v978_v8 = vpack.c.bf16 %v270_v1, %v266_v0  ;;  %v272_v10 = vld [vmem:[%s1112_s21 + $0x188] sm:$0xff]  ;;  %v274_v12 = vld [vmem:[%s1112_s21 + $0x198] sm:$0xff]  ;;  %v908_v14 = vpack.c.bf16 %v267_v6, %v263_v5  ;;  %v980_v15 = vpack.c.bf16 %v269_v9, %v265_v7  ;;  %v271_v17 = vld [vmem:[%s1112_s21 + $0x180] sm:$0xff] }
  0x22   : > { %901 = vmatpush1.bf16.msra.mxu0 %v900_v54  ;;  %v276_v11 = vld [vmem:[%s1112_s21 + $0x1a8] sm:$0xff]  ;;  %v278_v13 = vld [vmem:[%s1112_s21 + $0x1b8] sm:$0xff]  ;;  %v275_v18 = vld [vmem:[%s1112_s21 + $0x1a0] sm:$0xff] }
  0x23   : > { %973 = vmatpush1.bf16.msra.mxu1 %v972_v55  ;;  %903 = vmatprep.subr.bf16.mxu0 %v902_v56  ;;  %v910_v16 = vpack.c.bf16 %v276_v11, %v272_v10  ;;  %v273_v19 = vld [vmem:[%s1112_s21 + $0x190] sm:$0xff]  ;;  %v982_v20 = vpack.c.bf16 %v278_v13, %v274_v12  ;;  %v280_v22 = vld [vmem:[%s1112_s21 + $0x1c8] sm:$0xff]  ;;  %v282_v24 = vld [vmem:[%s1112_s21 + $0x1d8] sm:$0xff]  ;;  %v912_v26 = vpack.c.bf16 %v275_v18, %v271_v17 }
  0x24   : > { %975 = vmatprep.subr.bf16.mxu1 %v974_v60  ;;  %v277_v21 = vld [vmem:[%s1112_s21 + $0x1b0] sm:$0xff]  ;;  %v284_v23 = vld [vmem:[%s1112_s21 + $0x1e8] sm:$0xff]  ;;  %v286_v25 = vld [vmem:[%s1112_s21 + $0x1f8] sm:$0xff] }
  0x25   : > { %v984_v27 = vpack.c.bf16 %v277_v21, %v273_v19  ;;  %v914_v28 = vpack.c.bf16 %v284_v23, %v280_v22  ;;  %v279_v29 = vld [vmem:[%s1112_s21 + $0x1c0] sm:$0xff]  ;;  %v281_v31 = vld [vmem:[%s1112_s21 + $0x1d0] sm:$0xff]  ;;  %v986_v32 = vpack.c.bf16 %v286_v25, %v282_v24  ;;  %v288_v34 = vld [vmem:[%s1112_s21 + $0x208] sm:$0xff] }
  0x26   : > { %905 = vmatpush1.bf16.msra.mxu0 %v904_v2  ;;  %v283_v30 = vld [vmem:[%s1112_s21 + $0x1e0] sm:$0xff]  ;;  %v285_v33 = vld [vmem:[%s1112_s21 + $0x1f0] sm:$0xff]  ;;  %v292_v35 = vld [vmem:[%s1112_s21 + $0x228] sm:$0xff] }
  0x27   : > { %977 = vmatpush1.bf16.msra.mxu1 %v976_v3  ;;  %907 = vmatprep.subr.bf16.mxu0 %v906_v4  ;;  %v290_v36 = vld [vmem:[%s1112_s21 + $0x218] sm:$0xff]  ;;  %v916_v38 = vpack.c.bf16 %v283_v30, %v279_v29  ;;  %v988_v39 = vpack.c.bf16 %v285_v33, %v281_v31  ;;  %v918_v40 = vpack.c.bf16 %v292_v35, %v288_v34  ;;  %v287_v41 = vld [vmem:[%s1112_s21 + $0x200] sm:$0xff]  ;;  %v289_v43 = vld [vmem:[%s1112_s21 + $0x210] sm:$0xff] }
  0x28   : > { %979 = vmatprep.subr.bf16.mxu1 %v978_v8  ;;  %v294_v37 = vld [vmem:[%s1112_s21 + $0x238] sm:$0xff]  ;;  %v291_v42 = vld [vmem:[%s1112_s21 + $0x220] sm:$0xff]  ;;  %v293_v45 = vld [vmem:[%s1112_s21 + $0x230] sm:$0xff] }
  0x29   : > { %v990_v44 = vpack.c.bf16 %v294_v37, %v290_v36  ;;  %v296_v46 = vld [vmem:[%s1112_s21 + $0x248] sm:$0xff]  ;;  %v298_v48 = vld [vmem:[%s1112_s21 + $0x258] sm:$0xff]  ;;  %v920_v50 = vpack.c.bf16 %v291_v42, %v287_v41  ;;  %v992_v51 = vpack.c.bf16 %v293_v45, %v289_v43  ;;  %v295_v53 = vld [vmem:[%s1112_s21 + $0x240] sm:$0xff] }
  0x2a   : > { %909 = vmatpush1.bf16.msra.mxu0 %v908_v14  ;;  %v300_v47 = vld [vmem:[%s1112_s21 + $0x268] sm:$0xff]  ;;  %v302_v49 = vld [vmem:[%s1112_s21 + $0x278] sm:$0xff]  ;;  %v299_v54 = vld [vmem:[%s1112_s21 + $0x260] sm:$0xff] }
  0x2b   : > { %981 = vmatpush1.bf16.msra.mxu1 %v980_v15  ;;  %911 = vmatprep.subr.bf16.mxu0 %v910_v16  ;;  %v922_v52 = vpack.c.bf16 %v300_v47, %v296_v46  ;;  %v297_v55 = vld [vmem:[%s1112_s21 + $0x250] sm:$0xff]  ;;  %v994_v56 = vpack.c.bf16 %v302_v49, %v298_v48  ;;  %v304_v58 = vld [vmem:[%s1112_s21 + $0x288] sm:$0xff]  ;;  %v306_v60 = vld [vmem:[%s1112_s21 + $0x298] sm:$0xff]  ;;  %v924_v62 = vpack.c.bf16 %v299_v54, %v295_v53 }
  0x2c   : > { %983 = vmatprep.subr.bf16.mxu1 %v982_v20  ;;  %v301_v57 = vld [vmem:[%s1112_s21 + $0x270] sm:$0xff]  ;;  %v308_v59 = vld [vmem:[%s1112_s21 + $0x2a8] sm:$0xff]  ;;  %v310_v61 = vld [vmem:[%s1112_s21 + $0x2b8] sm:$0xff] }
  0x2d   : > { %v996_v63 = vpack.c.bf16 %v301_v57, %v297_v55  ;;  %v926_v0 = vpack.c.bf16 %v308_v59, %v304_v58  ;;  %v303_v1 = vld [vmem:[%s1112_s21 + $0x280] sm:$0xff]  ;;  %v305_v3 = vld [vmem:[%s1112_s21 + $0x290] sm:$0xff]  ;;  %v998_v4 = vpack.c.bf16 %v310_v61, %v306_v60  ;;  %v312_v6 = vld [vmem:[%s1112_s21 + $0x2c8] sm:$0xff] }
  0x2e   : > { %913 = vmatpush1.bf16.msra.mxu0 %v912_v26  ;;  %v307_v2 = vld [vmem:[%s1112_s21 + $0x2a0] sm:$0xff]  ;;  %v309_v5 = vld [vmem:[%s1112_s21 + $0x2b0] sm:$0xff]  ;;  %v316_v7 = vld [vmem:[%s1112_s21 + $0x2e8] sm:$0xff] }
  0x2f   : > { %985 = vmatpush1.bf16.msra.mxu1 %v984_v27  ;;  %915 = vmatprep.subr.bf16.mxu0 %v914_v28  ;;  %v314_v8 = vld [vmem:[%s1112_s21 + $0x2d8] sm:$0xff]  ;;  %v928_v10 = vpack.c.bf16 %v307_v2, %v303_v1  ;;  %v311_v11 = vld [vmem:[%s1112_s21 + $0x2c0] sm:$0xff]  ;;  %v1000_v12 = vpack.c.bf16 %v309_v5, %v305_v3  ;;  %v930_v13 = vpack.c.bf16 %v316_v7, %v312_v6  ;;  %v313_v15 = vld [vmem:[%s1112_s21 + $0x2d0] sm:$0xff] }
  0x30   : > { %987 = vmatprep.subr.bf16.mxu1 %v986_v32  ;;  %v318_v9 = vld [vmem:[%s1112_s21 + $0x2f8] sm:$0xff]  ;;  %v315_v14 = vld [vmem:[%s1112_s21 + $0x2e0] sm:$0xff]  ;;  %v317_v16 = vld [vmem:[%s1112_s21 + $0x2f0] sm:$0xff] }
  0x31   : > { %v1002_v17 = vpack.c.bf16 %v318_v9, %v314_v8  ;;  %v320_v18 = vld [vmem:[%s1112_s21 + $0x308] sm:$0xff]  ;;  %v322_v21 = vld [vmem:[%s1112_s21 + $0x318] sm:$0xff]  ;;  %v932_v23 = vpack.c.bf16 %v315_v14, %v311_v11  ;;  %v1004_v24 = vpack.c.bf16 %v317_v16, %v313_v15  ;;  %v319_v26 = vld [vmem:[%s1112_s21 + $0x300] sm:$0xff] }
  0x32   : > { %917 = vmatpush1.bf16.msra.mxu0 %v916_v38  ;;  %v324_v19 = vld [vmem:[%s1112_s21 + $0x328] sm:$0xff]  ;;  %v326_v22 = vld [vmem:[%s1112_s21 + $0x338] sm:$0xff]  ;;  %v323_v27 = vld [vmem:[%s1112_s21 + $0x320] sm:$0xff] }
  0x33   : > { %989 = vmatpush1.bf16.msra.mxu1 %v988_v39  ;;  %919 = vmatprep.subr.bf16.mxu0 %v918_v40  ;;  %v212_v20 = vld [vmem:[%s1213_s25 + $0x8] sm:$0xff]  ;;  %v934_v25 = vpack.c.bf16 %v324_v19, %v320_v18  ;;  %v321_v28 = vld [vmem:[%s1112_s21 + $0x310] sm:$0xff]  ;;  %v1006_v29 = vpack.c.bf16 %v326_v22, %v322_v21  ;;  %v330_v33 = vld [vmem:[%s1112_s21 + $0x358] sm:$0xff]  ;;  %v936_v35 = vpack.c.bf16 %v323_v27, %v319_v26 }
  0x34   : > { %991 = vmatprep.subr.bf16.mxu1 %v990_v44  ;;  %444 = vmatprep.mubr.f32.mxu0 %v212_v20  ;;  %v325_v30 = vld [vmem:[%s1112_s21 + $0x330] sm:$0xff]  ;;  %v328_v31 = vld [vmem:[%s1112_s21 + $0x348] sm:$0xff]  ;;  %v334_v34 = vld [vmem:[%s1112_s21 + $0x378] sm:$0xff] }
  0x35   : > { %622 = vmatprep.mubr.f32.mxu1 %v212_v20  ;;  %v332_v32 = vld [vmem:[%s1112_s21 + $0x368] sm:$0xff]  ;;  %v1008_v36 = vpack.c.bf16 %v325_v30, %v321_v28  ;;  %v327_v38 = vld [vmem:[%s1112_s21 + $0x340] sm:$0xff]  ;;  %v329_v40 = vld [vmem:[%s1112_s21 + $0x350] sm:$0xff]  ;;  %v1010_v41 = vpack.c.bf16 %v334_v34, %v330_v33 }
  0x36   : > { %921 = vmatpush1.bf16.msra.mxu0 %v920_v50  ;;  %v938_v37 = vpack.c.bf16 %v332_v32, %v328_v31  ;;  %v331_v39 = vld [vmem:[%s1112_s21 + $0x360] sm:$0xff]  ;;  %v333_v42 = vld [vmem:[%s1112_s21 + $0x370] sm:$0xff]  ;;  %v336_v43 = vld [vmem:[%s1112_s21 + $0x388] sm:$0xff] }
  0x37   : > { %993 = vmatpush1.bf16.msra.mxu1 %v992_v51  ;;  %923 = vmatprep.subr.bf16.mxu0 %v922_v52  ;;  %v340_v44 = vld [vmem:[%s1112_s21 + $0x3a8] sm:$0xff]  ;;  %v338_v45 = vld [vmem:[%s1112_s21 + $0x398] sm:$0xff]  ;;  %v940_v47 = vpack.c.bf16 %v331_v39, %v327_v38  ;;  %v1012_v49 = vpack.c.bf16 %v333_v42, %v329_v40  ;;  %v335_v51 = vld [vmem:[%s1112_s21 + $0x380] sm:$0xff] }
  0x38   : > { %995 = vmatprep.subr.bf16.mxu1 %v994_v56  ;;  %v342_v46 = vld [vmem:[%s1112_s21 + $0x3b8] sm:$0xff]  ;;  %v942_v50 = vpack.c.bf16 %v340_v44, %v336_v43  ;;  %v339_v52 = vld [vmem:[%s1112_s21 + $0x3a0] sm:$0xff]  ;;  %v337_v53 = vld [vmem:[%s1112_s21 + $0x390] sm:$0xff] }
  0x39   : > { %v751_v48 = vld [vmem:[%s1107_s18 + $0x18] sm:$0xff]  ;;  %v1014_v54 = vpack.c.bf16 %v342_v46, %v338_v45  ;;  %v341_v55 = vld [vmem:[%s1112_s21 + $0x3b0] sm:$0xff]  ;;  %v344_v56 = vld [vmem:[%s1112_s21 + $0x3c8] sm:$0xff]  ;;  %v944_v60 = vpack.c.bf16 %v339_v52, %v335_v51 }
  0x3a   : > { %925 = vmatpush1.bf16.msra.mxu0 %v924_v62  ;;  %v348_v57 = vld [vmem:[%s1112_s21 + $0x3e8] sm:$0xff]  ;;  %769 = vperm.xlu1 %1059, %v751_v48   ;;  %v346_v58 = vld [vmem:[%s1112_s21 + $0x3d8] sm:$0xff]  ;;  %v1016_v61 = vpack.c.bf16 %v341_v55, %v337_v53  ;;  %v345_v1 = vld [vmem:[%s1112_s21 + $0x3d0] sm:$0xff] }
  0x3b   : > { %997 = vmatpush1.bf16.msra.mxu1 %v996_v63  ;;  %927 = vmatprep.subr.bf16.mxu0 %v926_v0  ;;  %v350_v59 = vld [vmem:[%s1112_s21 + $0x3f8] sm:$0xff]  ;;  %v946_v62 = vpack.c.bf16 %v348_v57, %v344_v56  ;;  %v343_v63 = vld [vmem:[%s1112_s21 + $0x3c0] sm:$0xff]  ;;  %v349_v3 = vld [vmem:[%s1112_s21 + $0x3f0] sm:$0xff] }
  0x3c   : > { %999 = vmatprep.subr.bf16.mxu1 %v998_v4  ;;  %v347_v0 = vld [vmem:[%s1112_s21 + $0x3e0] sm:$0xff]  ;;  %v1018_v2 = vpack.c.bf16 %v350_v59, %v346_v58  ;;  %v352_v4 = vld [vmem:[%s1112_s21 + $0x408] sm:$0xff]  ;;  %v354_v6 = vld [vmem:[%s1112_s21 + $0x418] sm:$0xff]  ;;  %v1020_v9 = vpack.c.bf16 %v349_v3, %v345_v1 }
  0x3d   : > { %v356_v5 = vld [vmem:[%s1112_s21 + $0x428] sm:$0xff]  ;;  %v358_v7 = vld [vmem:[%s1112_s21 + $0x438] sm:$0xff]  ;;  %v948_v8 = vpack.c.bf16 %v347_v0, %v343_v63  ;;  %v351_v11 = vld [vmem:[%s1112_s21 + $0x400] sm:$0xff] }
  0x3e   : > { %929 = vmatpush1.bf16.msra.mxu0 %v928_v10  ;;  %v950_v10 = vpack.c.bf16 %v356_v5, %v352_v4  ;;  %v353_v14 = vld [vmem:[%s1112_s21 + $0x410] sm:$0xff]  ;;  %v360_v16 = vld [vmem:[%s1112_s21 + $0x448] sm:$0xff]  ;;  %v211_v18 = vld [vmem:[%s1213_s25] sm:$0xff] }
  0x3f   : > { %1001 = vmatpush1.bf16.msra.mxu1 %v1000_v12  ;;  %931 = vmatprep.subr.bf16.mxu0 %v930_v13  ;;  %v355_v12 = vld [vmem:[%s1112_s21 + $0x420] sm:$0xff]  ;;  %v1022_v13 = vpack.c.bf16 %v358_v7, %v354_v6  ;;  %v357_v15 = vld [vmem:[%s1112_s21 + $0x430] sm:$0xff]  ;;  %v362_v20 = vld [vmem:[%s1112_s21 + $0x458] sm:$0xff] }
  0x40   : > { %1003 = vmatprep.subr.bf16.mxu1 %v1002_v17  ;;  %v364_v17 = vld [vmem:[%s1112_s21 + $0x468] sm:$0xff]  ;;  %v952_v19 = vpack.c.bf16 %v355_v12, %v351_v11  ;;  %v366_v21 = vld [vmem:[%s1112_s21 + $0x478] sm:$0xff]  ;;  %v1024_v22 = vpack.c.bf16 %v357_v15, %v353_v14  ;;  %v363_v26 = vld [vmem:[%s1112_s21 + $0x460] sm:$0xff] }
  0x41   : > { %v1026_v27 = vpack.c.bf16 %v366_v21, %v362_v20  ;;  %v361_v28 = vld [vmem:[%s1112_s21 + $0x450] sm:$0xff]  ;;  %v214_v30 = vld [vmem:[%s1213_s25 + $0x18] sm:$0xff]  ;;  %v216_v39 = vld [vmem:[%s1213_s25 + $0x28] sm:$0xff] }
  0x42   : > { %933 = vmatpush1.bf16.msra.mxu0 %v932_v23  ;;  %v215_v23 = vld [vmem:[%s1213_s25 + $0x20] sm:$0xff]  ;;  %v218_v31 = vld [vmem:[%s1213_s25 + $0x38] sm:$0xff]  ;;  %v217_v34 = vld [vmem:[%s1213_s25 + $0x30] sm:$0xff] }
  0x43   : > { %1005 = vmatpush1.bf16.msra.mxu1 %v1004_v24  ;;  %935 = vmatprep.subr.bf16.mxu0 %v934_v25  ;;  %v954_v24 = vpack.c.bf16 %v364_v17, %v360_v16  ;;  %v359_v25 = vld [vmem:[%s1112_s21 + $0x440] sm:$0xff]  ;;  %v213_v38 = vld [vmem:[%s1213_s25 + $0x10] sm:$0xff] }
  0x44   : > { %1007 = vmatprep.subr.bf16.mxu1 %v1006_v29  ;;  %v365_v29 = vld [vmem:[%s1112_s21 + $0x470] sm:$0xff]  ;;  %v956_v32 = vpack.c.bf16 %v363_v26, %v359_v25  ;;  %v219_v40 = vld [vmem:[%s1213_s25 + $0x40] sm:$0xff] }
  0x45   : > { %v1028_v33 = vpack.c.bf16 %v365_v29, %v361_v28 }
  0x46   : > { %937 = vmatpush1.bf16.msra.mxu0 %v936_v35  ;;  %v221_v35 = vld [vmem:[%s1213_s25 + $0x50] sm:$0xff] }
  0x47   : > { %1009 = vmatpush1.bf16.msra.mxu1 %v1008_v36  ;;  %939 = vmatprep.subr.bf16.mxu0 %v938_v37  ;;  %v220_v36 = vld [vmem:[%s1213_s25 + $0x48] sm:$0xff]  ;;  %v1069_v37 = vmov 0.0  }
  0x48   : > { %1011 = vmatprep.subr.bf16.mxu1 %v1010_v41  ;;  %v222_v41 = vld [vmem:[%s1213_s25 + $0x58] sm:$0xff] }
  0x4a   : > { %941 = vmatpush1.bf16.msra.mxu0 %v940_v47 }
  0x4b   : > { %1013 = vmatpush1.bf16.msra.mxu1 %v1012_v49  ;;  %943 = vmatprep.subr.bf16.mxu0 %v942_v50 }
  0x4c   : > { %1015 = vmatprep.subr.bf16.mxu1 %v1014_v54 }
  0x4e   : > { %945 = vmatpush1.bf16.msra.mxu0 %v944_v60 }
  0x4f   : > { %1017 = vmatpush1.bf16.msra.mxu1 %v1016_v61  ;;  %947 = vmatprep.subr.bf16.mxu0 %v946_v62 }
  0x50   : > { %1019 = vmatprep.subr.bf16.mxu1 %v1018_v2 }
  0x52   : > { %949 = vmatpush1.bf16.msra.mxu0 %v948_v8 }
  0x53   : > { %1021 = vmatpush1.bf16.msra.mxu1 %v1020_v9  ;;  %951 = vmatprep.subr.bf16.mxu0 %v950_v10 }
  0x54   : > { %1023 = vmatprep.subr.bf16.mxu1 %v1022_v13 }
  0x55   : > { %445 = vmatmul.mubr.f32.vlgmr.msra.gmra.mrb[0].mxu0 %v211_v18 }
  0x56   : > { %623 = vmatmul.mubr.f32.vlgmr.msra.gmra.mrb[0].mxu1 %v211_v18  ;;  %953 = vmatpush1.bf16.msra.mxu0 %v952_v19 }
  0x57   : > { %1025 = vmatpush1.bf16.msra.mxu1 %v1024_v22  ;;  %450 = vmatprep.mubr.f32.mxu0 %v215_v23 }
  0x58   : > { %628 = vmatprep.mubr.f32.mxu1 %v215_v23  ;;  %955 = vmatprep.subr.bf16.mxu0 %v954_v24 }
  0x59   : > { %451 = vmatmul.mubr.f32.gmra.mrb[2].mxu0 %v214_v30  ;;  %1027 = vmatprep.subr.bf16.mxu1 %v1026_v27 }
  0x5a   : > { %629 = vmatmul.mubr.f32.gmra.mrb[2].mxu1 %v214_v30  ;;  %456 = vmatprep.mubr.f32.mxu0 %v218_v31 }
  0x5b   : > { %634 = vmatprep.mubr.f32.mxu1 %v218_v31  ;;  %957 = vmatpush1.bf16.msra.mxu0 %v956_v32 }
  0x5c   : > { %1029 = vmatpush1.bf16.msra.mxu1 %v1028_v33 }
  0x5d   : > { %457 = vmatmul.mubr.f32.gmra.mrb[4].mxu0 %v217_v34 }
  0x5e   : > { %635 = vmatmul.mubr.f32.gmra.mrb[4].mxu1 %v217_v34  ;;  %462 = vmatprep.mubr.f32.mxu0 %v221_v35 }
  0x5f   : > { %640 = vmatprep.mubr.f32.mxu1 %v221_v35 }
  0x61   : > { %463 = vmatmul.mubr.f32.gmra.mrb[6].mxu0 %v220_v36 }
  0x62   : > { %641 = vmatmul.mubr.f32.gmra.mrb[6].mxu1 %v220_v36  ;;  %533 = vmatprep.mubr.f32.mxu0 %v1069_v37 }
  0x63   : > { %711 = vmatprep.mubr.f32.mxu1 %v1069_v37 }
  0x65   : > { %874 = vmatmul.mubr.msk.f32.vlgmr.msra.gmra.mrb[0].mxu0 %vm367_vm0, %v213_v38 }
  0x66   : > { %878 = vmatmul.mubr.msk.f32.vlgmr.msra.gmra.mrb[0].mxu1 %vm367_vm0, %v213_v38  ;;  %539 = vmatprep.mubr.f32.mxu0 %v1069_v37 }
  0x67   : > { %717 = vmatprep.mubr.f32.mxu1 %v1069_v37 }
  0x69   : > { %875 = vmatmul.mubr.msk.f32.gmra.mrb[2].mxu0 %vm367_vm0, %v216_v39 }
  0x6a   : > { %879 = vmatmul.mubr.msk.f32.gmra.mrb[2].mxu1 %vm367_vm0, %v216_v39  ;;  %545 = vmatprep.mubr.f32.mxu0 %v1069_v37 }
  0x6b   : > { %723 = vmatprep.mubr.f32.mxu1 %v1069_v37 }
  0x6d   : > { %876 = vmatmul.mubr.msk.f32.gmra.mrb[4].mxu0 %vm367_vm0, %v219_v40 }
  0x6e   : > { %880 = vmatmul.mubr.msk.f32.gmra.mrb[4].mxu1 %vm367_vm0, %v219_v40  ;;  %551 = vmatprep.mubr.f32.mxu0 %v1069_v37 }
  0x6f   : > { %729 = vmatprep.mubr.f32.mxu1 %v1069_v37 }
  0x71   : > { %877 = vmatmul.mubr.msk.f32.gmra.mrb[6].mxu0 %vm367_vm0, %v222_v41 }
  0x72   : > { %881 = vmatmul.mubr.msk.f32.gmra.mrb[6].mxu1 %vm367_vm0, %v222_v41 }
  0x90   : > { %v755_v47 = vpop.permute.xlu0 %754  ;;  %v765_v3 = vpop.permute.xlu1 %764 }
  0x95   : > { %v760_v58 = vpop.permute.xlu0 %759 }
  0xb9   : > { %v770_v15 = vpop.permute.xlu1 %769 }
 0x138   : > { %v535_v42 = vpop.f32.mrb[0].mxu0 }
 0x139   : > { %v713_v43 = vpop.f32.mrb[0].mxu1  ;;  %v537_v44 = vpop.f32.mrb[1].mxu0 }
 0x13a   : > { %v736_v45 = vmax.f32 %v535_v42, %v537_v44  ;;  %v715_v46 = vpop.f32.mrb[1].mxu1 }
 0x13b   : > { %v740_v48 = vmax.f32 %v713_v43, %v715_v46 }
 0x13c   : > { %v541_v49 = vpop.f32.mrb[2].mxu0 }
 0x13d   : > { %v719_v50 = vpop.f32.mrb[2].mxu1  ;;  %v744_v51 = vmax.f32 %v736_v45, %v740_v48  ;;  %v543_v52 = vpop.f32.mrb[3].mxu0 }
 0x13e   : > { %v737_v53 = vmax.f32 %v541_v49, %v543_v52  ;;  %v721_v54 = vpop.f32.mrb[3].mxu1 }
 0x13f   : > { %v772_v55 = vadd.f32 %v755_v47, %v744_v51  ;;  %v741_v56 = vmax.f32 %v719_v50, %v721_v54 }
 0x140   : > { %v547_v57 = vpop.f32.mrb[4].mxu0 }
 0x141   : > { %v776_v59 = vmax.f32 %v772_v55, 0.0  ;;  %v725_v60 = vpop.f32.mrb[4].mxu1  ;;  %v745_v61 = vmax.f32 %v737_v53, %v741_v56  ;;  %v549_v62 = vpop.f32.mrb[5].mxu0 }
 0x142   : > { %v738_v63 = vmax.f32 %v547_v57, %v549_v62  ;;  %v727_v0 = vpop.f32.mrb[5].mxu1 }
 0x143   : > { %780 = vst [vmem:[%s210_s28] sm:$0xff] %v776_v59  ;;  %v773_v1 = vadd.f32 %v760_v58, %v745_v61  ;;  %v742_v2 = vmax.f32 %v725_v60, %v727_v0 }
 0x144   : > { %v553_v4 = vpop.f32.mrb[6].mxu0 }
 0x145   : > { %v777_v5 = vmax.f32 %v773_v1, 0.0  ;;  %v746_v6 = vmax.f32 %v738_v63, %v742_v2  ;;  %v731_v7 = vpop.f32.mrb[6].mxu1  ;;  %v555_v8 = vpop.f32.mrb[7].mxu0 }
 0x146   : > { %v739_v9 = vmax.f32 %v553_v4, %v555_v8  ;;  %v733_v10 = vpop.f32.mrb[7].mxu1 }
 0x147   : > { %781 = vst [vmem:[%s210_s28 + $0x8] sm:$0xff] %v777_v5  ;;  %v774_v11 = vadd.f32 %v765_v3, %v746_v6  ;;  %v743_v12 = vmax.f32 %v731_v7, %v733_v10 }
 0x149   : > { %v778_v13 = vmax.f32 %v774_v11, 0.0  ;;  %v747_v14 = vmax.f32 %v739_v9, %v743_v12 }
 0x14b   : > { %782 = vst [vmem:[%s210_s28 + $0x10] sm:$0xff] %v778_v13  ;;  %v775_v16 = vadd.f32 %v770_v15, %v747_v14 }
 0x14d   : > { %v779_v17 = vmax.f32 %v775_v16, 0.0 }
 0x14f   : > { %783 = vst [vmem:[%s210_s28 + $0x18] sm:$0xff] %v779_v17 }
 0x150 PF: > { %s13_s12 = sadd.s32 1, %s1066_s12  }
 0x151   : > { %p10_p4 = scmp.ge.s32.totalorder %s13_s12, 4  }
 0x153   :  { %12 = sbr.rel (!%p10_p4) target bundleno = 1 (0x1), region = 68 }

// kernel: critic_forward.6
= control target key start
LH: loop header
LB: loop body
LE: loop exit
PB: predicated region body
PF: predicated region fallthrough
CT: control target
= control target key end

     0   :  { %v4436_v32 = vmov 1983009808   ;;  %v1566_v34 = vlaneseq  ;;  %s6109_s1 = inlined_call_operand.vmem [shape: bf16[1024,1024], index: 1, kind: input, shape index: {}]   ;;  %s6110_s0 = inlined_call_operand.vmem [shape: f32[2,1024], index: 0, kind: input, shape index: {}]   ;;  %s6111_s2 = inlined_call_operand.vmem [shape: f32[1,1024], index: 2, kind: input, shape index: {}]   ;;  %s6112_s3 = inlined_call_operand.vmem [shape: f32[2,1024], index: 3, kind: output, shape index: {}]  }
   0x1   :  { %v24_v0 = vld [vmem:[%s6109_s1] sm:$0xff]  ;;  %v25_v2 = vld [vmem:[%s6109_s1 + $0x8] sm:$0xff]  ;;  %v1564_v33 = vunpack.c.l.s4 %v4436_v32 }
   0x2   :  { %v28_v1 = vld [vmem:[%s6109_s1 + $0x20] sm:$0xff]  ;;  %v29_v4 = vld [vmem:[%s6109_s1 + $0x28] sm:$0xff]  ;;  %v4523_v44 = vshrl.u32 %v1566_v34, 7 }
   0x3   :  { %v3921_v3 = vcombine.high %v24_v0, %v28_v1  ;;  %v3922_v5 = vcombine.low %v24_v0, %v28_v1  ;;  %v32_v6 = vld [vmem:[%s6109_s1 + $0x40] sm:$0xff]  ;;  %v4049_v8 = vcombine.high %v25_v2, %v29_v4  ;;  %v4050_v9 = vcombine.low %v25_v2, %v29_v4  ;;  %v33_v11 = vld [vmem:[%s6109_s1 + $0x48] sm:$0xff] }
   0x4   :  { %v36_v7 = vld [vmem:[%s6109_s1 + $0x60] sm:$0xff]  ;;  %v37_v12 = vld [vmem:[%s6109_s1 + $0x68] sm:$0xff]  ;;  %v1565_v43 = vunpack.c.0.s8 %v1564_v33 }
   0x5   :  { %v3923_v10 = vcombine.high %v32_v6, %v36_v7  ;;  %v40_v13 = vld [vmem:[%s6109_s1 + $0x80] sm:$0xff]  ;;  %2874 = vmatprep.subr.bf16.mxu0 %v3921_v3  ;;  %v4051_v14 = vcombine.high %v33_v11, %v37_v12  ;;  %v41_v16 = vld [vmem:[%s6109_s1 + $0x88] sm:$0xff]  ;;  %3130 = vmatprep.subr.bf16.mxu1 %v4049_v8  ;;  %v3924_v18 = vcombine.low %v32_v6, %v36_v7 }
   0x6   :  { %v44_v15 = vld [vmem:[%s6109_s1 + $0xa0] sm:$0xff]  ;;  %v45_v17 = vld [vmem:[%s6109_s1 + $0xa8] sm:$0xff]  ;;  %2876 = vmatpush1.bf16.msra.mxu0 %v3922_v5  ;;  %3132 = vmatpush1.bf16.msra.mxu1 %v4050_v9  ;;  %v4052_v19 = vcombine.low %v33_v11, %v37_v12  ;;  %v4538_v53 = vsub.s32 %v1565_v43, %v4523_v44 }
   0x7   :  { %2878 = vmatprep.subr.bf16.mxu0 %v3923_v10  ;;  %v3925_v20 = vcombine.high %v40_v13, %v44_v15  ;;  %3134 = vmatprep.subr.bf16.mxu1 %v4051_v14  ;;  %v4053_v21 = vcombine.high %v41_v16, %v45_v17  ;;  %v48_v22 = vld [vmem:[%s6109_s1 + $0xc0] sm:$0xff]  ;;  %v49_v24 = vld [vmem:[%s6109_s1 + $0xc8] sm:$0xff]  ;;  %v3926_v26 = vcombine.low %v40_v13, %v44_v15 }
   0x8   :  { %v52_v23 = vld [vmem:[%s6109_s1 + $0xe0] sm:$0xff]  ;;  %v53_v25 = vld [vmem:[%s6109_s1 + $0xe8] sm:$0xff]  ;;  %v4054_v27 = vcombine.low %v41_v16, %v45_v17 }
   0x9   :  { %v3927_v28 = vcombine.high %v48_v22, %v52_v23  ;;  %v4055_v29 = vcombine.high %v49_v24, %v53_v25  ;;  %v56_v30 = vld [vmem:[%s6109_s1 + $0x100] sm:$0xff]  ;;  %v57_v35 = vld [vmem:[%s6109_s1 + $0x108] sm:$0xff]  ;;  %v3928_v37 = vcombine.low %v48_v22, %v52_v23  ;;  %v4056_v38 = vcombine.low %v49_v24, %v53_v25 }
   0xa   :  { %2880 = vmatpush1.bf16.msra.mxu0 %v3924_v18  ;;  %3136 = vmatpush1.bf16.msra.mxu1 %v4052_v19  ;;  %v60_v31 = vld [vmem:[%s6109_s1 + $0x120] sm:$0xff]  ;;  %v61_v36 = vld [vmem:[%s6109_s1 + $0x128] sm:$0xff] }
   0xb   :  { %2882 = vmatprep.subr.bf16.mxu0 %v3925_v20  ;;  %3138 = vmatprep.subr.bf16.mxu1 %v4053_v21  ;;  %v3929_v39 = vcombine.high %v56_v30, %v60_v31  ;;  %v4057_v40 = vcombine.high %v57_v35, %v61_v36  ;;  %v64_v41 = vld [vmem:[%s6109_s1 + $0x140] sm:$0xff]  ;;  %v65_v45 = vld [vmem:[%s6109_s1 + $0x148] sm:$0xff]  ;;  %v3930_v47 = vcombine.low %v56_v30, %v60_v31 }
   0xc   :  { %v68_v42 = vld [vmem:[%s6109_s1 + $0x160] sm:$0xff]  ;;  %v69_v46 = vld [vmem:[%s6109_s1 + $0x168] sm:$0xff]  ;;  %v4058_v48 = vcombine.low %v57_v35, %v61_v36 }
   0xd   :  { %v3931_v49 = vcombine.high %v64_v41, %v68_v42  ;;  %v4059_v50 = vcombine.high %v65_v45, %v69_v46  ;;  %v72_v51 = vld [vmem:[%s6109_s1 + $0x180] sm:$0xff]  ;;  %v73_v54 = vld [vmem:[%s6109_s1 + $0x188] sm:$0xff]  ;;  %v3932_v56 = vcombine.low %v64_v41, %v68_v42  ;;  %v4060_v57 = vcombine.low %v65_v45, %v69_v46 }
   0xe   :  { %2884 = vmatpush1.bf16.msra.mxu0 %v3926_v26  ;;  %3140 = vmatpush1.bf16.msra.mxu1 %v4054_v27  ;;  %v76_v52 = vld [vmem:[%s6109_s1 + $0x1a0] sm:$0xff]  ;;  %v77_v55 = vld [vmem:[%s6109_s1 + $0x1a8] sm:$0xff] }
   0xf   :  { %2886 = vmatprep.subr.bf16.mxu0 %v3927_v28  ;;  %3142 = vmatprep.subr.bf16.mxu1 %v4055_v29  ;;  %v3933_v58 = vcombine.high %v72_v51, %v76_v52  ;;  %v4549_v59 = vld [vmem:[%s6110_s0] sm:$0xff]  ;;  %v4061_v60 = vcombine.high %v73_v54, %v77_v55  ;;  %v81_v0 = vld [vmem:[%s6109_s1 + $0x1c8] sm:$0xff]  ;;  %v3934_v2 = vcombine.low %v72_v51, %v76_v52 }
  0x10   :  { %v80_v61 = vld [vmem:[%s6109_s1 + $0x1c0] sm:$0xff]  ;;  %v4559_v63 = vrot.slane %v4549_v59, %v4538_v53  ;;  %v85_v1 = vld [vmem:[%s6109_s1 + $0x1e8] sm:$0xff]  ;;  %v4062_v4 = vcombine.low %v73_v54, %v77_v55 }
  0x11   :  { %v84_v62 = vld [vmem:[%s6109_s1 + $0x1e0] sm:$0xff]  ;;  %v4063_v6 = vcombine.high %v81_v0, %v85_v1  ;;  %v89_v9 = vld [vmem:[%s6109_s1 + $0x208] sm:$0xff]  ;;  %v4064_v12 = vcombine.low %v81_v0, %v85_v1 }
  0x12   :  { %2888 = vmatpush1.bf16.msra.mxu0 %v3928_v37  ;;  %3144 = vmatpush1.bf16.msra.mxu1 %v4056_v38  ;;  %v4569_v3 = vcombine.high %v4559_v63, %v4559_v63  ;;  %v3935_v5 = vcombine.high %v80_v61, %v84_v62  ;;  %v88_v7 = vld [vmem:[%s6109_s1 + $0x200] sm:$0xff]  ;;  %v93_v10 = vld [vmem:[%s6109_s1 + $0x228] sm:$0xff]  ;;  %v3936_v11 = vcombine.low %v80_v61, %v84_v62 }
  0x13   :  { %2890 = vmatprep.subr.bf16.mxu0 %v3929_v39  ;;  %3146 = vmatprep.subr.bf16.mxu1 %v4057_v40  ;;  %v92_v8 = vld [vmem:[%s6109_s1 + $0x220] sm:$0xff]  ;;  %v4065_v14 = vcombine.high %v89_v9, %v93_v10  ;;  %v97_v17 = vld [vmem:[%s6109_s1 + $0x248] sm:$0xff]  ;;  %v4066_v20 = vcombine.low %v89_v9, %v93_v10 }
  0x14   :  { %1668 = vmatprep.mubr.f32.mxu0 %v4569_v3  ;;  %1952 = vmatprep.mubr.f32.mxu1 %v4569_v3  ;;  %v3937_v13 = vcombine.high %v88_v7, %v92_v8  ;;  %v96_v15 = vld [vmem:[%s6109_s1 + $0x240] sm:$0xff]  ;;  %v101_v18 = vld [vmem:[%s6109_s1 + $0x268] sm:$0xff]  ;;  %v3938_v19 = vcombine.low %v88_v7, %v92_v8 }
  0x15   :  { %v100_v16 = vld [vmem:[%s6109_s1 + $0x260] sm:$0xff]  ;;  %v4067_v22 = vcombine.high %v97_v17, %v101_v18  ;;  %v105_v25 = vld [vmem:[%s6109_s1 + $0x288] sm:$0xff]  ;;  %v4068_v28 = vcombine.low %v97_v17, %v101_v18 }
  0x16   :  { %2892 = vmatpush1.bf16.msra.mxu0 %v3930_v47  ;;  %3148 = vmatpush1.bf16.msra.mxu1 %v4058_v48  ;;  %v3939_v21 = vcombine.high %v96_v15, %v100_v16  ;;  %v104_v23 = vld [vmem:[%s6109_s1 + $0x280] sm:$0xff]  ;;  %v109_v26 = vld [vmem:[%s6109_s1 + $0x2a8] sm:$0xff]  ;;  %v3940_v27 = vcombine.low %v96_v15, %v100_v16 }
  0x17   :  { %2894 = vmatprep.subr.bf16.mxu0 %v3931_v49  ;;  %3150 = vmatprep.subr.bf16.mxu1 %v4059_v50  ;;  %v108_v24 = vld [vmem:[%s6109_s1 + $0x2a0] sm:$0xff]  ;;  %v4069_v30 = vcombine.high %v105_v25, %v109_v26  ;;  %v113_v33 = vld [vmem:[%s6109_s1 + $0x2c8] sm:$0xff]  ;;  %v4070_v36 = vcombine.low %v105_v25, %v109_v26 }
  0x18   :  { %v3941_v29 = vcombine.high %v104_v23, %v108_v24  ;;  %v112_v31 = vld [vmem:[%s6109_s1 + $0x2c0] sm:$0xff]  ;;  %v117_v34 = vld [vmem:[%s6109_s1 + $0x2e8] sm:$0xff]  ;;  %v3942_v35 = vcombine.low %v104_v23, %v108_v24 }
  0x19   :  { %v116_v32 = vld [vmem:[%s6109_s1 + $0x2e0] sm:$0xff]  ;;  %v4071_v38 = vcombine.high %v113_v33, %v117_v34  ;;  %v121_v41 = vld [vmem:[%s6109_s1 + $0x308] sm:$0xff]  ;;  %v4072_v45 = vcombine.low %v113_v33, %v117_v34 }
  0x1a   :  { %2896 = vmatpush1.bf16.msra.mxu0 %v3932_v56  ;;  %3152 = vmatpush1.bf16.msra.mxu1 %v4060_v57  ;;  %v3943_v37 = vcombine.high %v112_v31, %v116_v32  ;;  %v120_v39 = vld [vmem:[%s6109_s1 + $0x300] sm:$0xff]  ;;  %v125_v42 = vld [vmem:[%s6109_s1 + $0x328] sm:$0xff]  ;;  %v3944_v43 = vcombine.low %v112_v31, %v116_v32 }
  0x1b   :  { %2898 = vmatprep.subr.bf16.mxu0 %v3933_v58  ;;  %3154 = vmatprep.subr.bf16.mxu1 %v4061_v60  ;;  %v124_v40 = vld [vmem:[%s6109_s1 + $0x320] sm:$0xff]  ;;  %v4073_v47 = vcombine.high %v121_v41, %v125_v42  ;;  %v129_v50 = vld [vmem:[%s6109_s1 + $0x348] sm:$0xff]  ;;  %v4074_v54 = vcombine.low %v121_v41, %v125_v42 }
  0x1c   :  { %v3945_v46 = vcombine.high %v120_v39, %v124_v40  ;;  %v128_v48 = vld [vmem:[%s6109_s1 + $0x340] sm:$0xff]  ;;  %v133_v51 = vld [vmem:[%s6109_s1 + $0x368] sm:$0xff]  ;;  %v3946_v52 = vcombine.low %v120_v39, %v124_v40 }
  0x1d   :  { %v132_v49 = vld [vmem:[%s6109_s1 + $0x360] sm:$0xff]  ;;  %v4075_v56 = vcombine.high %v129_v50, %v133_v51  ;;  %v137_v60 = vld [vmem:[%s6109_s1 + $0x388] sm:$0xff]  ;;  %v4076_v0 = vcombine.low %v129_v50, %v133_v51 }
  0x1e   :  { %2900 = vmatpush1.bf16.msra.mxu0 %v3934_v2  ;;  %3156 = vmatpush1.bf16.msra.mxu1 %v4062_v4  ;;  %v3947_v55 = vcombine.high %v128_v48, %v132_v49  ;;  %v136_v57 = vld [vmem:[%s6109_s1 + $0x380] sm:$0xff]  ;;  %v141_v61 = vld [vmem:[%s6109_s1 + $0x3a8] sm:$0xff]  ;;  %v3948_v62 = vcombine.low %v128_v48, %v132_v49 }
  0x1f   :  { %2902 = vmatprep.subr.bf16.mxu0 %v3935_v5  ;;  %3158 = vmatprep.subr.bf16.mxu1 %v4063_v6  ;;  %v140_v58 = vld [vmem:[%s6109_s1 + $0x3a0] sm:$0xff]  ;;  %v4077_v2 = vcombine.high %v137_v60, %v141_v61  ;;  %v145_v6 = vld [vmem:[%s6109_s1 + $0x3c8] sm:$0xff]  ;;  %v4078_v9 = vcombine.low %v137_v60, %v141_v61 }
  0x20   :  { %v3949_v1 = vcombine.high %v136_v57, %v140_v58  ;;  %v144_v4 = vld [vmem:[%s6109_s1 + $0x3c0] sm:$0xff]  ;;  %v149_v7 = vld [vmem:[%s6109_s1 + $0x3e8] sm:$0xff]  ;;  %v3950_v8 = vcombine.low %v136_v57, %v140_v58 }
  0x21   :  { %v148_v5 = vld [vmem:[%s6109_s1 + $0x3e0] sm:$0xff]  ;;  %v153_v15 = vld [vmem:[%s6109_s1 + $0x408] sm:$0xff]  ;;  %v4080_v18 = vcombine.low %v145_v6, %v149_v7 }
  0x22   :  { %2904 = vmatpush1.bf16.msra.mxu0 %v3936_v11  ;;  %3160 = vmatpush1.bf16.msra.mxu1 %v4064_v12  ;;  %v3951_v10 = vcombine.high %v144_v4, %v148_v5  ;;  %v4079_v11 = vcombine.high %v145_v6, %v149_v7  ;;  %v152_v12 = vld [vmem:[%s6109_s1 + $0x400] sm:$0xff]  ;;  %v157_v16 = vld [vmem:[%s6109_s1 + $0x428] sm:$0xff]  ;;  %v3952_v17 = vcombine.low %v144_v4, %v148_v5 }
  0x23   :  { %2906 = vmatprep.subr.bf16.mxu0 %v3937_v13  ;;  %3162 = vmatprep.subr.bf16.mxu1 %v4065_v14  ;;  %v156_v13 = vld [vmem:[%s6109_s1 + $0x420] sm:$0xff]  ;;  %v1562_v14 = vcombine.high %v4549_v59, %v4549_v59  ;;  %v161_v23 = vld [vmem:[%s6109_s1 + $0x448] sm:$0xff]  ;;  %v4082_v26 = vcombine.low %v153_v15, %v157_v16 }
  0x24   :  { %v160_v59 = vld [vmem:[%s6109_s1 + $0x440] sm:$0xff]  ;;  %v165_v24 = vld [vmem:[%s6109_s1 + $0x468] sm:$0xff]  ;;  %v3954_v25 = vcombine.low %v152_v12, %v156_v13 }
  0x25   :  { %v169_v32 = vld [vmem:[%s6109_s1 + $0x488] sm:$0xff]  ;;  %v180_v39 = vld [vmem:[%s6109_s1 + $0x4e0] sm:$0xff] }
  0x26   :  { %2908 = vmatpush1.bf16.msra.mxu0 %v3938_v19  ;;  %3164 = vmatpush1.bf16.msra.mxu1 %v4066_v20  ;;  %v3953_v19 = vcombine.high %v152_v12, %v156_v13  ;;  %v4081_v20 = vcombine.high %v153_v15, %v157_v16  ;;  %v173_v33 = vld [vmem:[%s6109_s1 + $0x4a8] sm:$0xff]  ;;  %v188_v48 = vld [vmem:[%s6109_s1 + $0x520] sm:$0xff] }
  0x27   :  { %2910 = vmatprep.subr.bf16.mxu0 %v3939_v21  ;;  %3166 = vmatprep.subr.bf16.mxu1 %v4067_v22  ;;  %v164_v21 = vld [vmem:[%s6109_s1 + $0x460] sm:$0xff]  ;;  %v4690_v22 = vrot.slane %v1562_v14, %v4538_v53  ;;  %v177_v40 = vld [vmem:[%s6109_s1 + $0x4c8] sm:$0xff] }
  0x28   :  { %v3956_v34 = vcombine.low %v160_v59, %v164_v21  ;;  %v181_v41 = vld [vmem:[%s6109_s1 + $0x4e8] sm:$0xff]  ;;  %v196_v57 = vld [vmem:[%s6109_s1 + $0x560] sm:$0xff] }
  0x29   :  { %v4706_v31 = vcombine.high %v4690_v22, %v4690_v22  ;;  %v185_v49 = vld [vmem:[%s6109_s1 + $0x508] sm:$0xff]  ;;  %v204_v4 = vld [vmem:[%s6109_s1 + $0x5a0] sm:$0xff] }
  0x2a   :  { %2912 = vmatpush1.bf16.msra.mxu0 %v3940_v27  ;;  %3168 = vmatpush1.bf16.msra.mxu1 %v4068_v28  ;;  %v3955_v27 = vcombine.high %v160_v59, %v164_v21  ;;  %v4083_v28 = vcombine.high %v161_v23, %v165_v24  ;;  %v189_v50 = vld [vmem:[%s6109_s1 + $0x528] sm:$0xff]  ;;  %v212_v12 = vld [vmem:[%s6109_s1 + $0x5e0] sm:$0xff] }
  0x2b   :  { %2914 = vmatprep.subr.bf16.mxu0 %v3941_v29  ;;  %3170 = vmatprep.subr.bf16.mxu1 %v4069_v30  ;;  %v168_v29 = vld [vmem:[%s6109_s1 + $0x480] sm:$0xff]  ;;  %v193_v58 = vld [vmem:[%s6109_s1 + $0x548] sm:$0xff] }
  0x2c   :  { %v172_v30 = vld [vmem:[%s6109_s1 + $0x4a0] sm:$0xff]  ;;  %v197_v60 = vld [vmem:[%s6109_s1 + $0x568] sm:$0xff] }
  0x2d   :  { %v3958_v42 = vcombine.low %v168_v29, %v172_v30  ;;  %v201_v5 = vld [vmem:[%s6109_s1 + $0x588] sm:$0xff] }
  0x2e   :  { %2916 = vmatpush1.bf16.msra.mxu0 %v3942_v35  ;;  %3172 = vmatpush1.bf16.msra.mxu1 %v4070_v36  ;;  %v4084_v35 = vcombine.low %v161_v23, %v165_v24  ;;  %v3957_v36 = vcombine.high %v168_v29, %v172_v30  ;;  %v205_v6 = vld [vmem:[%s6109_s1 + $0x5a8] sm:$0xff] }
  0x2f   :  { %2918 = vmatprep.subr.bf16.mxu0 %v3943_v37  ;;  %3174 = vmatprep.subr.bf16.mxu1 %v4071_v38  ;;  %v4085_v37 = vcombine.high %v169_v32, %v173_v33  ;;  %v176_v38 = vld [vmem:[%s6109_s1 + $0x4c0] sm:$0xff]  ;;  %v209_v13 = vld [vmem:[%s6109_s1 + $0x5c8] sm:$0xff]  ;;  %v4094_v16 = vcombine.low %v201_v5, %v205_v6 }
  0x30   :  { %v3960_v51 = vcombine.low %v176_v38, %v180_v39  ;;  %v213_v14 = vld [vmem:[%s6109_s1 + $0x5e8] sm:$0xff] }
  0x31   :  { %v217_v59 = vld [vmem:[%s6109_s1 + $0x608] sm:$0xff]  ;;  %v4096_v24 = vcombine.low %v209_v13, %v213_v14 }
  0x32   :  { %2920 = vmatpush1.bf16.msra.mxu0 %v3944_v43  ;;  %3176 = vmatpush1.bf16.msra.mxu1 %v4072_v45  ;;  %v4086_v43 = vcombine.low %v169_v32, %v173_v33  ;;  %v3959_v45 = vcombine.high %v176_v38, %v180_v39  ;;  %v221_v21 = vld [vmem:[%s6109_s1 + $0x628] sm:$0xff] }
  0x33   :  { %2922 = vmatprep.subr.bf16.mxu0 %v3945_v46  ;;  %3178 = vmatprep.subr.bf16.mxu1 %v4073_v47  ;;  %v4087_v46 = vcombine.high %v177_v40, %v181_v41  ;;  %v184_v47 = vld [vmem:[%s6109_s1 + $0x500] sm:$0xff]  ;;  %v225_v29 = vld [vmem:[%s6109_s1 + $0x648] sm:$0xff]  ;;  %v4098_v33 = vcombine.low %v217_v59, %v221_v21 }
  0x34   :  { %v3962_v61 = vcombine.low %v184_v47, %v188_v48  ;;  %v229_v30 = vld [vmem:[%s6109_s1 + $0x668] sm:$0xff] }
  0x35   :  { %v233_v38 = vld [vmem:[%s6109_s1 + $0x688] sm:$0xff] }
  0x36   :  { %2924 = vmatpush1.bf16.msra.mxu0 %v3946_v52  ;;  %3180 = vmatpush1.bf16.msra.mxu1 %v4074_v54  ;;  %v4088_v52 = vcombine.low %v177_v40, %v181_v41  ;;  %v3961_v54 = vcombine.high %v184_v47, %v188_v48  ;;  %v237_v39 = vld [vmem:[%s6109_s1 + $0x6a8] sm:$0xff]  ;;  %v4100_v41 = vcombine.low %v225_v29, %v229_v30 }
  0x37   :  { %2926 = vmatprep.subr.bf16.mxu0 %v3947_v55  ;;  %3182 = vmatprep.subr.bf16.mxu1 %v4075_v56  ;;  %v4089_v55 = vcombine.high %v185_v49, %v189_v50  ;;  %v192_v56 = vld [vmem:[%s6109_s1 + $0x540] sm:$0xff]  ;;  %v241_v47 = vld [vmem:[%s6109_s1 + $0x6c8] sm:$0xff] }
  0x38   :  { %v3964_v7 = vcombine.low %v192_v56, %v196_v57  ;;  %v245_v48 = vld [vmem:[%s6109_s1 + $0x6e8] sm:$0xff] }
  0x3a   :  { %2928 = vmatpush1.bf16.msra.mxu0 %v3948_v62  ;;  %3184 = vmatpush1.bf16.msra.mxu1 %v4076_v0  ;;  %v4090_v62 = vcombine.low %v185_v49, %v189_v50  ;;  %v3963_v0 = vcombine.high %v192_v56, %v196_v57  ;;  %v4102_v50 = vcombine.low %v233_v38, %v237_v39  ;;  %v249_v56 = vld [vmem:[%s6109_s1 + $0x708] sm:$0xff] }
  0x3b   :  { %2930 = vmatprep.subr.bf16.mxu0 %v3949_v1  ;;  %3186 = vmatprep.subr.bf16.mxu1 %v4077_v2  ;;  %v4091_v1 = vcombine.high %v193_v58, %v197_v60  ;;  %v200_v2 = vld [vmem:[%s6109_s1 + $0x580] sm:$0xff]  ;;  %v253_v57 = vld [vmem:[%s6109_s1 + $0x728] sm:$0xff] }
  0x3c   :  { %v3966_v15 = vcombine.low %v200_v2, %v204_v4 }
  0x3e   :  { %2932 = vmatpush1.bf16.msra.mxu0 %v3950_v8  ;;  %3188 = vmatpush1.bf16.msra.mxu1 %v4078_v9  ;;  %v4092_v8 = vcombine.low %v193_v58, %v197_v60  ;;  %v3965_v9 = vcombine.high %v200_v2, %v204_v4  ;;  %v4104_v60 = vcombine.low %v241_v47, %v245_v48  ;;  %v257_v2 = vld [vmem:[%s6109_s1 + $0x748] sm:$0xff] }
  0x3f   :  { %2934 = vmatprep.subr.bf16.mxu0 %v3951_v10  ;;  %3190 = vmatprep.subr.bf16.mxu1 %v4079_v11  ;;  %v4093_v10 = vcombine.high %v201_v5, %v205_v6  ;;  %v208_v11 = vld [vmem:[%s6109_s1 + $0x5c0] sm:$0xff]  ;;  %v261_v4 = vld [vmem:[%s6109_s1 + $0x768] sm:$0xff]  ;;  %v4106_v6 = vcombine.low %v249_v56, %v253_v57 }
  0x40   :  { %v3968_v23 = vcombine.low %v208_v11, %v212_v12 }
  0x42   :  { %2936 = vmatpush1.bf16.msra.mxu0 %v3952_v17  ;;  %3192 = vmatpush1.bf16.msra.mxu1 %v4080_v18  ;;  %v3967_v17 = vcombine.high %v208_v11, %v212_v12  ;;  %v4095_v18 = vcombine.high %v209_v13, %v213_v14  ;;  %v265_v11 = vld [vmem:[%s6109_s1 + $0x788] sm:$0xff]  ;;  %v4108_v14 = vcombine.low %v257_v2, %v261_v4 }
  0x43   :  { %2938 = vmatprep.subr.bf16.mxu0 %v3953_v19  ;;  %3194 = vmatprep.subr.bf16.mxu1 %v4081_v20  ;;  %v216_v19 = vld [vmem:[%s6109_s1 + $0x600] sm:$0xff]  ;;  %v269_v12 = vld [vmem:[%s6109_s1 + $0x7a8] sm:$0xff] }
  0x44   :  { %v220_v20 = vld [vmem:[%s6109_s1 + $0x620] sm:$0xff] }
  0x45   :  { %1669 = vmatmul.mubr.f32.vlgmr.msra.gmra.mrb[0].mxu0 %v4559_v63  ;;  %1953 = vmatmul.mubr.f32.vlgmr.msra.gmra.mrb[0].mxu1 %v4559_v63  ;;  %v3970_v32 = vcombine.low %v216_v19, %v220_v20 }
  0x46   :  { %2940 = vmatpush1.bf16.msra.mxu0 %v3954_v25  ;;  %3196 = vmatpush1.bf16.msra.mxu1 %v4082_v26  ;;  %v3969_v25 = vcombine.high %v216_v19, %v220_v20  ;;  %v4097_v26 = vcombine.high %v217_v59, %v221_v21  ;;  %v273_v19 = vld [vmem:[%s6109_s1 + $0x7c8] sm:$0xff]  ;;  %v4110_v21 = vcombine.low %v265_v11, %v269_v12 }
  0x47   :  { %2942 = vmatprep.subr.bf16.mxu0 %v3955_v27  ;;  %3198 = vmatprep.subr.bf16.mxu1 %v4083_v28  ;;  %v224_v27 = vld [vmem:[%s6109_s1 + $0x640] sm:$0xff]  ;;  %v277_v20 = vld [vmem:[%s6109_s1 + $0x7e8] sm:$0xff] }
  0x48   :  { %1739 = vmatprep.mubr.f32.mxu0 %v4706_v31  ;;  %2023 = vmatprep.mubr.f32.mxu1 %v4706_v31  ;;  %v228_v28 = vld [vmem:[%s6109_s1 + $0x660] sm:$0xff] }
  0x49   :  { %v3972_v40 = vcombine.low %v224_v27, %v228_v28 }
  0x4a   :  { %2944 = vmatpush1.bf16.msra.mxu0 %v3956_v34  ;;  %3200 = vmatpush1.bf16.msra.mxu1 %v4084_v35  ;;  %v3971_v34 = vcombine.high %v224_v27, %v228_v28  ;;  %v4099_v35 = vcombine.high %v225_v29, %v229_v30  ;;  %v281_v27 = vld [vmem:[%s6109_s1 + $0x808] sm:$0xff] }
  0x4b   :  { %2946 = vmatprep.subr.bf16.mxu0 %v3957_v36  ;;  %3202 = vmatprep.subr.bf16.mxu1 %v4085_v37  ;;  %v232_v36 = vld [vmem:[%s6109_s1 + $0x680] sm:$0xff]  ;;  %v285_v28 = vld [vmem:[%s6109_s1 + $0x828] sm:$0xff] }
  0x4c   :  { %v236_v37 = vld [vmem:[%s6109_s1 + $0x6a0] sm:$0xff]  ;;  %v4889_v29 = vld [vmem:[%s6110_s0 + $0x8] sm:$0xff] }
  0x4d   :  { %v3974_v49 = vcombine.low %v232_v36, %v236_v37 }
  0x4e   :  { %2948 = vmatpush1.bf16.msra.mxu0 %v3958_v42  ;;  %3204 = vmatpush1.bf16.msra.mxu1 %v4086_v43  ;;  %v3973_v42 = vcombine.high %v232_v36, %v236_v37  ;;  %v4101_v43 = vcombine.high %v233_v38, %v237_v39  ;;  %v292_v36 = vld [vmem:[%s6109_s1 + $0x860] sm:$0xff]  ;;  %v4899_v37 = vrot.slane %v4889_v29, %v4538_v53  ;;  %v289_v38 = vld [vmem:[%s6109_s1 + $0x848] sm:$0xff] }
  0x4f   :  { %2950 = vmatprep.subr.bf16.mxu0 %v3959_v45  ;;  %3206 = vmatprep.subr.bf16.mxu1 %v4087_v46  ;;  %v240_v45 = vld [vmem:[%s6109_s1 + $0x6c0] sm:$0xff]  ;;  %v293_v39 = vld [vmem:[%s6109_s1 + $0x868] sm:$0xff] }
  0x50   :  { %v244_v46 = vld [vmem:[%s6109_s1 + $0x6e0] sm:$0xff] }
  0x51   :  { %v3976_v58 = vcombine.low %v240_v45, %v244_v46 }
  0x52   :  { %2952 = vmatpush1.bf16.msra.mxu0 %v3960_v51  ;;  %3208 = vmatpush1.bf16.msra.mxu1 %v4088_v52  ;;  %v3975_v51 = vcombine.high %v240_v45, %v244_v46  ;;  %v4103_v52 = vcombine.high %v241_v47, %v245_v48  ;;  %v296_v45 = vld [vmem:[%s6109_s1 + $0x880] sm:$0xff]  ;;  %v4915_v47 = vcombine.high %v4899_v37, %v4899_v37  ;;  %v297_v48 = vld [vmem:[%s6109_s1 + $0x888] sm:$0xff] }
  0x53   :  { %2954 = vmatprep.subr.bf16.mxu0 %v3961_v54  ;;  %3210 = vmatprep.subr.bf16.mxu1 %v4089_v55  ;;  %v248_v54 = vld [vmem:[%s6109_s1 + $0x700] sm:$0xff] }
  0x54   :  { %v252_v55 = vld [vmem:[%s6109_s1 + $0x720] sm:$0xff] }
  0x55   :  { %v3978_v5 = vcombine.low %v248_v54, %v252_v55  ;;  %v300_v46 = vld [vmem:[%s6109_s1 + $0x8a0] sm:$0xff] }
  0x56   :  { %2956 = vmatpush1.bf16.msra.mxu0 %v3962_v61  ;;  %3212 = vmatpush1.bf16.msra.mxu1 %v4090_v62  ;;  %v3977_v61 = vcombine.high %v248_v54, %v252_v55  ;;  %v4105_v62 = vcombine.high %v249_v56, %v253_v57  ;;  %v304_v55 = vld [vmem:[%s6109_s1 + $0x8c0] sm:$0xff]  ;;  %v305_v57 = vld [vmem:[%s6109_s1 + $0x8c8] sm:$0xff] }
  0x57   :  { %2958 = vmatprep.subr.bf16.mxu0 %v3963_v0  ;;  %3214 = vmatprep.subr.bf16.mxu1 %v4091_v1  ;;  %v256_v0 = vld [vmem:[%s6109_s1 + $0x740] sm:$0xff] }
  0x58   :  { %v260_v1 = vld [vmem:[%s6109_s1 + $0x760] sm:$0xff] }
  0x59   :  { %v3980_v13 = vcombine.low %v256_v0, %v260_v1  ;;  %v308_v56 = vld [vmem:[%s6109_s1 + $0x8e0] sm:$0xff] }
  0x5a   :  { %2960 = vmatpush1.bf16.msra.mxu0 %v3964_v7  ;;  %3216 = vmatpush1.bf16.msra.mxu1 %v4092_v8  ;;  %v3979_v7 = vcombine.high %v256_v0, %v260_v1  ;;  %v4107_v8 = vcombine.high %v257_v2, %v261_v4  ;;  %v312_v1 = vld [vmem:[%s6109_s1 + $0x900] sm:$0xff]  ;;  %v313_v4 = vld [vmem:[%s6109_s1 + $0x908] sm:$0xff] }
  0x5b   :  { %2962 = vmatprep.subr.bf16.mxu0 %v3965_v9  ;;  %3218 = vmatprep.subr.bf16.mxu1 %v4093_v10  ;;  %v264_v9 = vld [vmem:[%s6109_s1 + $0x780] sm:$0xff] }
  0x5c   :  { %v268_v10 = vld [vmem:[%s6109_s1 + $0x7a0] sm:$0xff] }
  0x5d   :  { %v3982_v59 = vcombine.low %v264_v9, %v268_v10  ;;  %v316_v2 = vld [vmem:[%s6109_s1 + $0x920] sm:$0xff] }
  0x5e   :  { %2964 = vmatpush1.bf16.msra.mxu0 %v3966_v15  ;;  %3220 = vmatpush1.bf16.msra.mxu1 %v4094_v16  ;;  %v3981_v15 = vcombine.high %v264_v9, %v268_v10  ;;  %v4109_v16 = vcombine.high %v265_v11, %v269_v12  ;;  %v320_v10 = vld [vmem:[%s6109_s1 + $0x940] sm:$0xff]  ;;  %v321_v12 = vld [vmem:[%s6109_s1 + $0x948] sm:$0xff] }
  0x5f   :  { %2966 = vmatprep.subr.bf16.mxu0 %v3967_v17  ;;  %3222 = vmatprep.subr.bf16.mxu1 %v4095_v18  ;;  %v272_v17 = vld [vmem:[%s6109_s1 + $0x7c0] sm:$0xff] }
  0x60   :  { %v276_v18 = vld [vmem:[%s6109_s1 + $0x7e0] sm:$0xff] }
  0x61   :  { %v3984_v30 = vcombine.low %v272_v17, %v276_v18  ;;  %v324_v11 = vld [vmem:[%s6109_s1 + $0x960] sm:$0xff] }
  0x62   :  { %2968 = vmatpush1.bf16.msra.mxu0 %v3968_v23  ;;  %3224 = vmatpush1.bf16.msra.mxu1 %v4096_v24  ;;  %v3983_v23 = vcombine.high %v272_v17, %v276_v18  ;;  %v4111_v24 = vcombine.high %v273_v19, %v277_v20  ;;  %v328_v18 = vld [vmem:[%s6109_s1 + $0x980] sm:$0xff] }
  0x63   :  { %2970 = vmatprep.subr.bf16.mxu0 %v3969_v25  ;;  %3226 = vmatprep.subr.bf16.mxu1 %v4097_v26  ;;  %v280_v25 = vld [vmem:[%s6109_s1 + $0x800] sm:$0xff] }
  0x64   :  { %v284_v26 = vld [vmem:[%s6109_s1 + $0x820] sm:$0xff] }
  0x66   :  { %2972 = vmatpush1.bf16.msra.mxu0 %v3970_v32  ;;  %3228 = vmatpush1.bf16.msra.mxu1 %v4098_v33  ;;  %v4112_v32 = vcombine.low %v273_v19, %v277_v20  ;;  %v3985_v33 = vcombine.high %v280_v25, %v284_v26  ;;  %v332_v19 = vld [vmem:[%s6109_s1 + $0x9a0] sm:$0xff]  ;;  %v329_v20 = vld [vmem:[%s6109_s1 + $0x988] sm:$0xff] }
  0x67   :  { %2974 = vmatprep.subr.bf16.mxu0 %v3971_v34  ;;  %3230 = vmatprep.subr.bf16.mxu1 %v4099_v35  ;;  %v4113_v34 = vcombine.high %v281_v27, %v285_v28  ;;  %v288_v35 = vld [vmem:[%s6109_s1 + $0x840] sm:$0xff] }
  0x6a   :  { %2976 = vmatpush1.bf16.msra.mxu0 %v3972_v40  ;;  %3232 = vmatpush1.bf16.msra.mxu1 %v4100_v41  ;;  %v3986_v40 = vcombine.low %v280_v25, %v284_v26  ;;  %v4114_v41 = vcombine.low %v281_v27, %v285_v28  ;;  %v336_v26 = vld [vmem:[%s6109_s1 + $0x9c0] sm:$0xff]  ;;  %v337_v28 = vld [vmem:[%s6109_s1 + $0x9c8] sm:$0xff] }
  0x6b   :  { %2978 = vmatprep.subr.bf16.mxu0 %v3973_v42  ;;  %3234 = vmatprep.subr.bf16.mxu1 %v4101_v43  ;;  %v3987_v42 = vcombine.high %v288_v35, %v292_v36  ;;  %v4115_v43 = vcombine.high %v289_v38, %v293_v39  ;;  %v340_v27 = vld [vmem:[%s6109_s1 + $0x9e0] sm:$0xff] }
  0x6e   :  { %2980 = vmatpush1.bf16.msra.mxu0 %v3974_v49  ;;  %3236 = vmatpush1.bf16.msra.mxu1 %v4102_v50  ;;  %v301_v49 = vld [vmem:[%s6109_s1 + $0x8a8] sm:$0xff]  ;;  %v3988_v50 = vcombine.low %v288_v35, %v292_v36  ;;  %v344_v36 = vld [vmem:[%s6109_s1 + $0xa00] sm:$0xff] }
  0x6f   :  { %2982 = vmatprep.subr.bf16.mxu0 %v3975_v51  ;;  %3238 = vmatprep.subr.bf16.mxu1 %v4103_v52  ;;  %v4116_v51 = vcombine.low %v289_v38, %v293_v39  ;;  %v3989_v52 = vcombine.high %v296_v45, %v300_v46  ;;  %v4117_v54 = vcombine.high %v297_v48, %v301_v49  ;;  %v348_v38 = vld [vmem:[%s6109_s1 + $0xa20] sm:$0xff]  ;;  %v345_v39 = vld [vmem:[%s6109_s1 + $0xa08] sm:$0xff] }
  0x72   :  { %2984 = vmatpush1.bf16.msra.mxu0 %v3976_v58  ;;  %3240 = vmatpush1.bf16.msra.mxu1 %v4104_v60  ;;  %v309_v58 = vld [vmem:[%s6109_s1 + $0x8e8] sm:$0xff]  ;;  %v3990_v60 = vcombine.low %v296_v45, %v300_v46  ;;  %v352_v46 = vld [vmem:[%s6109_s1 + $0xa40] sm:$0xff] }
  0x73   :  { %2986 = vmatprep.subr.bf16.mxu0 %v3977_v61  ;;  %3242 = vmatprep.subr.bf16.mxu1 %v4105_v62  ;;  %v4118_v61 = vcombine.low %v297_v48, %v301_v49  ;;  %v3991_v62 = vcombine.high %v304_v55, %v308_v56  ;;  %v4119_v0 = vcombine.high %v305_v57, %v309_v58  ;;  %v356_v48 = vld [vmem:[%s6109_s1 + $0xa60] sm:$0xff]  ;;  %v353_v49 = vld [vmem:[%s6109_s1 + $0xa48] sm:$0xff] }
  0x76   :  { %2988 = vmatpush1.bf16.msra.mxu0 %v3978_v5  ;;  %3244 = vmatpush1.bf16.msra.mxu1 %v4106_v6  ;;  %v317_v5 = vld [vmem:[%s6109_s1 + $0x928] sm:$0xff]  ;;  %v3992_v6 = vcombine.low %v304_v55, %v308_v56  ;;  %v360_v56 = vld [vmem:[%s6109_s1 + $0xa80] sm:$0xff] }
  0x77   :  { %2990 = vmatprep.subr.bf16.mxu0 %v3979_v7  ;;  %3246 = vmatprep.subr.bf16.mxu1 %v4107_v8  ;;  %v4120_v7 = vcombine.low %v305_v57, %v309_v58  ;;  %v3993_v8 = vcombine.high %v312_v1, %v316_v2  ;;  %v4121_v9 = vcombine.high %v313_v4, %v317_v5  ;;  %v364_v57 = vld [vmem:[%s6109_s1 + $0xaa0] sm:$0xff]  ;;  %v361_v58 = vld [vmem:[%s6109_s1 + $0xa88] sm:$0xff] }
  0x7a   :  { %2992 = vmatpush1.bf16.msra.mxu0 %v3980_v13  ;;  %3248 = vmatpush1.bf16.msra.mxu1 %v4108_v14  ;;  %v325_v13 = vld [vmem:[%s6109_s1 + $0x968] sm:$0xff]  ;;  %v3994_v14 = vcombine.low %v312_v1, %v316_v2  ;;  %v368_v2 = vld [vmem:[%s6109_s1 + $0xac0] sm:$0xff] }
  0x7b   :  { %2994 = vmatprep.subr.bf16.mxu0 %v3981_v15  ;;  %3250 = vmatprep.subr.bf16.mxu1 %v4109_v16  ;;  %v4122_v15 = vcombine.low %v313_v4, %v317_v5  ;;  %v3995_v16 = vcombine.high %v320_v10, %v324_v11  ;;  %v4123_v17 = vcombine.high %v321_v12, %v325_v13  ;;  %v372_v4 = vld [vmem:[%s6109_s1 + $0xae0] sm:$0xff]  ;;  %v369_v5 = vld [vmem:[%s6109_s1 + $0xac8] sm:$0xff] }
  0x7e   :  { %2996 = vmatpush1.bf16.msra.mxu0 %v3982_v59  ;;  %3252 = vmatpush1.bf16.msra.mxu1 %v4110_v21  ;;  %v333_v59 = vld [vmem:[%s6109_s1 + $0x9a8] sm:$0xff]  ;;  %v3996_v21 = vcombine.low %v320_v10, %v324_v11  ;;  %v376_v11 = vld [vmem:[%s6109_s1 + $0xb00] sm:$0xff] }
  0x7f   :  { %2998 = vmatprep.subr.bf16.mxu0 %v3983_v23  ;;  %3254 = vmatprep.subr.bf16.mxu1 %v4111_v24  ;;  %v4124_v23 = vcombine.low %v321_v12, %v325_v13  ;;  %v3997_v24 = vcombine.high %v328_v18, %v332_v19  ;;  %v4125_v25 = vcombine.high %v329_v20, %v333_v59  ;;  %v380_v12 = vld [vmem:[%s6109_s1 + $0xb20] sm:$0xff]  ;;  %v377_v13 = vld [vmem:[%s6109_s1 + $0xb08] sm:$0xff] }
  0x82   :  { %3000 = vmatpush1.bf16.msra.mxu0 %v3984_v30  ;;  %3256 = vmatpush1.bf16.msra.mxu1 %v4112_v32  ;;  %v341_v30 = vld [vmem:[%s6109_s1 + $0x9e8] sm:$0xff]  ;;  %v3998_v32 = vcombine.low %v328_v18, %v332_v19  ;;  %v384_v19 = vld [vmem:[%s6109_s1 + $0xb40] sm:$0xff] }
  0x83   :  { %3002 = vmatprep.subr.bf16.mxu0 %v3985_v33  ;;  %3258 = vmatprep.subr.bf16.mxu1 %v4113_v34  ;;  %v4126_v33 = vcombine.low %v329_v20, %v333_v59  ;;  %v3999_v34 = vcombine.high %v336_v26, %v340_v27  ;;  %v4127_v35 = vcombine.high %v337_v28, %v341_v30  ;;  %v388_v20 = vld [vmem:[%s6109_s1 + $0xb60] sm:$0xff]  ;;  %v385_v59 = vld [vmem:[%s6109_s1 + $0xb48] sm:$0xff] }
  0x85   :  { %1740 = vmatmul.mubr.f32.vlgmr.msra.gmra.mrb[0].mxu0 %v4690_v22  ;;  %2024 = vmatmul.mubr.f32.vlgmr.msra.gmra.mrb[0].mxu1 %v4690_v22 }
  0x86   :  { %3004 = vmatpush1.bf16.msra.mxu0 %v3986_v40  ;;  %3260 = vmatpush1.bf16.msra.mxu1 %v4114_v41  ;;  %v349_v40 = vld [vmem:[%s6109_s1 + $0xa28] sm:$0xff]  ;;  %v4000_v41 = vcombine.low %v336_v26, %v340_v27  ;;  %v392_v27 = vld [vmem:[%s6109_s1 + $0xb80] sm:$0xff] }
  0x87   :  { %3006 = vmatprep.subr.bf16.mxu0 %v3987_v42  ;;  %3262 = vmatprep.subr.bf16.mxu1 %v4115_v43  ;;  %v4128_v42 = vcombine.low %v337_v28, %v341_v30  ;;  %v4001_v43 = vcombine.high %v344_v36, %v348_v38  ;;  %v4129_v45 = vcombine.high %v345_v39, %v349_v40  ;;  %v396_v28 = vld [vmem:[%s6109_s1 + $0xba0] sm:$0xff]  ;;  %v393_v30 = vld [vmem:[%s6109_s1 + $0xb88] sm:$0xff] }
  0x88   :  { %1810 = vmatprep.mubr.f32.mxu0 %v4915_v47  ;;  %2094 = vmatprep.mubr.f32.mxu1 %v4915_v47 }
  0x8a   :  { %3008 = vmatpush1.bf16.msra.mxu0 %v3988_v50  ;;  %3264 = vmatpush1.bf16.msra.mxu1 %v4116_v51  ;;  %v357_v50 = vld [vmem:[%s6109_s1 + $0xa68] sm:$0xff]  ;;  %v4002_v51 = vcombine.low %v344_v36, %v348_v38  ;;  %v400_v38 = vld [vmem:[%s6109_s1 + $0xbc0] sm:$0xff] }
  0x8b   :  { %3010 = vmatprep.subr.bf16.mxu0 %v3989_v52  ;;  %3266 = vmatprep.subr.bf16.mxu1 %v4117_v54  ;;  %v4130_v52 = vcombine.low %v345_v39, %v349_v40  ;;  %v4003_v54 = vcombine.high %v352_v46, %v356_v48  ;;  %v4131_v55 = vcombine.high %v353_v49, %v357_v50  ;;  %v404_v39 = vld [vmem:[%s6109_s1 + $0xbe0] sm:$0xff]  ;;  %v401_v40 = vld [vmem:[%s6109_s1 + $0xbc8] sm:$0xff] }
  0x8e   :  { %3012 = vmatpush1.bf16.msra.mxu0 %v3990_v60  ;;  %3268 = vmatpush1.bf16.msra.mxu1 %v4118_v61  ;;  %v365_v60 = vld [vmem:[%s6109_s1 + $0xaa8] sm:$0xff]  ;;  %v4004_v61 = vcombine.low %v352_v46, %v356_v48  ;;  %v408_v48 = vld [vmem:[%s6109_s1 + $0xc00] sm:$0xff] }
  0x8f   :  { %3014 = vmatprep.subr.bf16.mxu0 %v3991_v62  ;;  %3270 = vmatprep.subr.bf16.mxu1 %v4119_v0  ;;  %v4132_v62 = vcombine.low %v353_v49, %v357_v50  ;;  %v4005_v0 = vcombine.high %v360_v56, %v364_v57  ;;  %v4133_v1 = vcombine.high %v361_v58, %v365_v60  ;;  %v412_v49 = vld [vmem:[%s6109_s1 + $0xc20] sm:$0xff] }
  0x90   :  { %v1579_v50 = vcombine.high %v4889_v29, %v4889_v29  ;;  %v416_v29 = vld [vmem:[%s6109_s1 + $0xc40] sm:$0xff] }
  0x92   :  { %3016 = vmatpush1.bf16.msra.mxu0 %v3992_v6  ;;  %3272 = vmatpush1.bf16.msra.mxu1 %v4120_v7  ;;  %v373_v6 = vld [vmem:[%s6109_s1 + $0xae8] sm:$0xff]  ;;  %v4006_v7 = vcombine.low %v360_v56, %v364_v57  ;;  %v4017_v56 = vcombine.high %v408_v48, %v412_v49 }
  0x93   :  { %3018 = vmatprep.subr.bf16.mxu0 %v3993_v8  ;;  %3274 = vmatprep.subr.bf16.mxu1 %v4121_v9  ;;  %v4134_v8 = vcombine.low %v361_v58, %v365_v60  ;;  %v4007_v9 = vcombine.high %v368_v2, %v372_v4  ;;  %v4135_v10 = vcombine.high %v369_v5, %v373_v6  ;;  %v420_v58 = vld [vmem:[%s6109_s1 + $0xc60] sm:$0xff] }
  0x94   :  { %v5104_v60 = vrot.slane %v1579_v50, %v4538_v53 }
  0x96   :  { %3020 = vmatpush1.bf16.msra.mxu0 %v3994_v14  ;;  %3276 = vmatpush1.bf16.msra.mxu1 %v4122_v15  ;;  %v381_v14 = vld [vmem:[%s6109_s1 + $0xb28] sm:$0xff]  ;;  %v4008_v15 = vcombine.low %v368_v2, %v372_v4  ;;  %v4019_v2 = vcombine.high %v416_v29, %v420_v58 }
  0x97   :  { %3022 = vmatprep.subr.bf16.mxu0 %v3995_v16  ;;  %3278 = vmatprep.subr.bf16.mxu1 %v4123_v17  ;;  %v4136_v16 = vcombine.low %v369_v5, %v373_v6  ;;  %v4009_v17 = vcombine.high %v376_v11, %v380_v12  ;;  %v4137_v18 = vcombine.high %v377_v13, %v381_v14  ;;  %v424_v5 = vld [vmem:[%s6109_s1 + $0xc80] sm:$0xff] }
  0x98   :  { %v428_v6 = vld [vmem:[%s6109_s1 + $0xca0] sm:$0xff] }
  0x9a   :  { %3024 = vmatpush1.bf16.msra.mxu0 %v3996_v21  ;;  %3280 = vmatpush1.bf16.msra.mxu1 %v4124_v23  ;;  %v389_v21 = vld [vmem:[%s6109_s1 + $0xb68] sm:$0xff]  ;;  %v4010_v23 = vcombine.low %v376_v11, %v380_v12  ;;  %v4021_v12 = vcombine.high %v424_v5, %v428_v6 }
  0x9b   :  { %3026 = vmatprep.subr.bf16.mxu0 %v3997_v24  ;;  %3282 = vmatprep.subr.bf16.mxu1 %v4125_v25  ;;  %v4138_v24 = vcombine.low %v377_v13, %v381_v14  ;;  %v4011_v25 = vcombine.high %v384_v19, %v388_v20  ;;  %v4139_v26 = vcombine.high %v385_v59, %v389_v21  ;;  %v432_v14 = vld [vmem:[%s6109_s1 + $0xcc0] sm:$0xff] }
  0x9e   :  { %3028 = vmatpush1.bf16.msra.mxu0 %v3998_v32  ;;  %3284 = vmatpush1.bf16.msra.mxu1 %v4126_v33  ;;  %v397_v32 = vld [vmem:[%s6109_s1 + $0xba8] sm:$0xff]  ;;  %v4012_v33 = vcombine.low %v384_v19, %v388_v20 }
  0x9f   :  { %3030 = vmatprep.subr.bf16.mxu0 %v3999_v34  ;;  %3286 = vmatprep.subr.bf16.mxu1 %v4127_v35  ;;  %v4140_v34 = vcombine.low %v385_v59, %v389_v21  ;;  %v4013_v35 = vcombine.high %v392_v27, %v396_v28  ;;  %v4141_v36 = vcombine.high %v393_v30, %v397_v32  ;;  %v440_v21 = vld [vmem:[%s6109_s1 + $0xd00] sm:$0xff] }
  0xa2   :  { %3032 = vmatpush1.bf16.msra.mxu0 %v4000_v41  ;;  %3288 = vmatpush1.bf16.msra.mxu1 %v4128_v42  ;;  %v405_v41 = vld [vmem:[%s6109_s1 + $0xbe8] sm:$0xff]  ;;  %v4014_v42 = vcombine.low %v392_v27, %v396_v28 }
  0xa3   :  { %3034 = vmatprep.subr.bf16.mxu0 %v4001_v43  ;;  %3290 = vmatprep.subr.bf16.mxu1 %v4129_v45  ;;  %v4142_v43 = vcombine.low %v393_v30, %v397_v32  ;;  %v4015_v45 = vcombine.high %v400_v38, %v404_v39  ;;  %v4143_v46 = vcombine.high %v401_v40, %v405_v41  ;;  %v448_v32 = vld [vmem:[%s6109_s1 + $0xd40] sm:$0xff] }
  0xa6   :  { %3036 = vmatpush1.bf16.msra.mxu0 %v4002_v51  ;;  %3292 = vmatpush1.bf16.msra.mxu1 %v4130_v52  ;;  %v409_v51 = vld [vmem:[%s6109_s1 + $0xc08] sm:$0xff] }
  0xa7   :  { %3038 = vmatprep.subr.bf16.mxu0 %v4003_v54  ;;  %3294 = vmatprep.subr.bf16.mxu1 %v4131_v55  ;;  %v413_v52 = vld [vmem:[%s6109_s1 + $0xc28] sm:$0xff]  ;;  %v4016_v54 = vcombine.low %v400_v38, %v404_v39  ;;  %v4144_v55 = vcombine.low %v401_v40, %v405_v41  ;;  %v456_v41 = vld [vmem:[%s6109_s1 + $0xd80] sm:$0xff] }
  0xa8   :  { %v4145_v57 = vcombine.high %v409_v51, %v413_v52 }
  0xaa   :  { %3040 = vmatpush1.bf16.msra.mxu0 %v4004_v61  ;;  %3296 = vmatpush1.bf16.msra.mxu1 %v4132_v62  ;;  %v417_v61 = vld [vmem:[%s6109_s1 + $0xc48] sm:$0xff] }
  0xab   :  { %3042 = vmatprep.subr.bf16.mxu0 %v4005_v0  ;;  %3298 = vmatprep.subr.bf16.mxu1 %v4133_v1  ;;  %v421_v62 = vld [vmem:[%s6109_s1 + $0xc68] sm:$0xff]  ;;  %v4018_v0 = vcombine.low %v408_v48, %v412_v49  ;;  %v4146_v1 = vcombine.low %v409_v51, %v413_v52  ;;  %v464_v51 = vld [vmem:[%s6109_s1 + $0xdc0] sm:$0xff] }
  0xac   :  { %v4147_v4 = vcombine.high %v417_v61, %v421_v62  ;;  %v4148_v11 = vcombine.low %v417_v61, %v421_v62  ;;  %v468_v52 = vld [vmem:[%s6109_s1 + $0xde0] sm:$0xff] }
  0xad   :  { %v472_v61 = vld [vmem:[%s6109_s1 + $0xe00] sm:$0xff] }
  0xae   :  { %3044 = vmatpush1.bf16.msra.mxu0 %v4006_v7  ;;  %3300 = vmatpush1.bf16.msra.mxu1 %v4134_v8  ;;  %v5120_v7 = vcombine.high %v5104_v60, %v5104_v60  ;;  %v425_v8 = vld [vmem:[%s6109_s1 + $0xc88] sm:$0xff]  ;;  %v476_v62 = vld [vmem:[%s6109_s1 + $0xe20] sm:$0xff] }
  0xaf   :  { %3046 = vmatprep.subr.bf16.mxu0 %v4007_v9  ;;  %3302 = vmatprep.subr.bf16.mxu1 %v4135_v10  ;;  %v429_v9 = vld [vmem:[%s6109_s1 + $0xca8] sm:$0xff]  ;;  %v4020_v10 = vcombine.low %v416_v29, %v420_v58  ;;  %v4031_v29 = vcombine.high %v464_v51, %v468_v52 }
  0xb0   :  { %v4149_v13 = vcombine.high %v425_v8, %v429_v9  ;;  %v4150_v19 = vcombine.low %v425_v8, %v429_v9  ;;  %v480_v8 = vld [vmem:[%s6109_s1 + $0xe40] sm:$0xff] }
  0xb1   :  { %v484_v9 = vld [vmem:[%s6109_s1 + $0xe60] sm:$0xff] }
  0xb2   :  { %3048 = vmatpush1.bf16.msra.mxu0 %v4008_v15  ;;  %3304 = vmatpush1.bf16.msra.mxu1 %v4136_v16  ;;  %v436_v15 = vld [vmem:[%s6109_s1 + $0xce0] sm:$0xff]  ;;  %v433_v16 = vld [vmem:[%s6109_s1 + $0xcc8] sm:$0xff] }
  0xb3   :  { %3050 = vmatprep.subr.bf16.mxu0 %v4009_v17  ;;  %3306 = vmatprep.subr.bf16.mxu1 %v4137_v18  ;;  %v437_v17 = vld [vmem:[%s6109_s1 + $0xce8] sm:$0xff]  ;;  %v4022_v18 = vcombine.low %v424_v5, %v428_v6  ;;  %v4023_v20 = vcombine.high %v432_v14, %v436_v15  ;;  %v4033_v5 = vcombine.high %v472_v61, %v476_v62 }
  0xb4   :  { %v4151_v59 = vcombine.high %v433_v16, %v437_v17  ;;  %v4152_v27 = vcombine.low %v433_v16, %v437_v17  ;;  %v488_v16 = vld [vmem:[%s6109_s1 + $0xe80] sm:$0xff] }
  0xb5   :  { %v492_v17 = vld [vmem:[%s6109_s1 + $0xea0] sm:$0xff] }
  0xb6   :  { %3052 = vmatpush1.bf16.msra.mxu0 %v4010_v23  ;;  %3308 = vmatpush1.bf16.msra.mxu1 %v4138_v24  ;;  %v444_v23 = vld [vmem:[%s6109_s1 + $0xd20] sm:$0xff]  ;;  %v441_v24 = vld [vmem:[%s6109_s1 + $0xd08] sm:$0xff] }
  0xb7   :  { %3054 = vmatprep.subr.bf16.mxu0 %v4011_v25  ;;  %3310 = vmatprep.subr.bf16.mxu1 %v4139_v26  ;;  %v445_v25 = vld [vmem:[%s6109_s1 + $0xd28] sm:$0xff]  ;;  %v4024_v26 = vcombine.low %v432_v14, %v436_v15  ;;  %v4025_v28 = vcombine.high %v440_v21, %v444_v23  ;;  %v4035_v14 = vcombine.high %v480_v8, %v484_v9 }
  0xb8   :  { %v4153_v30 = vcombine.high %v441_v24, %v445_v25  ;;  %v4154_v38 = vcombine.low %v441_v24, %v445_v25  ;;  %v496_v24 = vld [vmem:[%s6109_s1 + $0xec0] sm:$0xff] }
  0xb9   :  { %v500_v25 = vld [vmem:[%s6109_s1 + $0xee0] sm:$0xff] }
  0xba   :  { %3056 = vmatpush1.bf16.msra.mxu0 %v4012_v33  ;;  %3312 = vmatpush1.bf16.msra.mxu1 %v4140_v34  ;;  %v452_v33 = vld [vmem:[%s6109_s1 + $0xd60] sm:$0xff]  ;;  %v449_v34 = vld [vmem:[%s6109_s1 + $0xd48] sm:$0xff] }
  0xbb   :  { %3058 = vmatprep.subr.bf16.mxu0 %v4013_v35  ;;  %3314 = vmatprep.subr.bf16.mxu1 %v4141_v36  ;;  %v453_v35 = vld [vmem:[%s6109_s1 + $0xd68] sm:$0xff]  ;;  %v4026_v36 = vcombine.low %v440_v21, %v444_v23  ;;  %v4027_v39 = vcombine.high %v448_v32, %v452_v33  ;;  %v4037_v21 = vcombine.high %v488_v16, %v492_v17 }
  0xbc   :  { %v4155_v40 = vcombine.high %v449_v34, %v453_v35  ;;  %v4156_v48 = vcombine.low %v449_v34, %v453_v35  ;;  %v504_v34 = vld [vmem:[%s6109_s1 + $0xf00] sm:$0xff] }
  0xbd   :  { %v508_v35 = vld [vmem:[%s6109_s1 + $0xf20] sm:$0xff] }
  0xbe   :  { %3060 = vmatpush1.bf16.msra.mxu0 %v4014_v42  ;;  %3316 = vmatpush1.bf16.msra.mxu1 %v4142_v43  ;;  %v460_v42 = vld [vmem:[%s6109_s1 + $0xda0] sm:$0xff]  ;;  %v457_v43 = vld [vmem:[%s6109_s1 + $0xd88] sm:$0xff] }
  0xbf   :  { %3062 = vmatprep.subr.bf16.mxu0 %v4015_v45  ;;  %3318 = vmatprep.subr.bf16.mxu1 %v4143_v46  ;;  %v461_v45 = vld [vmem:[%s6109_s1 + $0xda8] sm:$0xff]  ;;  %v4028_v46 = vcombine.low %v448_v32, %v452_v33  ;;  %v4029_v49 = vcombine.high %v456_v41, %v460_v42  ;;  %v4039_v32 = vcombine.high %v496_v24, %v500_v25 }
  0xc0   :  { %v4157_v50 = vcombine.high %v457_v43, %v461_v45 }
  0xc2   :  { %3064 = vmatpush1.bf16.msra.mxu0 %v4016_v54  ;;  %3320 = vmatpush1.bf16.msra.mxu1 %v4144_v55  ;;  %v465_v54 = vld [vmem:[%s6109_s1 + $0xdc8] sm:$0xff] }
  0xc3   :  { %3066 = vmatprep.subr.bf16.mxu0 %v4017_v56  ;;  %3322 = vmatprep.subr.bf16.mxu1 %v4145_v57  ;;  %v469_v55 = vld [vmem:[%s6109_s1 + $0xde8] sm:$0xff]  ;;  %v4030_v56 = vcombine.low %v456_v41, %v460_v42  ;;  %v4158_v57 = vcombine.low %v457_v43, %v461_v45  ;;  %v4041_v41 = vcombine.high %v504_v34, %v508_v35  ;;  %v512_v43 = vld [vmem:[%s6109_s1 + $0xf40] sm:$0xff] }
  0xc4   :  { %v4159_v58 = vcombine.high %v465_v54, %v469_v55  ;;  %v516_v45 = vld [vmem:[%s6109_s1 + $0xf60] sm:$0xff] }
  0xc5   :  { %1811 = vmatmul.mubr.f32.vlgmr.msra.gmra.mrb[0].mxu0 %v4899_v37  ;;  %2095 = vmatmul.mubr.f32.vlgmr.msra.gmra.mrb[0].mxu1 %v4899_v37 }
  0xc6   :  { %3068 = vmatpush1.bf16.msra.mxu0 %v4018_v0  ;;  %3324 = vmatpush1.bf16.msra.mxu1 %v4146_v1  ;;  %v473_v0 = vld [vmem:[%s6109_s1 + $0xe08] sm:$0xff] }
  0xc7   :  { %3070 = vmatprep.subr.bf16.mxu0 %v4019_v2  ;;  %3326 = vmatprep.subr.bf16.mxu1 %v4147_v4  ;;  %v477_v1 = vld [vmem:[%s6109_s1 + $0xe28] sm:$0xff]  ;;  %v4032_v2 = vcombine.low %v464_v51, %v468_v52  ;;  %v4160_v4 = vcombine.low %v465_v54, %v469_v55  ;;  %v4043_v51 = vcombine.high %v512_v43, %v516_v45  ;;  %v520_v54 = vld [vmem:[%s6109_s1 + $0xf80] sm:$0xff] }
  0xc8   :  { %1881 = vmatprep.mubr.f32.mxu0 %v5120_v7  ;;  %2165 = vmatprep.mubr.f32.mxu1 %v5120_v7  ;;  %v4161_v6 = vcombine.high %v473_v0, %v477_v1  ;;  %v524_v55 = vld [vmem:[%s6109_s1 + $0xfa0] sm:$0xff] }
  0xca   :  { %3072 = vmatpush1.bf16.msra.mxu0 %v4020_v10  ;;  %3328 = vmatpush1.bf16.msra.mxu1 %v4148_v11  ;;  %v481_v10 = vld [vmem:[%s6109_s1 + $0xe48] sm:$0xff] }
  0xcb   :  { %3074 = vmatprep.subr.bf16.mxu0 %v4021_v12  ;;  %3330 = vmatprep.subr.bf16.mxu1 %v4149_v13  ;;  %v485_v11 = vld [vmem:[%s6109_s1 + $0xe68] sm:$0xff]  ;;  %v4034_v12 = vcombine.low %v472_v61, %v476_v62  ;;  %v4162_v13 = vcombine.low %v473_v0, %v477_v1  ;;  %v4045_v61 = vcombine.high %v520_v54, %v524_v55  ;;  %v528_v0 = vld [vmem:[%s6109_s1 + $0xfc0] sm:$0xff] }
  0xcc   :  { %v4163_v15 = vcombine.high %v481_v10, %v485_v11  ;;  %v532_v1 = vld [vmem:[%s6109_s1 + $0xfe0] sm:$0xff] }
  0xce   :  { %3076 = vmatpush1.bf16.msra.mxu0 %v4022_v18  ;;  %3332 = vmatpush1.bf16.msra.mxu1 %v4150_v19  ;;  %v489_v18 = vld [vmem:[%s6109_s1 + $0xe88] sm:$0xff] }
  0xcf   :  { %3078 = vmatprep.subr.bf16.mxu0 %v4023_v20  ;;  %3334 = vmatprep.subr.bf16.mxu1 %v4151_v59  ;;  %v493_v19 = vld [vmem:[%s6109_s1 + $0xea8] sm:$0xff]  ;;  %v4036_v20 = vcombine.low %v480_v8, %v484_v9  ;;  %v4164_v59 = vcombine.low %v481_v10, %v485_v11  ;;  %v4047_v8 = vcombine.high %v528_v0, %v532_v1  ;;  %v26_v10 = vld [vmem:[%s6109_s1 + $0x10] sm:$0xff] }
  0xd0   :  { %v4165_v23 = vcombine.high %v489_v18, %v493_v19  ;;  %v30_v11 = vld [vmem:[%s6109_s1 + $0x30] sm:$0xff] }
  0xd2   :  { %3080 = vmatpush1.bf16.msra.mxu0 %v4024_v26  ;;  %3336 = vmatpush1.bf16.msra.mxu1 %v4152_v27  ;;  %v497_v26 = vld [vmem:[%s6109_s1 + $0xec8] sm:$0xff] }
  0xd3   :  { %3082 = vmatprep.subr.bf16.mxu0 %v4025_v28  ;;  %3338 = vmatprep.subr.bf16.mxu1 %v4153_v30  ;;  %v501_v27 = vld [vmem:[%s6109_s1 + $0xee8] sm:$0xff]  ;;  %v4038_v28 = vcombine.low %v488_v16, %v492_v17  ;;  %v4166_v30 = vcombine.low %v489_v18, %v493_v19  ;;  %v4177_v16 = vcombine.high %v26_v10, %v30_v11  ;;  %v34_v18 = vld [vmem:[%s6109_s1 + $0x50] sm:$0xff] }
  0xd4   :  { %v4167_v33 = vcombine.high %v497_v26, %v501_v27  ;;  %v38_v19 = vld [vmem:[%s6109_s1 + $0x70] sm:$0xff] }
  0xd6   :  { %3084 = vmatpush1.bf16.msra.mxu0 %v4026_v36  ;;  %3340 = vmatpush1.bf16.msra.mxu1 %v4154_v38  ;;  %v505_v36 = vld [vmem:[%s6109_s1 + $0xf08] sm:$0xff] }
  0xd7   :  { %3086 = vmatprep.subr.bf16.mxu0 %v4027_v39  ;;  %3342 = vmatprep.subr.bf16.mxu1 %v4155_v40  ;;  %v509_v38 = vld [vmem:[%s6109_s1 + $0xf28] sm:$0xff]  ;;  %v4040_v39 = vcombine.low %v496_v24, %v500_v25  ;;  %v4168_v40 = vcombine.low %v497_v26, %v501_v27  ;;  %v4179_v24 = vcombine.high %v34_v18, %v38_v19  ;;  %v42_v26 = vld [vmem:[%s6109_s1 + $0x90] sm:$0xff] }
  0xd8   :  { %v4169_v42 = vcombine.high %v505_v36, %v509_v38  ;;  %v46_v27 = vld [vmem:[%s6109_s1 + $0xb0] sm:$0xff] }
  0xda   :  { %3088 = vmatpush1.bf16.msra.mxu0 %v4028_v46  ;;  %3344 = vmatpush1.bf16.msra.mxu1 %v4156_v48  ;;  %v513_v46 = vld [vmem:[%s6109_s1 + $0xf48] sm:$0xff] }
  0xdb   :  { %3090 = vmatprep.subr.bf16.mxu0 %v4029_v49  ;;  %3346 = vmatprep.subr.bf16.mxu1 %v4157_v50  ;;  %v517_v48 = vld [vmem:[%s6109_s1 + $0xf68] sm:$0xff]  ;;  %v4042_v49 = vcombine.low %v504_v34, %v508_v35  ;;  %v4170_v50 = vcombine.low %v505_v36, %v509_v38  ;;  %v4181_v34 = vcombine.high %v42_v26, %v46_v27  ;;  %v50_v36 = vld [vmem:[%s6109_s1 + $0xd0] sm:$0xff] }
  0xdc   :  { %v4171_v52 = vcombine.high %v513_v46, %v517_v48  ;;  %v54_v38 = vld [vmem:[%s6109_s1 + $0xf0] sm:$0xff] }
  0xde   :  { %3092 = vmatpush1.bf16.msra.mxu0 %v4030_v56  ;;  %3348 = vmatpush1.bf16.msra.mxu1 %v4158_v57  ;;  %v521_v56 = vld [vmem:[%s6109_s1 + $0xf88] sm:$0xff] }
  0xdf   :  { %3094 = vmatprep.subr.bf16.mxu0 %v4031_v29  ;;  %3350 = vmatprep.subr.bf16.mxu1 %v4159_v58  ;;  %v525_v57 = vld [vmem:[%s6109_s1 + $0xfa8] sm:$0xff]  ;;  %v4044_v29 = vcombine.low %v512_v43, %v516_v45  ;;  %v4172_v58 = vcombine.low %v513_v46, %v517_v48  ;;  %v4183_v43 = vcombine.high %v50_v36, %v54_v38  ;;  %v58_v46 = vld [vmem:[%s6109_s1 + $0x110] sm:$0xff] }
  0xe0   :  { %v4173_v62 = vcombine.high %v521_v56, %v525_v57  ;;  %v62_v48 = vld [vmem:[%s6109_s1 + $0x130] sm:$0xff] }
  0xe2   :  { %3096 = vmatpush1.bf16.msra.mxu0 %v4032_v2  ;;  %3352 = vmatpush1.bf16.msra.mxu1 %v4160_v4  ;;  %v529_v2 = vld [vmem:[%s6109_s1 + $0xfc8] sm:$0xff] }
  0xe3   :  { %3098 = vmatprep.subr.bf16.mxu0 %v4033_v5  ;;  %3354 = vmatprep.subr.bf16.mxu1 %v4161_v6  ;;  %v533_v4 = vld [vmem:[%s6109_s1 + $0xfe8] sm:$0xff]  ;;  %v4046_v5 = vcombine.low %v520_v54, %v524_v55  ;;  %v4174_v6 = vcombine.low %v521_v56, %v525_v57  ;;  %v66_v55 = vld [vmem:[%s6109_s1 + $0x150] sm:$0xff]  ;;  %v67_v57 = vld [vmem:[%s6109_s1 + $0x158] sm:$0xff] }
  0xe4   :  { %v4175_v9 = vcombine.high %v529_v2, %v533_v4  ;;  %v70_v56 = vld [vmem:[%s6109_s1 + $0x170] sm:$0xff] }
  0xe6   :  { %3100 = vmatpush1.bf16.msra.mxu0 %v4034_v12  ;;  %3356 = vmatpush1.bf16.msra.mxu1 %v4162_v13  ;;  %v27_v12 = vld [vmem:[%s6109_s1 + $0x18] sm:$0xff] }
  0xe7   :  { %3102 = vmatprep.subr.bf16.mxu0 %v4035_v14  ;;  %3358 = vmatprep.subr.bf16.mxu1 %v4163_v15  ;;  %v31_v13 = vld [vmem:[%s6109_s1 + $0x38] sm:$0xff]  ;;  %v4048_v14 = vcombine.low %v528_v0, %v532_v1  ;;  %v4176_v15 = vcombine.low %v529_v2, %v533_v4  ;;  %v74_v1 = vld [vmem:[%s6109_s1 + $0x190] sm:$0xff] }
  0xe8   :  { %v4305_v17 = vcombine.high %v27_v12, %v31_v13  ;;  %v78_v2 = vld [vmem:[%s6109_s1 + $0x1b0] sm:$0xff]  ;;  %v75_v4 = vld [vmem:[%s6109_s1 + $0x198] sm:$0xff] }
  0xea   :  { %3104 = vmatpush1.bf16.msra.mxu0 %v4036_v20  ;;  %3360 = vmatpush1.bf16.msra.mxu1 %v4164_v59  ;;  %v35_v20 = vld [vmem:[%s6109_s1 + $0x58] sm:$0xff] }
  0xeb   :  { %3106 = vmatprep.subr.bf16.mxu0 %v4037_v21  ;;  %3362 = vmatprep.subr.bf16.mxu1 %v4165_v23  ;;  %v39_v59 = vld [vmem:[%s6109_s1 + $0x78] sm:$0xff]  ;;  %v4178_v21 = vcombine.low %v26_v10, %v30_v11  ;;  %v4306_v23 = vcombine.low %v27_v12, %v31_v13  ;;  %v82_v11 = vld [vmem:[%s6109_s1 + $0x1d0] sm:$0xff] }
  0xec   :  { %v4307_v25 = vcombine.high %v35_v20, %v39_v59  ;;  %v86_v12 = vld [vmem:[%s6109_s1 + $0x1f0] sm:$0xff]  ;;  %v83_v13 = vld [vmem:[%s6109_s1 + $0x1d8] sm:$0xff] }
  0xee   :  { %3108 = vmatpush1.bf16.msra.mxu0 %v4038_v28  ;;  %3364 = vmatpush1.bf16.msra.mxu1 %v4166_v30  ;;  %v43_v28 = vld [vmem:[%s6109_s1 + $0x98] sm:$0xff] }
  0xef   :  { %3110 = vmatprep.subr.bf16.mxu0 %v4039_v32  ;;  %3366 = vmatprep.subr.bf16.mxu1 %v4167_v33  ;;  %v47_v30 = vld [vmem:[%s6109_s1 + $0xb8] sm:$0xff]  ;;  %v4180_v32 = vcombine.low %v34_v18, %v38_v19  ;;  %v4308_v33 = vcombine.low %v35_v20, %v39_v59  ;;  %v90_v19 = vld [vmem:[%s6109_s1 + $0x210] sm:$0xff] }
  0xf0   :  { %v4309_v35 = vcombine.high %v43_v28, %v47_v30  ;;  %v94_v20 = vld [vmem:[%s6109_s1 + $0x230] sm:$0xff]  ;;  %v91_v59 = vld [vmem:[%s6109_s1 + $0x218] sm:$0xff] }
  0xf2   :  { %3112 = vmatpush1.bf16.msra.mxu0 %v4040_v39  ;;  %3368 = vmatpush1.bf16.msra.mxu1 %v4168_v40  ;;  %v51_v39 = vld [vmem:[%s6109_s1 + $0xd8] sm:$0xff] }
  0xf3   :  { %3114 = vmatprep.subr.bf16.mxu0 %v4041_v41  ;;  %3370 = vmatprep.subr.bf16.mxu1 %v4169_v42  ;;  %v55_v40 = vld [vmem:[%s6109_s1 + $0xf8] sm:$0xff]  ;;  %v4182_v41 = vcombine.low %v42_v26, %v46_v27  ;;  %v4310_v42 = vcombine.low %v43_v28, %v47_v30  ;;  %v98_v27 = vld [vmem:[%s6109_s1 + $0x250] sm:$0xff] }
  0xf4   :  { %v4311_v45 = vcombine.high %v51_v39, %v55_v40  ;;  %v102_v28 = vld [vmem:[%s6109_s1 + $0x270] sm:$0xff]  ;;  %v99_v30 = vld [vmem:[%s6109_s1 + $0x258] sm:$0xff] }
  0xf6   :  { %3116 = vmatpush1.bf16.msra.mxu0 %v4042_v49  ;;  %3372 = vmatpush1.bf16.msra.mxu1 %v4170_v50  ;;  %v63_v49 = vld [vmem:[%s6109_s1 + $0x138] sm:$0xff]  ;;  %v4184_v50 = vcombine.low %v50_v36, %v54_v38  ;;  %v106_v38 = vld [vmem:[%s6109_s1 + $0x290] sm:$0xff] }
  0xf7   :  { %3118 = vmatprep.subr.bf16.mxu0 %v4043_v51  ;;  %3374 = vmatprep.subr.bf16.mxu1 %v4171_v52  ;;  %v4312_v51 = vcombine.low %v51_v39, %v55_v40  ;;  %v4185_v52 = vcombine.high %v58_v46, %v62_v48  ;;  %v110_v39 = vld [vmem:[%s6109_s1 + $0x2b0] sm:$0xff]  ;;  %v107_v40 = vld [vmem:[%s6109_s1 + $0x298] sm:$0xff] }
  0xfa   :  { %3120 = vmatpush1.bf16.msra.mxu0 %v4044_v29  ;;  %3376 = vmatpush1.bf16.msra.mxu1 %v4172_v58  ;;  %v71_v29 = vld [vmem:[%s6109_s1 + $0x178] sm:$0xff]  ;;  %v4186_v58 = vcombine.low %v58_v46, %v62_v48  ;;  %v114_v48 = vld [vmem:[%s6109_s1 + $0x2d0] sm:$0xff] }
  0xfb   :  { %3122 = vmatprep.subr.bf16.mxu0 %v4045_v61  ;;  %3378 = vmatprep.subr.bf16.mxu1 %v4173_v62  ;;  %v4187_v62 = vcombine.high %v66_v55, %v70_v56  ;;  %v4315_v0 = vcombine.high %v67_v57, %v71_v29 }
  0xfe   :  { %3124 = vmatpush1.bf16.msra.mxu0 %v4046_v5  ;;  %3380 = vmatpush1.bf16.msra.mxu1 %v4174_v6  ;;  %v79_v5 = vld [vmem:[%s6109_s1 + $0x1b8] sm:$0xff]  ;;  %v4188_v6 = vcombine.low %v66_v55, %v70_v56  ;;  %v122_v56 = vld [vmem:[%s6109_s1 + $0x310] sm:$0xff] }
  0xff   :  { %3126 = vmatprep.subr.bf16.mxu0 %v4047_v8  ;;  %3382 = vmatprep.subr.bf16.mxu1 %v4175_v9  ;;  %v4316_v8 = vcombine.low %v67_v57, %v71_v29  ;;  %v4189_v9 = vcombine.high %v74_v1, %v78_v2  ;;  %v4317_v10 = vcombine.high %v75_v4, %v79_v5  ;;  %v126_v57 = vld [vmem:[%s6109_s1 + $0x330] sm:$0xff]  ;;  %v123_v29 = vld [vmem:[%s6109_s1 + $0x318] sm:$0xff] }
 0x102   :  { %3128 = vmatpush1.bf16.msra.mxu0 %v4048_v14  ;;  %3384 = vmatpush1.bf16.msra.mxu1 %v4176_v15  ;;  %v87_v14 = vld [vmem:[%s6109_s1 + $0x1f8] sm:$0xff]  ;;  %v4190_v15 = vcombine.low %v74_v1, %v78_v2  ;;  %v130_v2 = vld [vmem:[%s6109_s1 + $0x350] sm:$0xff] }
 0x103   :  { %3386 = vmatprep.subr.bf16.mxu0 %v4177_v16  ;;  %3642 = vmatprep.subr.bf16.mxu1 %v4305_v17  ;;  %v4318_v16 = vcombine.low %v75_v4, %v79_v5  ;;  %v4191_v17 = vcombine.high %v82_v11, %v86_v12  ;;  %v4319_v18 = vcombine.high %v83_v13, %v87_v14  ;;  %v134_v4 = vld [vmem:[%s6109_s1 + $0x370] sm:$0xff]  ;;  %v131_v5 = vld [vmem:[%s6109_s1 + $0x358] sm:$0xff] }
 0x105   :  { %1882 = vmatmul.mubr.f32.vlgmr.msra.gmra.mrb[0].mxu0 %v5104_v60  ;;  %2166 = vmatmul.mubr.f32.vlgmr.msra.gmra.mrb[0].mxu1 %v5104_v60 }
 0x106   :  { %3388 = vmatpush1.bf16.msra.mxu0 %v4178_v21  ;;  %3644 = vmatpush1.bf16.msra.mxu1 %v4306_v23  ;;  %v95_v21 = vld [vmem:[%s6109_s1 + $0x238] sm:$0xff]  ;;  %v4192_v23 = vcombine.low %v82_v11, %v86_v12  ;;  %v138_v12 = vld [vmem:[%s6109_s1 + $0x390] sm:$0xff] }
 0x107   :  { %3390 = vmatprep.subr.bf16.mxu0 %v4179_v24  ;;  %3646 = vmatprep.subr.bf16.mxu1 %v4307_v25  ;;  %v4320_v24 = vcombine.low %v83_v13, %v87_v14  ;;  %v4193_v25 = vcombine.high %v90_v19, %v94_v20  ;;  %v4321_v26 = vcombine.high %v91_v59, %v95_v21  ;;  %v142_v13 = vld [vmem:[%s6109_s1 + $0x3b0] sm:$0xff]  ;;  %v139_v14 = vld [vmem:[%s6109_s1 + $0x398] sm:$0xff] }
 0x108   :  { %2236 = vmatprep.mubr.f32.mxu0 %v4569_v3  ;;  %2520 = vmatprep.mubr.f32.mxu1 %v4569_v3  ;;  %v59_v3 = vld [vmem:[%s6109_s1 + $0x118] sm:$0xff] }
 0x109   :  { %v4313_v54 = vcombine.high %v59_v3, %v63_v49  ;;  %v4314_v61 = vcombine.low %v59_v3, %v63_v49  ;;  %v118_v3 = vld [vmem:[%s6109_s1 + $0x2f0] sm:$0xff]  ;;  %v115_v49 = vld [vmem:[%s6109_s1 + $0x2d8] sm:$0xff] }
 0x10a   :  { %3392 = vmatpush1.bf16.msra.mxu0 %v4180_v32  ;;  %3648 = vmatpush1.bf16.msra.mxu1 %v4308_v33  ;;  %v103_v32 = vld [vmem:[%s6109_s1 + $0x278] sm:$0xff]  ;;  %v4194_v33 = vcombine.low %v90_v19, %v94_v20  ;;  %v146_v20 = vld [vmem:[%s6109_s1 + $0x3d0] sm:$0xff] }
 0x10b   :  { %3394 = vmatprep.subr.bf16.mxu0 %v4181_v34  ;;  %3650 = vmatprep.subr.bf16.mxu1 %v4309_v35  ;;  %v4322_v34 = vcombine.low %v91_v59, %v95_v21  ;;  %v4195_v35 = vcombine.high %v98_v27, %v102_v28  ;;  %v4323_v36 = vcombine.high %v99_v30, %v103_v32  ;;  %v150_v59 = vld [vmem:[%s6109_s1 + $0x3f0] sm:$0xff]  ;;  %v147_v21 = vld [vmem:[%s6109_s1 + $0x3d8] sm:$0xff] }
 0x10e   :  { %3396 = vmatpush1.bf16.msra.mxu0 %v4182_v41  ;;  %3652 = vmatpush1.bf16.msra.mxu1 %v4310_v42  ;;  %v111_v41 = vld [vmem:[%s6109_s1 + $0x2b8] sm:$0xff]  ;;  %v4196_v42 = vcombine.low %v98_v27, %v102_v28  ;;  %v154_v28 = vld [vmem:[%s6109_s1 + $0x410] sm:$0xff] }
 0x10f   :  { %3398 = vmatprep.subr.bf16.mxu0 %v4183_v43  ;;  %3654 = vmatprep.subr.bf16.mxu1 %v4311_v45  ;;  %v4324_v43 = vcombine.low %v99_v30, %v103_v32  ;;  %v4197_v45 = vcombine.high %v106_v38, %v110_v39  ;;  %v4325_v46 = vcombine.high %v107_v40, %v111_v41  ;;  %v158_v30 = vld [vmem:[%s6109_s1 + $0x430] sm:$0xff]  ;;  %v155_v32 = vld [vmem:[%s6109_s1 + $0x418] sm:$0xff] }
 0x112   :  { %3400 = vmatpush1.bf16.msra.mxu0 %v4184_v50  ;;  %3656 = vmatpush1.bf16.msra.mxu1 %v4312_v51  ;;  %v119_v50 = vld [vmem:[%s6109_s1 + $0x2f8] sm:$0xff]  ;;  %v4198_v51 = vcombine.low %v106_v38, %v110_v39  ;;  %v162_v39 = vld [vmem:[%s6109_s1 + $0x450] sm:$0xff] }
 0x113   :  { %3402 = vmatprep.subr.bf16.mxu0 %v4185_v52  ;;  %3658 = vmatprep.subr.bf16.mxu1 %v4313_v54  ;;  %v4326_v52 = vcombine.low %v107_v40, %v111_v41  ;;  %v4199_v54 = vcombine.high %v114_v48, %v118_v3  ;;  %v4327_v55 = vcombine.high %v115_v49, %v119_v50  ;;  %v166_v40 = vld [vmem:[%s6109_s1 + $0x470] sm:$0xff]  ;;  %v163_v41 = vld [vmem:[%s6109_s1 + $0x458] sm:$0xff] }
 0x116   :  { %3404 = vmatpush1.bf16.msra.mxu0 %v4186_v58  ;;  %3660 = vmatpush1.bf16.msra.mxu1 %v4314_v61  ;;  %v127_v58 = vld [vmem:[%s6109_s1 + $0x338] sm:$0xff]  ;;  %v4200_v61 = vcombine.low %v114_v48, %v118_v3  ;;  %v170_v3 = vld [vmem:[%s6109_s1 + $0x490] sm:$0xff] }
 0x117   :  { %3406 = vmatprep.subr.bf16.mxu0 %v4187_v62  ;;  %3662 = vmatprep.subr.bf16.mxu1 %v4315_v0  ;;  %v4328_v62 = vcombine.low %v115_v49, %v119_v50  ;;  %v4201_v0 = vcombine.high %v122_v56, %v126_v57  ;;  %v4329_v1 = vcombine.high %v123_v29, %v127_v58  ;;  %v174_v49 = vld [vmem:[%s6109_s1 + $0x4b0] sm:$0xff]  ;;  %v171_v50 = vld [vmem:[%s6109_s1 + $0x498] sm:$0xff] }
 0x11a   :  { %3408 = vmatpush1.bf16.msra.mxu0 %v4188_v6  ;;  %3664 = vmatpush1.bf16.msra.mxu1 %v4316_v8  ;;  %v135_v6 = vld [vmem:[%s6109_s1 + $0x378] sm:$0xff]  ;;  %v4202_v8 = vcombine.low %v122_v56, %v126_v57  ;;  %v178_v57 = vld [vmem:[%s6109_s1 + $0x4d0] sm:$0xff] }
 0x11b   :  { %3410 = vmatprep.subr.bf16.mxu0 %v4189_v9  ;;  %3666 = vmatprep.subr.bf16.mxu1 %v4317_v10  ;;  %v4330_v9 = vcombine.low %v123_v29, %v127_v58  ;;  %v4203_v10 = vcombine.high %v130_v2, %v134_v4  ;;  %v4331_v11 = vcombine.high %v131_v5, %v135_v6  ;;  %v182_v29 = vld [vmem:[%s6109_s1 + $0x4f0] sm:$0xff]  ;;  %v183_v58 = vld [vmem:[%s6109_s1 + $0x4f8] sm:$0xff] }
 0x11e   :  { %3412 = vmatpush1.bf16.msra.mxu0 %v4190_v15  ;;  %3668 = vmatpush1.bf16.msra.mxu1 %v4318_v16  ;;  %v143_v15 = vld [vmem:[%s6109_s1 + $0x3b8] sm:$0xff]  ;;  %v4204_v16 = vcombine.low %v130_v2, %v134_v4  ;;  %v186_v2 = vld [vmem:[%s6109_s1 + $0x510] sm:$0xff] }
 0x11f   :  { %3414 = vmatprep.subr.bf16.mxu0 %v4191_v17  ;;  %3670 = vmatprep.subr.bf16.mxu1 %v4319_v18  ;;  %v4332_v17 = vcombine.low %v131_v5, %v135_v6  ;;  %v4205_v18 = vcombine.high %v138_v12, %v142_v13  ;;  %v4333_v19 = vcombine.high %v139_v14, %v143_v15  ;;  %v190_v4 = vld [vmem:[%s6109_s1 + $0x530] sm:$0xff]  ;;  %v191_v5 = vld [vmem:[%s6109_s1 + $0x538] sm:$0xff] }
 0x120   :  { %v4216_v6 = vcombine.low %v178_v57, %v182_v29 }
 0x122   :  { %3416 = vmatpush1.bf16.msra.mxu0 %v4192_v23  ;;  %3672 = vmatpush1.bf16.msra.mxu1 %v4320_v24  ;;  %v151_v23 = vld [vmem:[%s6109_s1 + $0x3f8] sm:$0xff]  ;;  %v4206_v24 = vcombine.low %v138_v12, %v142_v13  ;;  %v198_v12 = vld [vmem:[%s6109_s1 + $0x570] sm:$0xff] }
 0x123   :  { %3418 = vmatprep.subr.bf16.mxu0 %v4193_v25  ;;  %3674 = vmatprep.subr.bf16.mxu1 %v4321_v26  ;;  %v4334_v25 = vcombine.low %v139_v14, %v143_v15  ;;  %v4207_v26 = vcombine.high %v146_v20, %v150_v59  ;;  %v4335_v27 = vcombine.high %v147_v21, %v151_v23  ;;  %v195_v13 = vld [vmem:[%s6109_s1 + $0x558] sm:$0xff] }
 0x124   :  { %v199_v14 = vld [vmem:[%s6109_s1 + $0x578] sm:$0xff]  ;;  %v4218_v15 = vcombine.low %v186_v2, %v190_v4 }
 0x126   :  { %3420 = vmatpush1.bf16.msra.mxu0 %v4194_v33  ;;  %3676 = vmatpush1.bf16.msra.mxu1 %v4322_v34  ;;  %v159_v33 = vld [vmem:[%s6109_s1 + $0x438] sm:$0xff]  ;;  %v4208_v34 = vcombine.low %v146_v20, %v150_v59  ;;  %v206_v20 = vld [vmem:[%s6109_s1 + $0x5b0] sm:$0xff] }
 0x127   :  { %3422 = vmatprep.subr.bf16.mxu0 %v4195_v35  ;;  %3678 = vmatprep.subr.bf16.mxu1 %v4323_v36  ;;  %v4336_v35 = vcombine.low %v147_v21, %v151_v23  ;;  %v4209_v36 = vcombine.high %v154_v28, %v158_v30  ;;  %v4337_v38 = vcombine.high %v155_v32, %v159_v33  ;;  %v203_v59 = vld [vmem:[%s6109_s1 + $0x598] sm:$0xff] }
 0x128   :  { %v207_v21 = vld [vmem:[%s6109_s1 + $0x5b8] sm:$0xff] }
 0x12a   :  { %3424 = vmatpush1.bf16.msra.mxu0 %v4196_v42  ;;  %3680 = vmatpush1.bf16.msra.mxu1 %v4324_v43  ;;  %v167_v42 = vld [vmem:[%s6109_s1 + $0x478] sm:$0xff]  ;;  %v4210_v43 = vcombine.low %v154_v28, %v158_v30  ;;  %v214_v28 = vld [vmem:[%s6109_s1 + $0x5f0] sm:$0xff] }
 0x12b   :  { %3426 = vmatprep.subr.bf16.mxu0 %v4197_v45  ;;  %3682 = vmatprep.subr.bf16.mxu1 %v4325_v46  ;;  %v4338_v45 = vcombine.low %v155_v32, %v159_v33  ;;  %v4211_v46 = vcombine.high %v162_v39, %v166_v40  ;;  %v4339_v48 = vcombine.high %v163_v41, %v167_v42  ;;  %v211_v30 = vld [vmem:[%s6109_s1 + $0x5d8] sm:$0xff] }
 0x12c   :  { %v215_v32 = vld [vmem:[%s6109_s1 + $0x5f8] sm:$0xff] }
 0x12e   :  { %3428 = vmatpush1.bf16.msra.mxu0 %v4198_v51  ;;  %3684 = vmatpush1.bf16.msra.mxu1 %v4326_v52  ;;  %v175_v51 = vld [vmem:[%s6109_s1 + $0x4b8] sm:$0xff]  ;;  %v4212_v52 = vcombine.low %v162_v39, %v166_v40  ;;  %v222_v39 = vld [vmem:[%s6109_s1 + $0x630] sm:$0xff] }
 0x12f   :  { %3430 = vmatprep.subr.bf16.mxu0 %v4199_v54  ;;  %3686 = vmatprep.subr.bf16.mxu1 %v4327_v55  ;;  %v4340_v54 = vcombine.low %v163_v41, %v167_v42  ;;  %v4213_v55 = vcombine.high %v170_v3, %v174_v49  ;;  %v4341_v56 = vcombine.high %v171_v50, %v175_v51  ;;  %v219_v40 = vld [vmem:[%s6109_s1 + $0x618] sm:$0xff] }
 0x130   :  { %v223_v41 = vld [vmem:[%s6109_s1 + $0x638] sm:$0xff] }
 0x132   :  { %3432 = vmatpush1.bf16.msra.mxu0 %v4200_v61  ;;  %3688 = vmatpush1.bf16.msra.mxu1 %v4328_v62  ;;  %v4214_v61 = vcombine.low %v170_v3, %v174_v49  ;;  %v4342_v62 = vcombine.low %v171_v50, %v175_v51  ;;  %v230_v3 = vld [vmem:[%s6109_s1 + $0x670] sm:$0xff]  ;;  %v227_v49 = vld [vmem:[%s6109_s1 + $0x658] sm:$0xff] }
 0x133   :  { %3434 = vmatprep.subr.bf16.mxu0 %v4201_v0  ;;  %3690 = vmatprep.subr.bf16.mxu1 %v4329_v1  ;;  %v4215_v0 = vcombine.high %v178_v57, %v182_v29  ;;  %v231_v50 = vld [vmem:[%s6109_s1 + $0x678] sm:$0xff]  ;;  %v238_v57 = vld [vmem:[%s6109_s1 + $0x6b0] sm:$0xff] }
 0x134   :  { %v235_v29 = vld [vmem:[%s6109_s1 + $0x698] sm:$0xff] }
 0x136   :  { %3436 = vmatpush1.bf16.msra.mxu0 %v4202_v8  ;;  %3692 = vmatpush1.bf16.msra.mxu1 %v4330_v9  ;;  %v4217_v9 = vcombine.high %v186_v2, %v190_v4  ;;  %v246_v2 = vld [vmem:[%s6109_s1 + $0x6f0] sm:$0xff]  ;;  %v243_v4 = vld [vmem:[%s6109_s1 + $0x6d8] sm:$0xff] }
 0x137   :  { %3438 = vmatprep.subr.bf16.mxu0 %v4203_v10  ;;  %3694 = vmatprep.subr.bf16.mxu1 %v4331_v11  ;;  %v194_v11 = vld [vmem:[%s6109_s1 + $0x550] sm:$0xff] }
 0x138   :  { %v4220_v23 = vcombine.low %v194_v11, %v198_v12 }
 0x13a   :  { %3440 = vmatpush1.bf16.msra.mxu0 %v4204_v16  ;;  %3696 = vmatpush1.bf16.msra.mxu1 %v4332_v17  ;;  %v4219_v17 = vcombine.high %v194_v11, %v198_v12  ;;  %v254_v11 = vld [vmem:[%s6109_s1 + $0x730] sm:$0xff]  ;;  %v251_v12 = vld [vmem:[%s6109_s1 + $0x718] sm:$0xff] }
 0x13b   :  { %3442 = vmatprep.subr.bf16.mxu0 %v4205_v18  ;;  %3698 = vmatprep.subr.bf16.mxu1 %v4333_v19  ;;  %v4347_v18 = vcombine.high %v195_v13, %v199_v14  ;;  %v202_v19 = vld [vmem:[%s6109_s1 + $0x590] sm:$0xff] }
 0x13c   :  { %v4222_v33 = vcombine.low %v202_v19, %v206_v20 }
 0x13e   :  { %3444 = vmatpush1.bf16.msra.mxu0 %v4206_v24  ;;  %3700 = vmatpush1.bf16.msra.mxu1 %v4334_v25  ;;  %v4348_v24 = vcombine.low %v195_v13, %v199_v14  ;;  %v4221_v25 = vcombine.high %v202_v19, %v206_v20  ;;  %v255_v13 = vld [vmem:[%s6109_s1 + $0x738] sm:$0xff]  ;;  %v262_v19 = vld [vmem:[%s6109_s1 + $0x770] sm:$0xff] }
 0x13f   :  { %3446 = vmatprep.subr.bf16.mxu0 %v4207_v26  ;;  %3702 = vmatprep.subr.bf16.mxu1 %v4335_v27  ;;  %v4349_v26 = vcombine.high %v203_v59, %v207_v21  ;;  %v210_v27 = vld [vmem:[%s6109_s1 + $0x5d0] sm:$0xff]  ;;  %v259_v20 = vld [vmem:[%s6109_s1 + $0x758] sm:$0xff] }
 0x140   :  { %v4224_v42 = vcombine.low %v210_v27, %v214_v28 }
 0x142   :  { %3448 = vmatpush1.bf16.msra.mxu0 %v4208_v34  ;;  %3704 = vmatpush1.bf16.msra.mxu1 %v4336_v35  ;;  %v4350_v34 = vcombine.low %v203_v59, %v207_v21  ;;  %v4223_v35 = vcombine.high %v210_v27, %v214_v28  ;;  %v263_v59 = vld [vmem:[%s6109_s1 + $0x778] sm:$0xff]  ;;  %v270_v27 = vld [vmem:[%s6109_s1 + $0x7b0] sm:$0xff] }
 0x143   :  { %3450 = vmatprep.subr.bf16.mxu0 %v4209_v36  ;;  %3706 = vmatprep.subr.bf16.mxu1 %v4337_v38  ;;  %v4351_v36 = vcombine.high %v211_v30, %v215_v32  ;;  %v218_v38 = vld [vmem:[%s6109_s1 + $0x610] sm:$0xff]  ;;  %v267_v28 = vld [vmem:[%s6109_s1 + $0x798] sm:$0xff] }
 0x144   :  { %v4226_v51 = vcombine.low %v218_v38, %v222_v39 }
 0x145   :  { %2237 = vmatmul.mubr.f32.vlgmr.msra.gmra.mrb[2].mxu0 %v4559_v63  ;;  %2521 = vmatmul.mubr.f32.vlgmr.msra.gmra.mrb[2].mxu1 %v4559_v63  ;;  %v179_v63 = vld [vmem:[%s6109_s1 + $0x4d8] sm:$0xff] }
 0x146   :  { %3452 = vmatpush1.bf16.msra.mxu0 %v4210_v43  ;;  %3708 = vmatpush1.bf16.msra.mxu1 %v4338_v45  ;;  %v4343_v1 = vcombine.high %v179_v63, %v183_v58  ;;  %v4344_v8 = vcombine.low %v179_v63, %v183_v58  ;;  %v4352_v43 = vcombine.low %v211_v30, %v215_v32  ;;  %v239_v63 = vld [vmem:[%s6109_s1 + $0x6b8] sm:$0xff] }
 0x147   :  { %3454 = vmatprep.subr.bf16.mxu0 %v4211_v46  ;;  %3710 = vmatprep.subr.bf16.mxu1 %v4339_v48  ;;  %v4225_v45 = vcombine.high %v218_v38, %v222_v39  ;;  %v4353_v46 = vcombine.high %v219_v40, %v223_v41  ;;  %v226_v48 = vld [vmem:[%s6109_s1 + $0x650] sm:$0xff]  ;;  %v271_v30 = vld [vmem:[%s6109_s1 + $0x7b8] sm:$0xff] }
 0x148   :  { %2307 = vmatprep.mubr.f32.mxu0 %v4706_v31  ;;  %2591 = vmatprep.mubr.f32.mxu1 %v4706_v31  ;;  %v187_v31 = vld [vmem:[%s6109_s1 + $0x518] sm:$0xff]  ;;  %v4228_v58 = vcombine.low %v226_v48, %v230_v3  ;;  %v278_v38 = vld [vmem:[%s6109_s1 + $0x7f0] sm:$0xff] }
 0x149   :  { %v4345_v10 = vcombine.high %v187_v31, %v191_v5  ;;  %v4346_v16 = vcombine.low %v187_v31, %v191_v5  ;;  %v247_v31 = vld [vmem:[%s6109_s1 + $0x6f8] sm:$0xff] }
 0x14a   :  { %3456 = vmatpush1.bf16.msra.mxu0 %v4212_v52  ;;  %3712 = vmatpush1.bf16.msra.mxu1 %v4340_v54  ;;  %v4354_v52 = vcombine.low %v219_v40, %v223_v41  ;;  %v4227_v54 = vcombine.high %v226_v48, %v230_v3  ;;  %v275_v39 = vld [vmem:[%s6109_s1 + $0x7d8] sm:$0xff]  ;;  %v286_v48 = vld [vmem:[%s6109_s1 + $0x830] sm:$0xff] }
 0x14b   :  { %3458 = vmatprep.subr.bf16.mxu0 %v4213_v55  ;;  %3714 = vmatprep.subr.bf16.mxu1 %v4341_v56  ;;  %v4355_v55 = vcombine.high %v227_v49, %v231_v50  ;;  %v234_v56 = vld [vmem:[%s6109_s1 + $0x690] sm:$0xff]  ;;  %v279_v40 = vld [vmem:[%s6109_s1 + $0x7f8] sm:$0xff] }
 0x14c   :  { %v4230_v5 = vcombine.low %v234_v56, %v238_v57  ;;  %v283_v3 = vld [vmem:[%s6109_s1 + $0x818] sm:$0xff] }
 0x14e   :  { %3460 = vmatpush1.bf16.msra.mxu0 %v4214_v61  ;;  %3716 = vmatpush1.bf16.msra.mxu1 %v4342_v62  ;;  %v4356_v61 = vcombine.low %v227_v49, %v231_v50  ;;  %v4229_v62 = vcombine.high %v234_v56, %v238_v57  ;;  %v287_v49 = vld [vmem:[%s6109_s1 + $0x838] sm:$0xff]  ;;  %v294_v56 = vld [vmem:[%s6109_s1 + $0x870] sm:$0xff] }
 0x14f   :  { %3462 = vmatprep.subr.bf16.mxu0 %v4215_v0  ;;  %3718 = vmatprep.subr.bf16.mxu1 %v4343_v1  ;;  %v4357_v0 = vcombine.high %v235_v29, %v239_v63  ;;  %v242_v1 = vld [vmem:[%s6109_s1 + $0x6d0] sm:$0xff]  ;;  %v291_v57 = vld [vmem:[%s6109_s1 + $0x858] sm:$0xff] }
 0x150   :  { %v4232_v14 = vcombine.low %v242_v1, %v246_v2 }
 0x152   :  { %3464 = vmatpush1.bf16.msra.mxu0 %v4216_v6  ;;  %3720 = vmatpush1.bf16.msra.mxu1 %v4344_v8  ;;  %v4358_v6 = vcombine.low %v235_v29, %v239_v63  ;;  %v4231_v8 = vcombine.high %v242_v1, %v246_v2  ;;  %v295_v29 = vld [vmem:[%s6109_s1 + $0x878] sm:$0xff]  ;;  %v302_v1 = vld [vmem:[%s6109_s1 + $0x8b0] sm:$0xff] }
 0x153   :  { %3466 = vmatprep.subr.bf16.mxu0 %v4217_v9  ;;  %3722 = vmatprep.subr.bf16.mxu1 %v4345_v10  ;;  %v4359_v9 = vcombine.high %v243_v4, %v247_v31  ;;  %v250_v10 = vld [vmem:[%s6109_s1 + $0x710] sm:$0xff]  ;;  %v299_v2 = vld [vmem:[%s6109_s1 + $0x898] sm:$0xff] }
 0x154   :  { %v4234_v21 = vcombine.low %v250_v10, %v254_v11 }
 0x156   :  { %3468 = vmatpush1.bf16.msra.mxu0 %v4218_v15  ;;  %3724 = vmatpush1.bf16.msra.mxu1 %v4346_v16  ;;  %v4360_v15 = vcombine.low %v243_v4, %v247_v31  ;;  %v4233_v16 = vcombine.high %v250_v10, %v254_v11  ;;  %v303_v4 = vld [vmem:[%s6109_s1 + $0x8b8] sm:$0xff]  ;;  %v310_v10 = vld [vmem:[%s6109_s1 + $0x8f0] sm:$0xff] }
 0x157   :  { %3470 = vmatprep.subr.bf16.mxu0 %v4219_v17  ;;  %3726 = vmatprep.subr.bf16.mxu1 %v4347_v18  ;;  %v4361_v17 = vcombine.high %v251_v12, %v255_v13  ;;  %v258_v18 = vld [vmem:[%s6109_s1 + $0x750] sm:$0xff]  ;;  %v311_v11 = vld [vmem:[%s6109_s1 + $0x8f8] sm:$0xff] }
 0x158   :  { %v4236_v32 = vcombine.low %v258_v18, %v262_v19 }
 0x15a   :  { %3472 = vmatpush1.bf16.msra.mxu0 %v4220_v23  ;;  %3728 = vmatpush1.bf16.msra.mxu1 %v4348_v24  ;;  %v4362_v23 = vcombine.low %v251_v12, %v255_v13  ;;  %v4235_v24 = vcombine.high %v258_v18, %v262_v19  ;;  %v4374_v13 = vcombine.low %v299_v2, %v303_v4  ;;  %v319_v18 = vld [vmem:[%s6109_s1 + $0x938] sm:$0xff] }
 0x15b   :  { %3474 = vmatprep.subr.bf16.mxu0 %v4221_v25  ;;  %3730 = vmatprep.subr.bf16.mxu1 %v4349_v26  ;;  %v4363_v25 = vcombine.high %v259_v20, %v263_v59  ;;  %v266_v26 = vld [vmem:[%s6109_s1 + $0x790] sm:$0xff] }
 0x15c   :  { %v4238_v41 = vcombine.low %v266_v26, %v270_v27 }
 0x15e   :  { %3476 = vmatpush1.bf16.msra.mxu0 %v4222_v33  ;;  %3732 = vmatpush1.bf16.msra.mxu1 %v4350_v34  ;;  %v4364_v33 = vcombine.low %v259_v20, %v263_v59  ;;  %v4237_v34 = vcombine.high %v266_v26, %v270_v27  ;;  %v327_v26 = vld [vmem:[%s6109_s1 + $0x978] sm:$0xff] }
 0x15f   :  { %3478 = vmatprep.subr.bf16.mxu0 %v4223_v35  ;;  %3734 = vmatprep.subr.bf16.mxu1 %v4351_v36  ;;  %v4365_v35 = vcombine.high %v267_v28, %v271_v30  ;;  %v274_v36 = vld [vmem:[%s6109_s1 + $0x7d0] sm:$0xff] }
 0x160   :  { %v4240_v50 = vcombine.low %v274_v36, %v278_v38 }
 0x162   :  { %3480 = vmatpush1.bf16.msra.mxu0 %v4224_v42  ;;  %3736 = vmatpush1.bf16.msra.mxu1 %v4352_v43  ;;  %v4366_v42 = vcombine.low %v267_v28, %v271_v30  ;;  %v4239_v43 = vcombine.high %v274_v36, %v278_v38  ;;  %v335_v36 = vld [vmem:[%s6109_s1 + $0x9b8] sm:$0xff] }
 0x163   :  { %3482 = vmatprep.subr.bf16.mxu0 %v4225_v45  ;;  %3738 = vmatprep.subr.bf16.mxu1 %v4353_v46  ;;  %v4367_v45 = vcombine.high %v275_v39, %v279_v40  ;;  %v282_v46 = vld [vmem:[%s6109_s1 + $0x810] sm:$0xff] }
 0x164   :  { %v4242_v63 = vcombine.low %v282_v46, %v286_v48 }
 0x166   :  { %3484 = vmatpush1.bf16.msra.mxu0 %v4226_v51  ;;  %3740 = vmatpush1.bf16.msra.mxu1 %v4354_v52  ;;  %v4368_v51 = vcombine.low %v275_v39, %v279_v40  ;;  %v4241_v52 = vcombine.high %v282_v46, %v286_v48  ;;  %v343_v46 = vld [vmem:[%s6109_s1 + $0x9f8] sm:$0xff] }
 0x167   :  { %3486 = vmatprep.subr.bf16.mxu0 %v4227_v54  ;;  %3742 = vmatprep.subr.bf16.mxu1 %v4355_v55  ;;  %v4369_v54 = vcombine.high %v283_v3, %v287_v49  ;;  %v290_v55 = vld [vmem:[%s6109_s1 + $0x850] sm:$0xff] }
 0x168   :  { %v4244_v31 = vcombine.low %v290_v55, %v294_v56 }
 0x16a   :  { %3488 = vmatpush1.bf16.msra.mxu0 %v4228_v58  ;;  %3744 = vmatpush1.bf16.msra.mxu1 %v4356_v61  ;;  %v4370_v58 = vcombine.low %v283_v3, %v287_v49  ;;  %v4243_v61 = vcombine.high %v290_v55, %v294_v56  ;;  %v351_v55 = vld [vmem:[%s6109_s1 + $0xa38] sm:$0xff] }
 0x16b   :  { %3490 = vmatprep.subr.bf16.mxu0 %v4229_v62  ;;  %3746 = vmatprep.subr.bf16.mxu1 %v4357_v0  ;;  %v4371_v62 = vcombine.high %v291_v57, %v295_v29  ;;  %v298_v0 = vld [vmem:[%s6109_s1 + $0x890] sm:$0xff] }
 0x16c   :  { %v4246_v12 = vcombine.low %v298_v0, %v302_v1 }
 0x16e   :  { %3492 = vmatpush1.bf16.msra.mxu0 %v4230_v5  ;;  %3748 = vmatpush1.bf16.msra.mxu1 %v4358_v6  ;;  %v4372_v5 = vcombine.low %v291_v57, %v295_v29  ;;  %v4245_v6 = vcombine.high %v298_v0, %v302_v1  ;;  %v359_v0 = vld [vmem:[%s6109_s1 + $0xa78] sm:$0xff] }
 0x16f   :  { %3494 = vmatprep.subr.bf16.mxu0 %v4231_v8  ;;  %3750 = vmatprep.subr.bf16.mxu1 %v4359_v9  ;;  %v4373_v8 = vcombine.high %v299_v2, %v303_v4  ;;  %v306_v9 = vld [vmem:[%s6109_s1 + $0x8d0] sm:$0xff] }
 0x170   :  { %v4248_v19 = vcombine.low %v306_v9, %v310_v10 }
 0x172   :  { %3496 = vmatpush1.bf16.msra.mxu0 %v4232_v14  ;;  %3752 = vmatpush1.bf16.msra.mxu1 %v4360_v15  ;;  %v4247_v14 = vcombine.high %v306_v9, %v310_v10  ;;  %v367_v9 = vld [vmem:[%s6109_s1 + $0xab8] sm:$0xff] }
 0x173   :  { %3498 = vmatprep.subr.bf16.mxu0 %v4233_v16  ;;  %3754 = vmatprep.subr.bf16.mxu1 %v4361_v17  ;;  %v314_v16 = vld [vmem:[%s6109_s1 + $0x910] sm:$0xff] }
 0x174   :  { %v318_v17 = vld [vmem:[%s6109_s1 + $0x930] sm:$0xff] }
 0x175   :  { %v4249_v59 = vcombine.high %v314_v16, %v318_v17  ;;  %v4250_v27 = vcombine.low %v314_v16, %v318_v17  ;;  %v375_v16 = vld [vmem:[%s6109_s1 + $0xaf8] sm:$0xff] }
 0x176   :  { %3500 = vmatpush1.bf16.msra.mxu0 %v4234_v21  ;;  %3756 = vmatpush1.bf16.msra.mxu1 %v4362_v23  ;;  %v322_v23 = vld [vmem:[%s6109_s1 + $0x950] sm:$0xff] }
 0x177   :  { %3502 = vmatprep.subr.bf16.mxu0 %v4235_v24  ;;  %3758 = vmatprep.subr.bf16.mxu1 %v4363_v25  ;;  %v326_v24 = vld [vmem:[%s6109_s1 + $0x970] sm:$0xff]  ;;  %v323_v25 = vld [vmem:[%s6109_s1 + $0x958] sm:$0xff] }
 0x178   :  { %v4251_v30 = vcombine.high %v322_v23, %v326_v24  ;;  %v4252_v38 = vcombine.low %v322_v23, %v326_v24  ;;  %v4380_v39 = vcombine.low %v323_v25, %v327_v26  ;;  %v383_v23 = vld [vmem:[%s6109_s1 + $0xb38] sm:$0xff] }
 0x17a   :  { %3504 = vmatpush1.bf16.msra.mxu0 %v4236_v32  ;;  %3760 = vmatpush1.bf16.msra.mxu1 %v4364_v33  ;;  %v4379_v32 = vcombine.high %v323_v25, %v327_v26  ;;  %v330_v33 = vld [vmem:[%s6109_s1 + $0x990] sm:$0xff] }
 0x17b   :  { %3506 = vmatprep.subr.bf16.mxu0 %v4237_v34  ;;  %3762 = vmatprep.subr.bf16.mxu1 %v4365_v35  ;;  %v334_v34 = vld [vmem:[%s6109_s1 + $0x9b0] sm:$0xff]  ;;  %v331_v35 = vld [vmem:[%s6109_s1 + $0x998] sm:$0xff] }
 0x17c   :  { %v4253_v40 = vcombine.high %v330_v33, %v334_v34  ;;  %v4254_v48 = vcombine.low %v330_v33, %v334_v34  ;;  %v4382_v3 = vcombine.low %v331_v35, %v335_v36  ;;  %v391_v33 = vld [vmem:[%s6109_s1 + $0xb78] sm:$0xff] }
 0x17e   :  { %3508 = vmatpush1.bf16.msra.mxu0 %v4238_v41  ;;  %3764 = vmatpush1.bf16.msra.mxu1 %v4366_v42  ;;  %v4381_v41 = vcombine.high %v331_v35, %v335_v36  ;;  %v338_v42 = vld [vmem:[%s6109_s1 + $0x9d0] sm:$0xff] }
 0x17f   :  { %3510 = vmatprep.subr.bf16.mxu0 %v4239_v43  ;;  %3766 = vmatprep.subr.bf16.mxu1 %v4367_v45  ;;  %v342_v43 = vld [vmem:[%s6109_s1 + $0x9f0] sm:$0xff]  ;;  %v339_v45 = vld [vmem:[%s6109_s1 + $0x9d8] sm:$0xff] }
 0x180   :  { %v4255_v49 = vcombine.high %v338_v42, %v342_v43  ;;  %v4256_v56 = vcombine.low %v338_v42, %v342_v43  ;;  %v4384_v57 = vcombine.low %v339_v45, %v343_v46  ;;  %v399_v42 = vld [vmem:[%s6109_s1 + $0xbb8] sm:$0xff] }
 0x182   :  { %3512 = vmatpush1.bf16.msra.mxu0 %v4240_v50  ;;  %3768 = vmatpush1.bf16.msra.mxu1 %v4368_v51  ;;  %v4383_v50 = vcombine.high %v339_v45, %v343_v46  ;;  %v346_v51 = vld [vmem:[%s6109_s1 + $0xa10] sm:$0xff] }
 0x183   :  { %3514 = vmatprep.subr.bf16.mxu0 %v4241_v52  ;;  %3770 = vmatprep.subr.bf16.mxu1 %v4369_v54  ;;  %v350_v52 = vld [vmem:[%s6109_s1 + $0xa30] sm:$0xff]  ;;  %v347_v54 = vld [vmem:[%s6109_s1 + $0xa18] sm:$0xff] }
 0x184   :  { %v4257_v29 = vcombine.high %v346_v51, %v350_v52  ;;  %v4258_v1 = vcombine.low %v346_v51, %v350_v52  ;;  %v4386_v2 = vcombine.low %v347_v54, %v351_v55  ;;  %v407_v51 = vld [vmem:[%s6109_s1 + $0xbf8] sm:$0xff] }
 0x185   :  { %2308 = vmatmul.mubr.f32.vlgmr.msra.gmra.mrb[2].mxu0 %v4690_v22  ;;  %2592 = vmatmul.mubr.f32.vlgmr.msra.gmra.mrb[2].mxu1 %v4690_v22  ;;  %v307_v22 = vld [vmem:[%s6109_s1 + $0x8d8] sm:$0xff] }
 0x186   :  { %3516 = vmatpush1.bf16.msra.mxu0 %v4242_v63  ;;  %3772 = vmatpush1.bf16.msra.mxu1 %v4370_v58  ;;  %v4375_v15 = vcombine.high %v307_v22, %v311_v11  ;;  %v4376_v20 = vcombine.low %v307_v22, %v311_v11  ;;  %v4385_v63 = vcombine.high %v347_v54, %v351_v55  ;;  %v354_v58 = vld [vmem:[%s6109_s1 + $0xa50] sm:$0xff] }
 0x187   :  { %3518 = vmatprep.subr.bf16.mxu0 %v4243_v61  ;;  %3774 = vmatprep.subr.bf16.mxu1 %v4371_v62  ;;  %v358_v61 = vld [vmem:[%s6109_s1 + $0xa70] sm:$0xff]  ;;  %v355_v62 = vld [vmem:[%s6109_s1 + $0xa58] sm:$0xff] }
 0x188   :  { %2378 = vmatprep.mubr.f32.mxu0 %v4915_v47  ;;  %2662 = vmatprep.mubr.f32.mxu1 %v4915_v47  ;;  %v315_v47 = vld [vmem:[%s6109_s1 + $0x918] sm:$0xff]  ;;  %v4259_v4 = vcombine.high %v354_v58, %v358_v61  ;;  %v4260_v10 = vcombine.low %v354_v58, %v358_v61  ;;  %v4388_v22 = vcombine.low %v355_v62, %v359_v0 }
 0x189   :  { %v4377_v21 = vcombine.high %v315_v47, %v319_v18  ;;  %v4378_v28 = vcombine.low %v315_v47, %v319_v18  ;;  %v415_v58 = vld [vmem:[%s6109_s1 + $0xc38] sm:$0xff] }
 0x18a   :  { %3520 = vmatpush1.bf16.msra.mxu0 %v4244_v31  ;;  %3776 = vmatpush1.bf16.msra.mxu1 %v4372_v5  ;;  %v4387_v31 = vcombine.high %v355_v62, %v359_v0  ;;  %v362_v5 = vld [vmem:[%s6109_s1 + $0xa90] sm:$0xff] }
 0x18b   :  { %3522 = vmatprep.subr.bf16.mxu0 %v4245_v6  ;;  %3778 = vmatprep.subr.bf16.mxu1 %v4373_v8  ;;  %v366_v6 = vld [vmem:[%s6109_s1 + $0xab0] sm:$0xff]  ;;  %v363_v8 = vld [vmem:[%s6109_s1 + $0xa98] sm:$0xff] }
 0x18c   :  { %v4261_v11 = vcombine.high %v362_v5, %v366_v6  ;;  %v4262_v17 = vcombine.low %v362_v5, %v366_v6  ;;  %v4390_v47 = vcombine.low %v363_v8, %v367_v9  ;;  %v423_v5 = vld [vmem:[%s6109_s1 + $0xc78] sm:$0xff] }
 0x18e   :  { %3524 = vmatpush1.bf16.msra.mxu0 %v4246_v12  ;;  %3780 = vmatpush1.bf16.msra.mxu1 %v4374_v13  ;;  %v4389_v12 = vcombine.high %v363_v8, %v367_v9  ;;  %v370_v13 = vld [vmem:[%s6109_s1 + $0xad0] sm:$0xff] }
 0x18f   :  { %3526 = vmatprep.subr.bf16.mxu0 %v4247_v14  ;;  %3782 = vmatprep.subr.bf16.mxu1 %v4375_v15  ;;  %v374_v14 = vld [vmem:[%s6109_s1 + $0xaf0] sm:$0xff]  ;;  %v371_v15 = vld [vmem:[%s6109_s1 + $0xad8] sm:$0xff] }
 0x190   :  { %v4263_v18 = vcombine.high %v370_v13, %v374_v14  ;;  %v4264_v24 = vcombine.low %v370_v13, %v374_v14  ;;  %v4392_v25 = vcombine.low %v371_v15, %v375_v16  ;;  %v431_v13 = vld [vmem:[%s6109_s1 + $0xcb8] sm:$0xff] }
 0x192   :  { %3528 = vmatpush1.bf16.msra.mxu0 %v4248_v19  ;;  %3784 = vmatpush1.bf16.msra.mxu1 %v4376_v20  ;;  %v4391_v19 = vcombine.high %v371_v15, %v375_v16  ;;  %v378_v20 = vld [vmem:[%s6109_s1 + $0xb10] sm:$0xff] }
 0x193   :  { %3530 = vmatprep.subr.bf16.mxu0 %v4249_v59  ;;  %3786 = vmatprep.subr.bf16.mxu1 %v4377_v21  ;;  %v382_v59 = vld [vmem:[%s6109_s1 + $0xb30] sm:$0xff]  ;;  %v379_v21 = vld [vmem:[%s6109_s1 + $0xb18] sm:$0xff] }
 0x194   :  { %v4265_v26 = vcombine.high %v378_v20, %v382_v59  ;;  %v4266_v34 = vcombine.low %v378_v20, %v382_v59  ;;  %v4394_v35 = vcombine.low %v379_v21, %v383_v23 }
 0x196   :  { %3532 = vmatpush1.bf16.msra.mxu0 %v4250_v27  ;;  %3788 = vmatpush1.bf16.msra.mxu1 %v4378_v28  ;;  %v4393_v27 = vcombine.high %v379_v21, %v383_v23  ;;  %v386_v28 = vld [vmem:[%s6109_s1 + $0xb50] sm:$0xff] }
 0x197   :  { %3534 = vmatprep.subr.bf16.mxu0 %v4251_v30  ;;  %3790 = vmatprep.subr.bf16.mxu1 %v4379_v32  ;;  %v390_v30 = vld [vmem:[%s6109_s1 + $0xb70] sm:$0xff]  ;;  %v387_v32 = vld [vmem:[%s6109_s1 + $0xb58] sm:$0xff] }
 0x198   :  { %v4267_v36 = vcombine.high %v386_v28, %v390_v30  ;;  %v4268_v43 = vcombine.low %v386_v28, %v390_v30  ;;  %v4396_v45 = vcombine.low %v387_v32, %v391_v33  ;;  %v2801_v28 = vsub.s32 1, %v4523_v44 }
 0x199   :  { %v2805_v30 = vsub.s32 2, %v4523_v44 }
 0x19a   :  { %3536 = vmatpush1.bf16.msra.mxu0 %v4252_v38  ;;  %3792 = vmatpush1.bf16.msra.mxu1 %v4380_v39  ;;  %v4395_v38 = vcombine.high %v387_v32, %v391_v33  ;;  %v394_v39 = vld [vmem:[%s6109_s1 + $0xb90] sm:$0xff]  ;;  %v2809_v32 = vsub.s32 3, %v4523_v44 }
 0x19b   :  { %3538 = vmatprep.subr.bf16.mxu0 %v4253_v40  ;;  %3794 = vmatprep.subr.bf16.mxu1 %v4381_v41  ;;  %v398_v40 = vld [vmem:[%s6109_s1 + $0xbb0] sm:$0xff]  ;;  %v395_v41 = vld [vmem:[%s6109_s1 + $0xb98] sm:$0xff] }
 0x19c   :  { %v4269_v46 = vcombine.high %v394_v39, %v398_v40  ;;  %v4270_v52 = vcombine.low %v394_v39, %v398_v40  ;;  %v4398_v54 = vcombine.low %v395_v41, %v399_v42  ;;  %v450_v39 = vld [vmem:[%s6109_s1 + $0xd50] sm:$0xff] }
 0x19d   :  { %v454_v40 = vld [vmem:[%s6109_s1 + $0xd70] sm:$0xff] }
 0x19e   :  { %3540 = vmatpush1.bf16.msra.mxu0 %v4254_v48  ;;  %3796 = vmatpush1.bf16.msra.mxu1 %v4382_v3  ;;  %v4397_v48 = vcombine.high %v395_v41, %v399_v42  ;;  %v402_v3 = vld [vmem:[%s6109_s1 + $0xbd0] sm:$0xff] }
 0x19f   :  { %3542 = vmatprep.subr.bf16.mxu0 %v4255_v49  ;;  %3798 = vmatprep.subr.bf16.mxu1 %v4383_v50  ;;  %v406_v49 = vld [vmem:[%s6109_s1 + $0xbf0] sm:$0xff]  ;;  %v403_v50 = vld [vmem:[%s6109_s1 + $0xbd8] sm:$0xff] }
 0x1a0   :  { %v4271_v55 = vcombine.high %v402_v3, %v406_v49  ;;  %v4272_v61 = vcombine.low %v402_v3, %v406_v49  ;;  %v4400_v62 = vcombine.low %v403_v50, %v407_v51 }
 0x1a2   :  { %3544 = vmatpush1.bf16.msra.mxu0 %v4256_v56  ;;  %3800 = vmatpush1.bf16.msra.mxu1 %v4384_v57  ;;  %v4399_v56 = vcombine.high %v403_v50, %v407_v51  ;;  %v410_v57 = vld [vmem:[%s6109_s1 + $0xc10] sm:$0xff]  ;;  %v4283_v50 = vcombine.high %v450_v39, %v454_v40 }
 0x1a3   :  { %3546 = vmatprep.subr.bf16.mxu0 %v4257_v29  ;;  %3802 = vmatprep.subr.bf16.mxu1 %v4385_v63  ;;  %v414_v29 = vld [vmem:[%s6109_s1 + $0xc30] sm:$0xff]  ;;  %v411_v63 = vld [vmem:[%s6109_s1 + $0xc18] sm:$0xff] }
 0x1a4   :  { %v4273_v0 = vcombine.high %v410_v57, %v414_v29  ;;  %v4274_v6 = vcombine.low %v410_v57, %v414_v29  ;;  %v4402_v8 = vcombine.low %v411_v63, %v415_v58  ;;  %v459_v57 = vld [vmem:[%s6109_s1 + $0xd98] sm:$0xff] }
 0x1a5   :  { %v463_v29 = vld [vmem:[%s6109_s1 + $0xdb8] sm:$0xff] }
 0x1a6   :  { %3548 = vmatpush1.bf16.msra.mxu0 %v4258_v1  ;;  %3804 = vmatpush1.bf16.msra.mxu1 %v4386_v2  ;;  %v4401_v1 = vcombine.high %v411_v63, %v415_v58  ;;  %v418_v2 = vld [vmem:[%s6109_s1 + $0xc50] sm:$0xff]  ;;  %v4284_v63 = vcombine.low %v450_v39, %v454_v40 }
 0x1a7   :  { %3550 = vmatprep.subr.bf16.mxu0 %v4259_v4  ;;  %3806 = vmatprep.subr.bf16.mxu1 %v4387_v31  ;;  %v422_v4 = vld [vmem:[%s6109_s1 + $0xc70] sm:$0xff]  ;;  %v419_v31 = vld [vmem:[%s6109_s1 + $0xc58] sm:$0xff] }
 0x1a8   :  { %v4275_v9 = vcombine.high %v418_v2, %v422_v4  ;;  %v4276_v14 = vcombine.low %v418_v2, %v422_v4  ;;  %v4404_v15 = vcombine.low %v419_v31, %v423_v5  ;;  %v470_v2 = vld [vmem:[%s6109_s1 + $0xdf0] sm:$0xff] }
 0x1a9   :  { %v490_v39 = vld [vmem:[%s6109_s1 + $0xe90] sm:$0xff] }
 0x1aa   :  { %3552 = vmatpush1.bf16.msra.mxu0 %v4260_v10  ;;  %3808 = vmatpush1.bf16.msra.mxu1 %v4388_v22  ;;  %v4403_v10 = vcombine.high %v419_v31, %v423_v5  ;;  %v426_v22 = vld [vmem:[%s6109_s1 + $0xc90] sm:$0xff] }
 0x1ab   :  { %3554 = vmatprep.subr.bf16.mxu0 %v4261_v11  ;;  %3810 = vmatprep.subr.bf16.mxu1 %v4389_v12  ;;  %v430_v11 = vld [vmem:[%s6109_s1 + $0xcb0] sm:$0xff]  ;;  %v427_v12 = vld [vmem:[%s6109_s1 + $0xc98] sm:$0xff] }
 0x1ac   :  { %v4277_v16 = vcombine.high %v426_v22, %v430_v11  ;;  %v4278_v20 = vcombine.low %v426_v22, %v430_v11  ;;  %v4406_v59 = vcombine.low %v427_v12, %v431_v13  ;;  %v494_v40 = vld [vmem:[%s6109_s1 + $0xeb0] sm:$0xff] }
 0x1ae   :  { %3556 = vmatpush1.bf16.msra.mxu0 %v4262_v17  ;;  %3812 = vmatpush1.bf16.msra.mxu1 %v4390_v47  ;;  %v4405_v17 = vcombine.high %v427_v12, %v431_v13  ;;  %v434_v47 = vld [vmem:[%s6109_s1 + $0xcd0] sm:$0xff]  ;;  %v4414_v13 = vcombine.low %v459_v57, %v463_v29 }
 0x1af   :  { %3558 = vmatprep.subr.bf16.mxu0 %v4263_v18  ;;  %3814 = vmatprep.subr.bf16.mxu1 %v4391_v19  ;;  %v438_v18 = vld [vmem:[%s6109_s1 + $0xcf0] sm:$0xff]  ;;  %v439_v19 = vld [vmem:[%s6109_s1 + $0xcf8] sm:$0xff] }
 0x1b0   :  { %v4279_v21 = vcombine.high %v434_v47, %v438_v18  ;;  %v4280_v33 = vcombine.low %v434_v47, %v438_v18  ;;  %v478_v47 = vld [vmem:[%s6109_s1 + $0xe30] sm:$0xff] }
 0x1b2   :  { %3560 = vmatpush1.bf16.msra.mxu0 %v4264_v24  ;;  %3816 = vmatpush1.bf16.msra.mxu1 %v4392_v25  ;;  %v442_v24 = vld [vmem:[%s6109_s1 + $0xd10] sm:$0xff] }
 0x1b3   :  { %3562 = vmatprep.subr.bf16.mxu0 %v4265_v26  ;;  %3818 = vmatprep.subr.bf16.mxu1 %v4393_v27  ;;  %v446_v25 = vld [vmem:[%s6109_s1 + $0xd30] sm:$0xff]  ;;  %v447_v26 = vld [vmem:[%s6109_s1 + $0xd38] sm:$0xff]  ;;  %v2797_v27 = vsub.s32 0, %v4523_v44 }
 0x1b4   :  { %v4282_v3 = vcombine.low %v442_v24, %v446_v25 }
 0x1b6   :  { %3564 = vmatpush1.bf16.msra.mxu0 %v4266_v34  ;;  %3820 = vmatpush1.bf16.msra.mxu1 %v4394_v35  ;;  %v5947_v34 = vld [vmem:[%s6111_s2] sm:$0xff] }
 0x1b7   :  { %3566 = vmatprep.subr.bf16.mxu0 %v4267_v36  ;;  %3822 = vmatprep.subr.bf16.mxu1 %v4395_v38  ;;  %v4281_v36 = vcombine.high %v442_v24, %v446_v25  ;;  %v2798_v41 = vrot.slane %v5947_v34, %v2797_v27  ;;  %v2802_v42 = vrot.slane %v5947_v34, %v2801_v28  ;;  %v483_v28 = vld [vmem:[%s6109_s1 + $0xe58] sm:$0xff] }
 0x1ba   :  { %3568 = vmatpush1.bf16.msra.mxu0 %v4268_v43  ;;  %3824 = vmatpush1.bf16.msra.mxu1 %v4396_v45  ;;  %v2806_v43 = vrot.slane %v5947_v34, %v2805_v30  ;;  %v2810_v45 = vrot.slane %v5947_v34, %v2809_v32  ;;  %v487_v30 = vld [vmem:[%s6109_s1 + $0xe78] sm:$0xff] }
 0x1bb   :  { %3570 = vmatprep.subr.bf16.mxu0 %v4269_v46  ;;  %3826 = vmatprep.subr.bf16.mxu1 %v4397_v48  ;;  %v451_v46 = vld [vmem:[%s6109_s1 + $0xd58] sm:$0xff] }
 0x1bc   :  { %v455_v48 = vld [vmem:[%s6109_s1 + $0xd78] sm:$0xff] }
 0x1bd   :  { %v4411_v51 = vcombine.high %v451_v46, %v455_v48  ;;  %v4412_v58 = vcombine.low %v451_v46, %v455_v48  ;;  %v4293_v46 = vcombine.high %v490_v39, %v494_v40 }
 0x1be   :  { %3572 = vmatpush1.bf16.msra.mxu0 %v4270_v52  ;;  %3828 = vmatpush1.bf16.msra.mxu1 %v4398_v54  ;;  %v458_v52 = vld [vmem:[%s6109_s1 + $0xd90] sm:$0xff] }
 0x1bf   :  { %3574 = vmatprep.subr.bf16.mxu0 %v4271_v55  ;;  %3830 = vmatprep.subr.bf16.mxu1 %v4399_v56  ;;  %v462_v54 = vld [vmem:[%s6109_s1 + $0xdb0] sm:$0xff]  ;;  %v2827_v55 = vcombine.low %v2798_v41, %v2802_v42  ;;  %v2828_v56 = vcombine.low %v2806_v43, %v2810_v45  ;;  %v491_v41 = vld [vmem:[%s6109_s1 + $0xe98] sm:$0xff]  ;;  %v4420_v45 = vcombine.low %v483_v28, %v487_v30 }
 0x1c0   :  { %v4286_v11 = vcombine.low %v458_v52, %v462_v54  ;;  %v495_v42 = vld [vmem:[%s6109_s1 + $0xeb8] sm:$0xff] }
 0x1c1   :  { %v2835_v5 = vrot.slane %v2827_v55, %v4538_v53  ;;  %v4421_v48 = vcombine.high %v491_v41, %v495_v42 }
 0x1c2   :  { %3576 = vmatpush1.bf16.msra.mxu0 %v4272_v61  ;;  %3832 = vmatpush1.bf16.msra.mxu1 %v4400_v62  ;;  %v4285_v61 = vcombine.high %v458_v52, %v462_v54  ;;  %v4294_v52 = vcombine.low %v490_v39, %v494_v40  ;;  %v4422_v54 = vcombine.low %v491_v41, %v495_v42 }
 0x1c3   :  { %3578 = vmatprep.subr.bf16.mxu0 %v4273_v0  ;;  %3834 = vmatprep.subr.bf16.mxu1 %v4401_v1  ;;  %v4413_v0 = vcombine.high %v459_v57, %v463_v29  ;;  %v466_v1 = vld [vmem:[%s6109_s1 + $0xdd0] sm:$0xff] }
 0x1c4   :  { %v506_v57 = vld [vmem:[%s6109_s1 + $0xf10] sm:$0xff] }
 0x1c5   :  { %2379 = vmatmul.mubr.f32.vlgmr.msra.gmra.mrb[2].mxu0 %v4899_v37  ;;  %2663 = vmatmul.mubr.f32.vlgmr.msra.gmra.mrb[2].mxu1 %v4899_v37  ;;  %v435_v37 = vld [vmem:[%s6109_s1 + $0xcd8] sm:$0xff]  ;;  %v510_v29 = vld [vmem:[%s6109_s1 + $0xf30] sm:$0xff] }
 0x1c6   :  { %3580 = vmatpush1.bf16.msra.mxu0 %v4274_v6  ;;  %3836 = vmatpush1.bf16.msra.mxu1 %v4402_v8  ;;  %v4407_v23 = vcombine.high %v435_v37, %v439_v19  ;;  %v4408_v35 = vcombine.low %v435_v37, %v439_v19  ;;  %v2842_v6 = vrot.slane %v2828_v56, %v4538_v53  ;;  %v467_v8 = vld [vmem:[%s6109_s1 + $0xdd8] sm:$0xff] }
 0x1c7   :  { %3582 = vmatprep.subr.bf16.mxu0 %v4275_v9  ;;  %3838 = vmatprep.subr.bf16.mxu1 %v4403_v10  ;;  %v471_v9 = vld [vmem:[%s6109_s1 + $0xdf8] sm:$0xff] }
 0x1c8   :  { %2449 = vmatprep.mubr.f32.mxu0 %v5120_v7  ;;  %2733 = vmatprep.mubr.f32.mxu1 %v5120_v7  ;;  %v443_v7 = vld [vmem:[%s6109_s1 + $0xd18] sm:$0xff]  ;;  %v2843_v37 = vcombine.low %v2835_v5, %v2842_v6  ;;  %v4298_v6 = vcombine.low %v506_v57, %v510_v29 }
 0x1c9   :  { %v4409_v38 = vcombine.high %v443_v7, %v447_v26  ;;  %v4410_v49 = vcombine.low %v443_v7, %v447_v26  ;;  %v475_v19 = vld [vmem:[%s6109_s1 + $0xe18] sm:$0xff]  ;;  %v482_v7 = vld [vmem:[%s6109_s1 + $0xe50] sm:$0xff] }
 0x1ca   :  { %3584 = vmatpush1.bf16.msra.mxu0 %v4276_v14  ;;  %3840 = vmatpush1.bf16.msra.mxu1 %v4404_v15  ;;  %v4287_v14 = vcombine.high %v466_v1, %v470_v2  ;;  %v486_v26 = vld [vmem:[%s6109_s1 + $0xe70] sm:$0xff]  ;;  %v519_v5 = vld [vmem:[%s6109_s1 + $0xf78] sm:$0xff] }
 0x1cb   :  { %3586 = vmatprep.subr.bf16.mxu0 %v4277_v16  ;;  %3842 = vmatprep.subr.bf16.mxu1 %v4405_v17  ;;  %v4415_v16 = vcombine.high %v467_v8, %v471_v9  ;;  %v474_v17 = vld [vmem:[%s6109_s1 + $0xe10] sm:$0xff]  ;;  %v4292_v43 = vcombine.low %v482_v7, %v486_v26 }
 0x1cc   :  { %v4289_v24 = vcombine.high %v474_v17, %v478_v47  ;;  %v4290_v32 = vcombine.low %v474_v17, %v478_v47  ;;  %v530_v47 = vld [vmem:[%s6109_s1 + $0xfd0] sm:$0xff] }
 0x1ce   :  { %3588 = vmatpush1.bf16.msra.mxu0 %v4278_v20  ;;  %3844 = vmatpush1.bf16.msra.mxu1 %v4406_v59  ;;  %v479_v20 = vld [vmem:[%s6109_s1 + $0xe38] sm:$0xff]  ;;  %v4288_v59 = vcombine.low %v466_v1, %v470_v2  ;;  %v514_v2 = vld [vmem:[%s6109_s1 + $0xf50] sm:$0xff] }
 0x1cf   :  { %3590 = vmatprep.subr.bf16.mxu0 %v4279_v21  ;;  %3846 = vmatprep.subr.bf16.mxu1 %v4407_v23  ;;  %v4416_v23 = vcombine.low %v467_v8, %v471_v9  ;;  %v4417_v25 = vcombine.high %v475_v19, %v479_v20 }
 0x1d2   :  { %3592 = vmatpush1.bf16.msra.mxu0 %v4280_v33  ;;  %3848 = vmatpush1.bf16.msra.mxu1 %v4408_v35  ;;  %v4418_v35 = vcombine.low %v475_v19, %v479_v20  ;;  %v535_v19 = vld [vmem:[%s6109_s1 + $0xff8] sm:$0xff] }
 0x1d3   :  { %3594 = vmatprep.subr.bf16.mxu0 %v4281_v36  ;;  %3850 = vmatprep.subr.bf16.mxu1 %v4409_v38  ;;  %v4291_v36 = vcombine.high %v482_v7, %v486_v26  ;;  %v4419_v38 = vcombine.high %v483_v28, %v487_v30  ;;  %v2813_v7 = vsub.s32 4, %v4523_v44  ;;  %v2817_v26 = vsub.s32 5, %v4523_v44 }
 0x1d4   :  { %v2825_v28 = vsub.s32 7, %v4523_v44 }
 0x1d5   :  { %v2814_v30 = vrot.slane %v5947_v34, %v2813_v7 }
 0x1d6   :  { %3596 = vmatpush1.bf16.msra.mxu0 %v4282_v3  ;;  %3852 = vmatpush1.bf16.msra.mxu1 %v4410_v49  ;;  %v498_v3 = vld [vmem:[%s6109_s1 + $0xed0] sm:$0xff] }
 0x1d7   :  { %3598 = vmatprep.subr.bf16.mxu0 %v4283_v50  ;;  %3854 = vmatprep.subr.bf16.mxu1 %v4411_v51  ;;  %v502_v49 = vld [vmem:[%s6109_s1 + $0xef0] sm:$0xff]  ;;  %v499_v50 = vld [vmem:[%s6109_s1 + $0xed8] sm:$0xff] }
 0x1d8   :  { %v1883_v62 = vpop.f32.mrb[0].mxu0  ;;  %v2167_v4 = vpop.f32.mrb[0].mxu1  ;;  %v503_v51 = vld [vmem:[%s6109_s1 + $0xef8] sm:$0xff]  ;;  %v4295_v55 = vcombine.high %v498_v3, %v502_v49 }
 0x1d9   :  { %v1885_v31 = vpop.f32.mrb[1].mxu0  ;;  %v2169_v22 = vpop.f32.mrb[1].mxu1  ;;  %v4423_v56 = vcombine.high %v499_v50, %v503_v51 }
 0x1da   :  { %v2748_v10 = vcombine.low %v1883_v62, %v1885_v31  ;;  %3600 = vmatpush1.bf16.msra.mxu0 %v4284_v63  ;;  %v2749_v12 = vcombine.low %v2167_v4, %v2169_v22  ;;  %3856 = vmatpush1.bf16.msra.mxu1 %v4412_v58  ;;  %v507_v63 = vld [vmem:[%s6109_s1 + $0xf18] sm:$0xff]  ;;  %v4424_v62 = vcombine.low %v499_v50, %v503_v51  ;;  %v518_v4 = vld [vmem:[%s6109_s1 + $0xf70] sm:$0xff] }
 0x1db   :  { %3602 = vmatprep.subr.bf16.mxu0 %v4285_v61  ;;  %3858 = vmatprep.subr.bf16.mxu1 %v4413_v0  ;;  %v511_v58 = vld [vmem:[%s6109_s1 + $0xf38] sm:$0xff]  ;;  %v4296_v61 = vcombine.low %v498_v3, %v502_v49  ;;  %v4297_v0 = vcombine.high %v506_v57, %v510_v29  ;;  %v4299_v9 = vcombine.high %v514_v2, %v518_v4  ;;  %v522_v22 = vld [vmem:[%s6109_s1 + $0xf90] sm:$0xff] }
 0x1dc   :  { %v2756_v15 = vrot.slane %v2748_v10, %v4538_v53  ;;  %v2763_v18 = vrot.slane %v2749_v12, %v4538_v53  ;;  %v4425_v1 = vcombine.high %v507_v63, %v511_v58  ;;  %v515_v31 = vld [vmem:[%s6109_s1 + $0xf58] sm:$0xff]  ;;  %v4426_v8 = vcombine.low %v507_v63, %v511_v58 }
 0x1dd   :  { %v4427_v10 = vcombine.high %v515_v31, %v519_v5  ;;  %v523_v12 = vld [vmem:[%s6109_s1 + $0xf98] sm:$0xff] }
 0x1de   :  { %3604 = vmatpush1.bf16.msra.mxu0 %v4286_v11  ;;  %v2764_v21 = vcombine.low %v2756_v15, %v2763_v18  ;;  %3860 = vmatpush1.bf16.msra.mxu1 %v4414_v13  ;;  %v526_v11 = vld [vmem:[%s6109_s1 + $0xfb0] sm:$0xff]  ;;  %v527_v13 = vld [vmem:[%s6109_s1 + $0xfb8] sm:$0xff]  ;;  %v4428_v15 = vcombine.low %v515_v31, %v519_v5 }
 0x1df   :  { %3606 = vmatprep.subr.bf16.mxu0 %v4287_v14  ;;  %3862 = vmatprep.subr.bf16.mxu1 %v4415_v16  ;;  %v4300_v14 = vcombine.low %v514_v2, %v518_v4  ;;  %v4301_v16 = vcombine.high %v522_v22, %v526_v11  ;;  %v4429_v17 = vcombine.high %v523_v12, %v527_v13  ;;  %v534_v18 = vld [vmem:[%s6109_s1 + $0xff0] sm:$0xff] }
 0x1e0   :  { %v2863_v27 = vadd.f32 %v2843_v37, %v2764_v21  ;;  %v531_v37 = vld [vmem:[%s6109_s1 + $0xfd8] sm:$0xff]  ;;  %v4302_v20 = vcombine.low %v522_v22, %v526_v11  ;;  %v4303_v21 = vcombine.high %v530_v47, %v534_v18 }
 0x1e2   :  { %3608 = vmatpush1.bf16.msra.mxu0 %v4288_v59  ;;  %v2865_v33 = vmax.f32 %v2863_v27, 0.0  ;;  %3864 = vmatpush1.bf16.msra.mxu1 %v4416_v23  ;;  %v4430_v59 = vcombine.low %v523_v12, %v527_v13  ;;  %v4431_v23 = vcombine.high %v531_v37, %v535_v19  ;;  %v2821_v27 = vsub.s32 6, %v4523_v44 }
 0x1e3   :  { %3610 = vmatprep.subr.bf16.mxu0 %v4289_v24  ;;  %3866 = vmatprep.subr.bf16.mxu1 %v4417_v25  ;;  %v4304_v24 = vcombine.low %v530_v47, %v534_v18  ;;  %v4432_v25 = vcombine.low %v531_v37, %v535_v19 }
 0x1e4   :  { %2867 = vst [vmem:[%s6112_s3] sm:$0xff] %v2865_v33  ;;  %v2822_v33 = vrot.slane %v5947_v34, %v2821_v27 }
 0x1e6   :  { %3612 = vmatpush1.bf16.msra.mxu0 %v4290_v32  ;;  %3868 = vmatpush1.bf16.msra.mxu1 %v4418_v35  ;;  %v2818_v32 = vrot.slane %v5947_v34, %v2817_v26  ;;  %v2826_v35 = vrot.slane %v5947_v34, %v2825_v28 }
 0x1e7   :  { %3614 = vmatprep.subr.bf16.mxu0 %v4291_v36  ;;  %3870 = vmatprep.subr.bf16.mxu1 %v4419_v38 }
 0x1e8   :  { %v2844_v36 = vcombine.low %v2814_v30, %v2818_v32  ;;  %v2845_v38 = vcombine.low %v2822_v33, %v2826_v35 }
 0x1ea   :  { %3616 = vmatpush1.bf16.msra.mxu0 %v4292_v43  ;;  %3872 = vmatpush1.bf16.msra.mxu1 %v4420_v45  ;;  %v2852_v41 = vrot.slane %v2844_v36, %v4538_v53  ;;  %v2859_v42 = vrot.slane %v2845_v38, %v4538_v53 }
 0x1eb   :  { %3618 = vmatprep.subr.bf16.mxu0 %v4293_v46  ;;  %3874 = vmatprep.subr.bf16.mxu1 %v4421_v48 }
 0x1ec   :  { %v2860_v3 = vcombine.low %v2852_v41, %v2859_v42 }
 0x1ee   :  { %3620 = vmatpush1.bf16.msra.mxu0 %v4294_v52  ;;  %3876 = vmatpush1.bf16.msra.mxu1 %v4422_v54 }
 0x1ef   :  { %3622 = vmatprep.subr.bf16.mxu0 %v4295_v55  ;;  %3878 = vmatprep.subr.bf16.mxu1 %v4423_v56 }
 0x1f2   :  { %3624 = vmatpush1.bf16.msra.mxu0 %v4296_v61  ;;  %3880 = vmatpush1.bf16.msra.mxu1 %v4424_v62 }
 0x1f3   :  { %3626 = vmatprep.subr.bf16.mxu0 %v4297_v0  ;;  %3882 = vmatprep.subr.bf16.mxu1 %v4425_v1 }
 0x1f6   :  { %3628 = vmatpush1.bf16.msra.mxu0 %v4298_v6  ;;  %3884 = vmatpush1.bf16.msra.mxu1 %v4426_v8 }
 0x1f7   :  { %3630 = vmatprep.subr.bf16.mxu0 %v4299_v9  ;;  %3886 = vmatprep.subr.bf16.mxu1 %v4427_v10 }
 0x1fa   :  { %3632 = vmatpush1.bf16.msra.mxu0 %v4300_v14  ;;  %3888 = vmatpush1.bf16.msra.mxu1 %v4428_v15 }
 0x1fb   :  { %3634 = vmatprep.subr.bf16.mxu0 %v4301_v16  ;;  %3890 = vmatprep.subr.bf16.mxu1 %v4429_v17 }
 0x1fe   :  { %3636 = vmatpush1.bf16.msra.mxu0 %v4302_v20  ;;  %3892 = vmatpush1.bf16.msra.mxu1 %v4430_v59 }
 0x1ff   :  { %3638 = vmatprep.subr.bf16.mxu0 %v4303_v21  ;;  %3894 = vmatprep.subr.bf16.mxu1 %v4431_v23 }
 0x202   :  { %3640 = vmatpush1.bf16.msra.mxu0 %v4304_v24  ;;  %3896 = vmatpush1.bf16.msra.mxu1 %v4432_v25 }
 0x205   :  { %2450 = vmatmul.mubr.f32.vlgmr.msra.gmra.mrb[2].mxu0 %v5104_v60  ;;  %2734 = vmatmul.mubr.f32.vlgmr.msra.gmra.mrb[2].mxu1 %v5104_v60 }
 0x2d8   :  { %v2451_v39 = vpop.f32.mrb[2].mxu0  ;;  %v2735_v60 = vpop.f32.mrb[2].mxu1 }
 0x2d9   :  { %v2453_v40 = vpop.f32.mrb[3].mxu0  ;;  %v2737_v45 = vpop.f32.mrb[3].mxu1 }
 0x2da   :  { %v2765_v43 = vcombine.low %v2451_v39, %v2453_v40  ;;  %v2766_v44 = vcombine.low %v2735_v60, %v2737_v45 }
 0x2dc   :  { %v2773_v46 = vrot.slane %v2765_v43, %v4538_v53  ;;  %v2780_v48 = vrot.slane %v2766_v44, %v4538_v53 }
 0x2de   :  { %v2781_v49 = vcombine.low %v2773_v46, %v2780_v48 }
 0x2e0   :  { %v2864_v50 = vadd.f32 %v2860_v3, %v2781_v49 }
 0x2e2   :  { %v2866_v34 = vmax.f32 %v2864_v50, 0.0 }
 0x2e4   :  { %2868 = vst [vmem:[%s6112_s3 + $0x8] sm:$0xff] %v2866_v34 }

// kernel: critic_forward.7
= control target key start
LH: loop header
LB: loop body
LE: loop exit
PB: predicated region body
PF: predicated region fallthrough
CT: control target
= control target key end

     0   :  { %v2221_v3 = vmov 0.0   ;;  %vm547_vm0 = vcmask 64512   ;;  %vm1546_vm1 = vcmask 1024   ;;  %s4068_s3 = inlined_call_operand.vmem [shape: f32[8,512], index: 3, kind: input, shape index: {}]   ;;  %s4069_s2 = inlined_call_operand.vmem [shape: f32[1024,512], index: 2, kind: input, shape index: {}]   ;;  %s4070_s1 = inlined_call_operand.vmem [shape: f32[2,8], index: 1, kind: input, shape index: {}]   ;;  %s4071_s0 = inlined_call_operand.vmem [shape: f32[2,1024], index: 0, kind: input, shape index: {}]   ;;  %s4072_s5 = inlined_call_operand.vmem [shape: f32[512,1], index: 5, kind: input, shape index: {}]   ;;  %s4073_s4 = inlined_call_operand.vmem [shape: f32[1,512], index: 4, kind: input, shape index: {}]   ;;  %s4074_s6 = inlined_call_operand.<no memory space> [shape: f32[1,1], index: 6, kind: input, shape index: {}]   ;;  %s4075_s7 = inlined_call_operand.vmem [shape: f32[2,1], index: 7, kind: output, shape index: {}]  }
   0x1   :  { %v544_v0 = vld [vmem:[%s4068_s3 + $0x8] sm:$0xff]  ;;  %v546_v1 = vld [vmem:[%s4068_s3 + $0x18] sm:$0xff]  ;;  %v543_v2 = vld [vmem:[%s4068_s3] sm:$0xff]  ;;  %615 = vmatprep.mubr.f32.mxu0 %v2221_v3  ;;  %686 = vmatprep.mubr.f32.mxu1 %v2221_v3 }
   0x2   :  { %551 = vmatprep.subr.mxu0 %v544_v0  ;;  %622 = vmatprep.subr.mxu1 %v546_v1  ;;  %v545_v4 = vld [vmem:[%s4068_s3 + $0x10] sm:$0xff]  ;;  %v31_v5 = vld [vmem:[%s4069_s2 + $0x8] sm:$0xff]  ;;  %v33_v8 = vld [vmem:[%s4069_s2 + $0x18] sm:$0xff] }
   0x3   :  { %v35_v6 = vld [vmem:[%s4069_s2 + $0x28] sm:$0xff]  ;;  %552 = vmatpush1.msra.mxu0 %v543_v2  ;;  %623 = vmatpush1.msra.mxu1 %v545_v4  ;;  %v37_v9 = vld [vmem:[%s4069_s2 + $0x38] sm:$0xff]  ;;  %v542_v10 = vld [vmem:[%s4070_s1] sm:$0x3] }
   0x4   :  { %v1625_v7 = vpack.c.bf16 %v35_v6, %v31_v5  ;;  %v1881_v11 = vpack.c.bf16 %v37_v9, %v33_v8  ;;  %1552 = vmatmul.mubr.msk.f32.vlgmr.msra.gmra.mrb[0].mxu0 %vm547_vm0, %v542_v10  ;;  %1553 = vmatmul.mubr.msk.f32.vlgmr.msra.gmra.mrb[0].mxu1 %vm547_vm0, %v542_v10  ;;  %v30_v12 = vld [vmem:[%s4069_s2] sm:$0xff]  ;;  %v32_v14 = vld [vmem:[%s4069_s2 + $0x10] sm:$0xff]  ;;  %v39_v17 = vld [vmem:[%s4069_s2 + $0x48] sm:$0xff] }
   0x5   :  { %v34_v13 = vld [vmem:[%s4069_s2 + $0x20] sm:$0xff]  ;;  %v36_v16 = vld [vmem:[%s4069_s2 + $0x30] sm:$0xff]  ;;  %v43_v18 = vld [vmem:[%s4069_s2 + $0x68] sm:$0xff] }
   0x6   :  { %1626 = vmatprep.subr.bf16.mxu0 %v1625_v7  ;;  %v1627_v15 = vpack.c.bf16 %v34_v13, %v30_v12  ;;  %1882 = vmatprep.subr.bf16.mxu1 %v1881_v11  ;;  %v1883_v19 = vpack.c.bf16 %v36_v16, %v32_v14  ;;  %v1629_v20 = vpack.c.bf16 %v43_v18, %v39_v17  ;;  %v41_v21 = vld [vmem:[%s4069_s2 + $0x58] sm:$0xff]  ;;  %v38_v23 = vld [vmem:[%s4069_s2 + $0x40] sm:$0xff]  ;;  %v40_v26 = vld [vmem:[%s4069_s2 + $0x50] sm:$0xff] }
   0x7   :  { %v45_v22 = vld [vmem:[%s4069_s2 + $0x78] sm:$0xff]  ;;  %v42_v25 = vld [vmem:[%s4069_s2 + $0x60] sm:$0xff]  ;;  %v44_v27 = vld [vmem:[%s4069_s2 + $0x70] sm:$0xff] }
   0x8   :  { %1628 = vmatpush1.bf16.msra.mxu0 %v1627_v15  ;;  %v1885_v24 = vpack.c.bf16 %v45_v22, %v41_v21  ;;  %1884 = vmatpush1.bf16.msra.mxu1 %v1883_v19  ;;  %v1631_v28 = vpack.c.bf16 %v42_v25, %v38_v23  ;;  %v1887_v29 = vpack.c.bf16 %v44_v27, %v40_v26  ;;  %v47_v30 = vld [vmem:[%s4069_s2 + $0x88] sm:$0xff]  ;;  %v49_v32 = vld [vmem:[%s4069_s2 + $0x98] sm:$0xff]  ;;  %v46_v35 = vld [vmem:[%s4069_s2 + $0x80] sm:$0xff] }
   0x9   :  { %1630 = vmatprep.subr.bf16.mxu0 %v1629_v20  ;;  %v51_v31 = vld [vmem:[%s4069_s2 + $0xa8] sm:$0xff]  ;;  %v53_v34 = vld [vmem:[%s4069_s2 + $0xb8] sm:$0xff]  ;;  %v50_v36 = vld [vmem:[%s4069_s2 + $0xa0] sm:$0xff] }
   0xa   :  { %1886 = vmatprep.subr.bf16.mxu1 %v1885_v24  ;;  %v1633_v33 = vpack.c.bf16 %v51_v31, %v47_v30  ;;  %v1889_v37 = vpack.c.bf16 %v53_v34, %v49_v32  ;;  %v48_v38 = vld [vmem:[%s4069_s2 + $0x90] sm:$0xff]  ;;  %v55_v40 = vld [vmem:[%s4069_s2 + $0xc8] sm:$0xff]  ;;  %v1635_v41 = vpack.c.bf16 %v50_v36, %v46_v35  ;;  %v57_v43 = vld [vmem:[%s4069_s2 + $0xd8] sm:$0xff] }
   0xb   :  { %v52_v39 = vld [vmem:[%s4069_s2 + $0xb0] sm:$0xff]  ;;  %v59_v42 = vld [vmem:[%s4069_s2 + $0xe8] sm:$0xff]  ;;  %v61_v44 = vld [vmem:[%s4069_s2 + $0xf8] sm:$0xff] }
   0xc   :  { %1632 = vmatpush1.bf16.msra.mxu0 %v1631_v28  ;;  %1888 = vmatpush1.bf16.msra.mxu1 %v1887_v29  ;;  %v1891_v45 = vpack.c.bf16 %v52_v39, %v48_v38  ;;  %v1637_v46 = vpack.c.bf16 %v59_v42, %v55_v40  ;;  %v54_v47 = vld [vmem:[%s4069_s2 + $0xc0] sm:$0xff]  ;;  %v56_v49 = vld [vmem:[%s4069_s2 + $0xd0] sm:$0xff]  ;;  %v1893_v50 = vpack.c.bf16 %v61_v44, %v57_v43  ;;  %v63_v52 = vld [vmem:[%s4069_s2 + $0x108] sm:$0xff] }
   0xd   :  { %1634 = vmatprep.subr.bf16.mxu0 %v1633_v33  ;;  %v58_v48 = vld [vmem:[%s4069_s2 + $0xe0] sm:$0xff]  ;;  %1890 = vmatprep.subr.bf16.mxu1 %v1889_v37  ;;  %v60_v51 = vld [vmem:[%s4069_s2 + $0xf0] sm:$0xff]  ;;  %v67_v53 = vld [vmem:[%s4069_s2 + $0x128] sm:$0xff] }
   0xe   :  { %v65_v54 = vld [vmem:[%s4069_s2 + $0x118] sm:$0xff]  ;;  %v1639_v56 = vpack.c.bf16 %v58_v48, %v54_v47  ;;  %v1895_v57 = vpack.c.bf16 %v60_v51, %v56_v49  ;;  %v1641_v58 = vpack.c.bf16 %v67_v53, %v63_v52  ;;  %v62_v59 = vld [vmem:[%s4069_s2 + $0x100] sm:$0xff]  ;;  %v64_v61 = vld [vmem:[%s4069_s2 + $0x110] sm:$0xff]  ;;  %v2222_v52 = vmov 1983009808  }
   0xf   :  { %v69_v55 = vld [vmem:[%s4069_s2 + $0x138] sm:$0xff]  ;;  %v66_v60 = vld [vmem:[%s4069_s2 + $0x120] sm:$0xff]  ;;  %v68_v63 = vld [vmem:[%s4069_s2 + $0x130] sm:$0xff]  ;;  %v697_v53 = vunpack.c.l.s4 %v2222_v52 }
  0x10   :  { %1636 = vmatpush1.bf16.msra.mxu0 %v1635_v41  ;;  %1892 = vmatpush1.bf16.msra.mxu1 %v1891_v45  ;;  %v1897_v62 = vpack.c.bf16 %v69_v55, %v65_v54  ;;  %v71_v0 = vld [vmem:[%s4069_s2 + $0x148] sm:$0xff]  ;;  %v73_v2 = vld [vmem:[%s4069_s2 + $0x158] sm:$0xff]  ;;  %v1643_v4 = vpack.c.bf16 %v66_v60, %v62_v59  ;;  %v1899_v5 = vpack.c.bf16 %v68_v63, %v64_v61  ;;  %v70_v7 = vld [vmem:[%s4069_s2 + $0x140] sm:$0xff]  ;;  %v699_v54 = vlaneseq }
  0x11   :  { %1638 = vmatprep.subr.bf16.mxu0 %v1637_v46  ;;  %1894 = vmatprep.subr.bf16.mxu1 %v1893_v50  ;;  %v75_v1 = vld [vmem:[%s4069_s2 + $0x168] sm:$0xff]  ;;  %v77_v3 = vld [vmem:[%s4069_s2 + $0x178] sm:$0xff]  ;;  %v74_v8 = vld [vmem:[%s4069_s2 + $0x160] sm:$0xff] }
  0x12   :  { %v1645_v6 = vpack.c.bf16 %v75_v1, %v71_v0  ;;  %v72_v9 = vld [vmem:[%s4069_s2 + $0x150] sm:$0xff]  ;;  %v1901_v10 = vpack.c.bf16 %v77_v3, %v73_v2  ;;  %v79_v12 = vld [vmem:[%s4069_s2 + $0x188] sm:$0xff]  ;;  %v81_v14 = vld [vmem:[%s4069_s2 + $0x198] sm:$0xff]  ;;  %v1647_v16 = vpack.c.bf16 %v74_v8, %v70_v7  ;;  %v698_v3 = vunpack.c.0.s8 %v697_v53 }
  0x13   :  { %v76_v11 = vld [vmem:[%s4069_s2 + $0x170] sm:$0xff]  ;;  %v83_v13 = vld [vmem:[%s4069_s2 + $0x1a8] sm:$0xff]  ;;  %v85_v15 = vld [vmem:[%s4069_s2 + $0x1b8] sm:$0xff] }
  0x14   :  { %1640 = vmatpush1.bf16.msra.mxu0 %v1639_v56  ;;  %1896 = vmatpush1.bf16.msra.mxu1 %v1895_v57  ;;  %v1903_v17 = vpack.c.bf16 %v76_v11, %v72_v9  ;;  %v1649_v18 = vpack.c.bf16 %v83_v13, %v79_v12  ;;  %v78_v19 = vld [vmem:[%s4069_s2 + $0x180] sm:$0xff]  ;;  %v80_v21 = vld [vmem:[%s4069_s2 + $0x190] sm:$0xff]  ;;  %v1905_v22 = vpack.c.bf16 %v85_v15, %v81_v14  ;;  %v87_v24 = vld [vmem:[%s4069_s2 + $0x1c8] sm:$0xff] }
  0x15   :  { %1642 = vmatprep.subr.bf16.mxu0 %v1641_v58  ;;  %1898 = vmatprep.subr.bf16.mxu1 %v1897_v62  ;;  %v82_v20 = vld [vmem:[%s4069_s2 + $0x1a0] sm:$0xff]  ;;  %v84_v23 = vld [vmem:[%s4069_s2 + $0x1b0] sm:$0xff]  ;;  %v91_v25 = vld [vmem:[%s4069_s2 + $0x1e8] sm:$0xff] }
  0x16   :  { %v89_v26 = vld [vmem:[%s4069_s2 + $0x1d8] sm:$0xff]  ;;  %v1651_v28 = vpack.c.bf16 %v82_v20, %v78_v19  ;;  %v1907_v29 = vpack.c.bf16 %v84_v23, %v80_v21  ;;  %v1653_v30 = vpack.c.bf16 %v91_v25, %v87_v24  ;;  %v86_v31 = vld [vmem:[%s4069_s2 + $0x1c0] sm:$0xff]  ;;  %v88_v33 = vld [vmem:[%s4069_s2 + $0x1d0] sm:$0xff] }
  0x17   :  { %v93_v27 = vld [vmem:[%s4069_s2 + $0x1f8] sm:$0xff]  ;;  %v90_v32 = vld [vmem:[%s4069_s2 + $0x1e0] sm:$0xff]  ;;  %v92_v35 = vld [vmem:[%s4069_s2 + $0x1f0] sm:$0xff] }
  0x18   :  { %1644 = vmatpush1.bf16.msra.mxu0 %v1643_v4  ;;  %1900 = vmatpush1.bf16.msra.mxu1 %v1899_v5  ;;  %v1909_v34 = vpack.c.bf16 %v93_v27, %v89_v26  ;;  %v95_v36 = vld [vmem:[%s4069_s2 + $0x208] sm:$0xff]  ;;  %v97_v38 = vld [vmem:[%s4069_s2 + $0x218] sm:$0xff]  ;;  %v1655_v40 = vpack.c.bf16 %v90_v32, %v86_v31  ;;  %v1911_v41 = vpack.c.bf16 %v92_v35, %v88_v33  ;;  %v94_v43 = vld [vmem:[%s4069_s2 + $0x200] sm:$0xff]  ;;  %v2530_v4 = vshrl.u32 %v699_v54, 7 }
  0x19   :  { %1646 = vmatprep.subr.bf16.mxu0 %v1645_v6  ;;  %1902 = vmatprep.subr.bf16.mxu1 %v1901_v10  ;;  %v99_v37 = vld [vmem:[%s4069_s2 + $0x228] sm:$0xff]  ;;  %v101_v39 = vld [vmem:[%s4069_s2 + $0x238] sm:$0xff]  ;;  %v98_v44 = vld [vmem:[%s4069_s2 + $0x220] sm:$0xff] }
  0x1a   :  { %v1657_v42 = vpack.c.bf16 %v99_v37, %v95_v36  ;;  %v96_v45 = vld [vmem:[%s4069_s2 + $0x210] sm:$0xff]  ;;  %v1913_v46 = vpack.c.bf16 %v101_v39, %v97_v38  ;;  %v103_v48 = vld [vmem:[%s4069_s2 + $0x248] sm:$0xff]  ;;  %v105_v50 = vld [vmem:[%s4069_s2 + $0x258] sm:$0xff]  ;;  %v1659_v55 = vpack.c.bf16 %v98_v44, %v94_v43 }
  0x1b   :  { %v100_v47 = vld [vmem:[%s4069_s2 + $0x230] sm:$0xff]  ;;  %v107_v49 = vld [vmem:[%s4069_s2 + $0x268] sm:$0xff]  ;;  %v109_v51 = vld [vmem:[%s4069_s2 + $0x278] sm:$0xff] }
  0x1c   :  { %1648 = vmatpush1.bf16.msra.mxu0 %v1647_v16  ;;  %1904 = vmatpush1.bf16.msra.mxu1 %v1903_v17  ;;  %v1915_v56 = vpack.c.bf16 %v100_v47, %v96_v45  ;;  %v1661_v57 = vpack.c.bf16 %v107_v49, %v103_v48  ;;  %v102_v58 = vld [vmem:[%s4069_s2 + $0x240] sm:$0xff]  ;;  %v104_v60 = vld [vmem:[%s4069_s2 + $0x250] sm:$0xff]  ;;  %v1917_v61 = vpack.c.bf16 %v109_v51, %v105_v50  ;;  %v111_v63 = vld [vmem:[%s4069_s2 + $0x288] sm:$0xff] }
  0x1d   :  { %1650 = vmatprep.subr.bf16.mxu0 %v1649_v18  ;;  %1906 = vmatprep.subr.bf16.mxu1 %v1905_v22  ;;  %v106_v59 = vld [vmem:[%s4069_s2 + $0x260] sm:$0xff]  ;;  %v108_v62 = vld [vmem:[%s4069_s2 + $0x270] sm:$0xff]  ;;  %v115_v0 = vld [vmem:[%s4069_s2 + $0x2a8] sm:$0xff]  ;;  %v2557_v17 = vsub.s32 %v698_v3, %v2530_v4 }
  0x1e   :  { %v113_v1 = vld [vmem:[%s4069_s2 + $0x298] sm:$0xff]  ;;  %v1663_v5 = vpack.c.bf16 %v106_v59, %v102_v58  ;;  %v1919_v6 = vpack.c.bf16 %v108_v62, %v104_v60  ;;  %v1665_v7 = vpack.c.bf16 %v115_v0, %v111_v63  ;;  %v110_v8 = vld [vmem:[%s4069_s2 + $0x280] sm:$0xff]  ;;  %v112_v10 = vld [vmem:[%s4069_s2 + $0x290] sm:$0xff] }
  0x1f   :  { %v117_v2 = vld [vmem:[%s4069_s2 + $0x2b8] sm:$0xff]  ;;  %v114_v9 = vld [vmem:[%s4069_s2 + $0x2a0] sm:$0xff]  ;;  %v116_v12 = vld [vmem:[%s4069_s2 + $0x2b0] sm:$0xff] }
  0x20   :  { %1652 = vmatpush1.bf16.msra.mxu0 %v1651_v28  ;;  %1908 = vmatpush1.bf16.msra.mxu1 %v1907_v29  ;;  %v1921_v11 = vpack.c.bf16 %v117_v2, %v113_v1  ;;  %v119_v13 = vld [vmem:[%s4069_s2 + $0x2c8] sm:$0xff]  ;;  %v121_v15 = vld [vmem:[%s4069_s2 + $0x2d8] sm:$0xff]  ;;  %v1667_v18 = vpack.c.bf16 %v114_v9, %v110_v8  ;;  %v118_v19 = vld [vmem:[%s4069_s2 + $0x2c0] sm:$0xff]  ;;  %v1923_v20 = vpack.c.bf16 %v116_v12, %v112_v10 }
  0x21   :  { %1654 = vmatprep.subr.bf16.mxu0 %v1653_v30  ;;  %1910 = vmatprep.subr.bf16.mxu1 %v1909_v34  ;;  %v123_v14 = vld [vmem:[%s4069_s2 + $0x2e8] sm:$0xff]  ;;  %v125_v16 = vld [vmem:[%s4069_s2 + $0x2f8] sm:$0xff]  ;;  %v122_v22 = vld [vmem:[%s4069_s2 + $0x2e0] sm:$0xff] }
  0x22   :  { %v1669_v21 = vpack.c.bf16 %v123_v14, %v119_v13  ;;  %v120_v23 = vld [vmem:[%s4069_s2 + $0x2d0] sm:$0xff]  ;;  %v1925_v25 = vpack.c.bf16 %v125_v16, %v121_v15  ;;  %v127_v26 = vld [vmem:[%s4069_s2 + $0x308] sm:$0xff]  ;;  %v2580_v28 = vld [vmem:[%s4071_s0] sm:$0xff]  ;;  %v1671_v32 = vpack.c.bf16 %v122_v22, %v118_v19 }
  0x23   :  { %v124_v24 = vld [vmem:[%s4069_s2 + $0x2f0] sm:$0xff]  ;;  %v131_v27 = vld [vmem:[%s4069_s2 + $0x328] sm:$0xff]  ;;  %v129_v29 = vld [vmem:[%s4069_s2 + $0x318] sm:$0xff]  ;;  %v2590_v31 = vrot.slane %v2580_v28, %v2557_v17  ;;  %v695_v16 = vcombine.high %v2580_v28, %v2580_v28 }
  0x24   :  { %1656 = vmatpush1.bf16.msra.mxu0 %v1655_v40  ;;  %1912 = vmatpush1.bf16.msra.mxu1 %v1911_v41  ;;  %v133_v30 = vld [vmem:[%s4069_s2 + $0x338] sm:$0xff]  ;;  %v1927_v33 = vpack.c.bf16 %v124_v24, %v120_v23  ;;  %v1673_v34 = vpack.c.bf16 %v131_v27, %v127_v26  ;;  %v126_v35 = vld [vmem:[%s4069_s2 + $0x300] sm:$0xff]  ;;  %v128_v37 = vld [vmem:[%s4069_s2 + $0x310] sm:$0xff] }
  0x25   :  { %1658 = vmatprep.subr.bf16.mxu0 %v1657_v42  ;;  %1914 = vmatprep.subr.bf16.mxu1 %v1913_v46  ;;  %v130_v36 = vld [vmem:[%s4069_s2 + $0x320] sm:$0xff]  ;;  %v710_v38 = vcombine.high %v2590_v31, %v2590_v31  ;;  %v1929_v39 = vpack.c.bf16 %v133_v30, %v129_v29  ;;  %v132_v40 = vld [vmem:[%s4069_s2 + $0x330] sm:$0xff]  ;;  %v135_v41 = vld [vmem:[%s4069_s2 + $0x348] sm:$0xff]  ;;  %v2711_v30 = vrot.slane %v695_v16, %v2557_v17 }
  0x26   :  { %v139_v42 = vld [vmem:[%s4069_s2 + $0x368] sm:$0xff]  ;;  %v137_v43 = vld [vmem:[%s4069_s2 + $0x358] sm:$0xff]  ;;  %v1675_v45 = vpack.c.bf16 %v130_v36, %v126_v35  ;;  %v1931_v46 = vpack.c.bf16 %v132_v40, %v128_v37  ;;  %v134_v48 = vld [vmem:[%s4069_s2 + $0x340] sm:$0xff] }
  0x27   :  { %v141_v44 = vld [vmem:[%s4069_s2 + $0x378] sm:$0xff]  ;;  %801 = vmatprep.mubr.f32.mxu0 %v710_v38  ;;  %1085 = vmatprep.mubr.f32.mxu1 %v710_v38  ;;  %v1677_v47 = vpack.c.bf16 %v139_v42, %v135_v41  ;;  %v138_v49 = vld [vmem:[%s4069_s2 + $0x360] sm:$0xff]  ;;  %v136_v50 = vld [vmem:[%s4069_s2 + $0x350] sm:$0xff] }
  0x28   :  { %1660 = vmatpush1.bf16.msra.mxu0 %v1659_v55  ;;  %1916 = vmatpush1.bf16.msra.mxu1 %v1915_v56  ;;  %v1933_v51 = vpack.c.bf16 %v141_v44, %v137_v43  ;;  %v140_v52 = vld [vmem:[%s4069_s2 + $0x370] sm:$0xff]  ;;  %v143_v53 = vld [vmem:[%s4069_s2 + $0x388] sm:$0xff]  ;;  %v145_v55 = vld [vmem:[%s4069_s2 + $0x398] sm:$0xff]  ;;  %v711_v44 = vcombine.high %v2711_v30, %v2711_v30 }
  0x29   :  { %1662 = vmatprep.subr.bf16.mxu0 %v1661_v57  ;;  %1918 = vmatprep.subr.bf16.mxu1 %v1917_v61  ;;  %v147_v54 = vld [vmem:[%s4069_s2 + $0x3a8] sm:$0xff]  ;;  %v149_v56 = vld [vmem:[%s4069_s2 + $0x3b8] sm:$0xff]  ;;  %v1679_v57 = vpack.c.bf16 %v138_v49, %v134_v48  ;;  %v1935_v58 = vpack.c.bf16 %v140_v52, %v136_v50  ;;  %v142_v60 = vld [vmem:[%s4069_s2 + $0x380] sm:$0xff] }
  0x2a   :  { %v1681_v59 = vpack.c.bf16 %v147_v54, %v143_v53  ;;  %v146_v61 = vld [vmem:[%s4069_s2 + $0x3a0] sm:$0xff]  ;;  %v144_v62 = vld [vmem:[%s4069_s2 + $0x390] sm:$0xff]  ;;  %v1937_v63 = vpack.c.bf16 %v149_v56, %v145_v55  ;;  %v151_v1 = vld [vmem:[%s4069_s2 + $0x3c8] sm:$0xff] }
  0x2b   :  { %v148_v0 = vld [vmem:[%s4069_s2 + $0x3b0] sm:$0xff]  ;;  %v155_v2 = vld [vmem:[%s4069_s2 + $0x3e8] sm:$0xff]  ;;  %v153_v3 = vld [vmem:[%s4069_s2 + $0x3d8] sm:$0xff] }
  0x2c   :  { %1664 = vmatpush1.bf16.msra.mxu0 %v1663_v5  ;;  %1920 = vmatpush1.bf16.msra.mxu1 %v1919_v6  ;;  %v157_v5 = vld [vmem:[%s4069_s2 + $0x3f8] sm:$0xff]  ;;  %v1683_v6 = vpack.c.bf16 %v146_v61, %v142_v60  ;;  %v1685_v8 = vpack.c.bf16 %v155_v2, %v151_v1  ;;  %v150_v9 = vld [vmem:[%s4069_s2 + $0x3c0] sm:$0xff]  ;;  %v156_v13 = vld [vmem:[%s4069_s2 + $0x3f0] sm:$0xff] }
  0x2d   :  { %1666 = vmatprep.subr.bf16.mxu0 %v1665_v7  ;;  %1922 = vmatprep.subr.bf16.mxu1 %v1921_v11  ;;  %v1939_v7 = vpack.c.bf16 %v148_v0, %v144_v62  ;;  %v154_v10 = vld [vmem:[%s4069_s2 + $0x3e0] sm:$0xff]  ;;  %v152_v11 = vld [vmem:[%s4069_s2 + $0x3d0] sm:$0xff]  ;;  %v1941_v12 = vpack.c.bf16 %v157_v5, %v153_v3  ;;  %v159_v14 = vld [vmem:[%s4069_s2 + $0x408] sm:$0xff] }
  0x2e   :  { %v163_v15 = vld [vmem:[%s4069_s2 + $0x428] sm:$0xff]  ;;  %v165_v19 = vld [vmem:[%s4069_s2 + $0x438] sm:$0xff]  ;;  %v158_v23 = vld [vmem:[%s4069_s2 + $0x400] sm:$0xff] }
  0x2f   :  { %v1689_v22 = vpack.c.bf16 %v163_v15, %v159_v14  ;;  %v162_v24 = vld [vmem:[%s4069_s2 + $0x420] sm:$0xff]  ;;  %v164_v27 = vld [vmem:[%s4069_s2 + $0x430] sm:$0xff]  ;;  %v167_v28 = vld [vmem:[%s4069_s2 + $0x448] sm:$0xff] }
  0x30   :  { %1668 = vmatpush1.bf16.msra.mxu0 %v1667_v18  ;;  %1924 = vmatpush1.bf16.msra.mxu1 %v1923_v20  ;;  %v161_v18 = vld [vmem:[%s4069_s2 + $0x418] sm:$0xff]  ;;  %v1687_v20 = vpack.c.bf16 %v154_v10, %v150_v9  ;;  %v171_v29 = vld [vmem:[%s4069_s2 + $0x468] sm:$0xff]  ;;  %v166_v37 = vld [vmem:[%s4069_s2 + $0x440] sm:$0xff] }
  0x31   :  { %1670 = vmatprep.subr.bf16.mxu0 %v1669_v21  ;;  %1926 = vmatprep.subr.bf16.mxu1 %v1925_v25  ;;  %v1943_v21 = vpack.c.bf16 %v156_v13, %v152_v11  ;;  %v160_v25 = vld [vmem:[%s4069_s2 + $0x410] sm:$0xff]  ;;  %v1945_v26 = vpack.c.bf16 %v165_v19, %v161_v18  ;;  %v1693_v36 = vpack.c.bf16 %v171_v29, %v167_v28  ;;  %v170_v38 = vld [vmem:[%s4069_s2 + $0x460] sm:$0xff]  ;;  %v175_v42 = vld [vmem:[%s4069_s2 + $0x488] sm:$0xff] }
  0x32   :  { %v1947_v35 = vpack.c.bf16 %v164_v27, %v160_v25  ;;  %v172_v41 = vld [vmem:[%s4069_s2 + $0x470] sm:$0xff]  ;;  %v179_v43 = vld [vmem:[%s4069_s2 + $0x4a8] sm:$0xff]  ;;  %v174_v50 = vld [vmem:[%s4069_s2 + $0x480] sm:$0xff] }
  0x33   :  { %v1697_v49 = vpack.c.bf16 %v179_v43, %v175_v42  ;;  %v176_v52 = vld [vmem:[%s4069_s2 + $0x490] sm:$0xff]  ;;  %v183_v54 = vld [vmem:[%s4069_s2 + $0x4c8] sm:$0xff]  ;;  %v185_v56 = vld [vmem:[%s4069_s2 + $0x4d8] sm:$0xff] }
  0x34   :  { %1672 = vmatpush1.bf16.msra.mxu0 %v1671_v32  ;;  %1928 = vmatpush1.bf16.msra.mxu1 %v1927_v33  ;;  %v169_v32 = vld [vmem:[%s4069_s2 + $0x458] sm:$0xff]  ;;  %v187_v55 = vld [vmem:[%s4069_s2 + $0x4e8] sm:$0xff]  ;;  %v182_v61 = vld [vmem:[%s4069_s2 + $0x4c0] sm:$0xff] }
  0x35   :  { %1674 = vmatprep.subr.bf16.mxu0 %v1673_v34  ;;  %1930 = vmatprep.subr.bf16.mxu1 %v1929_v39  ;;  %v173_v33 = vld [vmem:[%s4069_s2 + $0x478] sm:$0xff]  ;;  %v1691_v34 = vpack.c.bf16 %v162_v24, %v158_v23  ;;  %v168_v39 = vld [vmem:[%s4069_s2 + $0x450] sm:$0xff]  ;;  %v1701_v60 = vpack.c.bf16 %v187_v55, %v183_v54  ;;  %v186_v62 = vld [vmem:[%s4069_s2 + $0x4e0] sm:$0xff] }
  0x36   :  { %v1949_v40 = vpack.c.bf16 %v173_v33, %v169_v32  ;;  %v1951_v48 = vpack.c.bf16 %v172_v41, %v168_v39  ;;  %v188_v1 = vld [vmem:[%s4069_s2 + $0x4f0] sm:$0xff]  ;;  %v191_v2 = vld [vmem:[%s4069_s2 + $0x508] sm:$0xff]  ;;  %v193_v5 = vld [vmem:[%s4069_s2 + $0x518] sm:$0xff] }
  0x37   :  { %v195_v3 = vld [vmem:[%s4069_s2 + $0x528] sm:$0xff]  ;;  %v190_v10 = vld [vmem:[%s4069_s2 + $0x500] sm:$0xff]  ;;  %v196_v14 = vld [vmem:[%s4069_s2 + $0x530] sm:$0xff] }
  0x38   :  { %1676 = vmatpush1.bf16.msra.mxu0 %v1675_v45  ;;  %1932 = vmatpush1.bf16.msra.mxu1 %v1931_v46  ;;  %v177_v45 = vld [vmem:[%s4069_s2 + $0x498] sm:$0xff]  ;;  %v1705_v9 = vpack.c.bf16 %v195_v3, %v191_v2  ;;  %v194_v11 = vld [vmem:[%s4069_s2 + $0x520] sm:$0xff]  ;;  %v199_v15 = vld [vmem:[%s4069_s2 + $0x548] sm:$0xff] }
  0x39   :  { %1678 = vmatprep.subr.bf16.mxu0 %v1677_v47  ;;  %1934 = vmatprep.subr.bf16.mxu1 %v1933_v51  ;;  %v181_v46 = vld [vmem:[%s4069_s2 + $0x4b8] sm:$0xff]  ;;  %v1695_v47 = vpack.c.bf16 %v170_v38, %v166_v37  ;;  %v178_v51 = vld [vmem:[%s4069_s2 + $0x4a0] sm:$0xff]  ;;  %v203_v16 = vld [vmem:[%s4069_s2 + $0x568] sm:$0xff] }
  0x3a   :  { %v1953_v53 = vpack.c.bf16 %v181_v46, %v177_v45  ;;  %v201_v18 = vld [vmem:[%s4069_s2 + $0x558] sm:$0xff]  ;;  %v198_v23 = vld [vmem:[%s4069_s2 + $0x540] sm:$0xff]  ;;  %v200_v25 = vld [vmem:[%s4069_s2 + $0x550] sm:$0xff] }
  0x3b   :  { %v205_v19 = vld [vmem:[%s4069_s2 + $0x578] sm:$0xff]  ;;  %v202_v24 = vld [vmem:[%s4069_s2 + $0x560] sm:$0xff]  ;;  %v204_v27 = vld [vmem:[%s4069_s2 + $0x570] sm:$0xff] }
  0x3c   :  { %1680 = vmatpush1.bf16.msra.mxu0 %v1679_v57  ;;  %1936 = vmatpush1.bf16.msra.mxu1 %v1935_v58  ;;  %v189_v57 = vld [vmem:[%s4069_s2 + $0x4f8] sm:$0xff]  ;;  %v1699_v58 = vpack.c.bf16 %v178_v51, %v174_v50  ;;  %v207_v28 = vld [vmem:[%s4069_s2 + $0x588] sm:$0xff]  ;;  %v206_v37 = vld [vmem:[%s4069_s2 + $0x580] sm:$0xff] }
  0x3d   :  { %1682 = vmatprep.subr.bf16.mxu0 %v1681_v59  ;;  %1938 = vmatprep.subr.bf16.mxu1 %v1937_v63  ;;  %v184_v63 = vld [vmem:[%s4069_s2 + $0x4d0] sm:$0xff]  ;;  %v1957_v0 = vpack.c.bf16 %v189_v57, %v185_v56  ;;  %v211_v29 = vld [vmem:[%s4069_s2 + $0x5a8] sm:$0xff]  ;;  %v209_v32 = vld [vmem:[%s4069_s2 + $0x598] sm:$0xff] }
  0x3e   :  { %v213_v33 = vld [vmem:[%s4069_s2 + $0x5b8] sm:$0xff]  ;;  %v210_v38 = vld [vmem:[%s4069_s2 + $0x5a0] sm:$0xff]  ;;  %v208_v39 = vld [vmem:[%s4069_s2 + $0x590] sm:$0xff] }
  0x3f   :  { %v212_v41 = vld [vmem:[%s4069_s2 + $0x5b0] sm:$0xff]  ;;  %v215_v42 = vld [vmem:[%s4069_s2 + $0x5c8] sm:$0xff]  ;;  %v221_v45 = vld [vmem:[%s4069_s2 + $0x5f8] sm:$0xff]  ;;  %v1715_v46 = vpack.c.bf16 %v210_v38, %v206_v37 }
  0x40   :  { %1684 = vmatpush1.bf16.msra.mxu0 %v1683_v6  ;;  %1940 = vmatpush1.bf16.msra.mxu1 %v1939_v7  ;;  %v197_v6 = vld [vmem:[%s4069_s2 + $0x538] sm:$0xff]  ;;  %v1703_v7 = vpack.c.bf16 %v186_v62, %v182_v61  ;;  %v219_v43 = vld [vmem:[%s4069_s2 + $0x5e8] sm:$0xff]  ;;  %v218_v50 = vld [vmem:[%s4069_s2 + $0x5e0] sm:$0xff] }
  0x41   :  { %1686 = vmatprep.subr.bf16.mxu0 %v1685_v8  ;;  %1942 = vmatprep.subr.bf16.mxu1 %v1941_v12  ;;  %v1959_v8 = vpack.c.bf16 %v188_v1, %v184_v63  ;;  %v192_v12 = vld [vmem:[%s4069_s2 + $0x510] sm:$0xff]  ;;  %v1961_v13 = vpack.c.bf16 %v197_v6, %v193_v5  ;;  %v227_v54 = vld [vmem:[%s4069_s2 + $0x628] sm:$0xff]  ;;  %v225_v55 = vld [vmem:[%s4069_s2 + $0x618] sm:$0xff] }
  0x42   :  { %v216_v51 = vld [vmem:[%s4069_s2 + $0x5d0] sm:$0xff]  ;;  %v229_v56 = vld [vmem:[%s4069_s2 + $0x638] sm:$0xff]  ;;  %v226_v61 = vld [vmem:[%s4069_s2 + $0x620] sm:$0xff] }
  0x43   :  { %v224_v62 = vld [vmem:[%s4069_s2 + $0x610] sm:$0xff]  ;;  %v1977_v63 = vpack.c.bf16 %v229_v56, %v225_v55  ;;  %v231_v1 = vld [vmem:[%s4069_s2 + $0x648] sm:$0xff]  ;;  %v233_v3 = vld [vmem:[%s4069_s2 + $0x658] sm:$0xff] }
  0x44   :  { %1688 = vmatpush1.bf16.msra.mxu0 %v1687_v20  ;;  %1944 = vmatpush1.bf16.msra.mxu1 %v1943_v21  ;;  %v1707_v20 = vpack.c.bf16 %v194_v11, %v190_v10  ;;  %v1963_v21 = vpack.c.bf16 %v196_v14, %v192_v12  ;;  %v235_v2 = vld [vmem:[%s4069_s2 + $0x668] sm:$0xff]  ;;  %v237_v5 = vld [vmem:[%s4069_s2 + $0x678] sm:$0xff]  ;;  %v234_v10 = vld [vmem:[%s4069_s2 + $0x660] sm:$0xff] }
  0x45   :  { %1690 = vmatprep.subr.bf16.mxu0 %v1689_v22  ;;  %1946 = vmatprep.subr.bf16.mxu1 %v1945_v26  ;;  %v1709_v22 = vpack.c.bf16 %v203_v16, %v199_v15  ;;  %v1965_v26 = vpack.c.bf16 %v205_v19, %v201_v18  ;;  %v232_v11 = vld [vmem:[%s4069_s2 + $0x650] sm:$0xff]  ;;  %v1981_v12 = vpack.c.bf16 %v237_v5, %v233_v3  ;;  %v239_v14 = vld [vmem:[%s4069_s2 + $0x688] sm:$0xff]  ;;  %v241_v16 = vld [vmem:[%s4069_s2 + $0x698] sm:$0xff] }
  0x46   :  { %v243_v15 = vld [vmem:[%s4069_s2 + $0x6a8] sm:$0xff]  ;;  %v245_v18 = vld [vmem:[%s4069_s2 + $0x6b8] sm:$0xff]  ;;  %v250_v37 = vld [vmem:[%s4069_s2 + $0x6e0] sm:$0xff] }
  0x47   :  { %802 = vmatmul.mubr.f32.vlgmr.msra.gmra.mrb[0].mxu0 %v2590_v31  ;;  %1086 = vmatmul.mubr.f32.vlgmr.msra.gmra.mrb[0].mxu1 %v2590_v31  ;;  %v180_v31 = vld [vmem:[%s4069_s2 + $0x4b0] sm:$0xff]  ;;  %v269_v55 = vld [vmem:[%s4069_s2 + $0x778] sm:$0xff] }
  0x48   :  { %1692 = vmatpush1.bf16.msra.mxu0 %v1691_v34  ;;  %1948 = vmatpush1.bf16.msra.mxu1 %v1947_v35  ;;  %v1955_v59 = vpack.c.bf16 %v180_v31, %v176_v52  ;;  %v1711_v34 = vpack.c.bf16 %v202_v24, %v198_v23  ;;  %v1967_v35 = vpack.c.bf16 %v204_v27, %v200_v25  ;;  %v223_v31 = vld [vmem:[%s4069_s2 + $0x608] sm:$0xff]  ;;  %v242_v23 = vld [vmem:[%s4069_s2 + $0x6a0] sm:$0xff]  ;;  %v240_v24 = vld [vmem:[%s4069_s2 + $0x690] sm:$0xff] }
  0x49   :  { %1694 = vmatprep.subr.bf16.mxu0 %v1693_v36  ;;  %1950 = vmatprep.subr.bf16.mxu1 %v1949_v40  ;;  %v1713_v36 = vpack.c.bf16 %v211_v29, %v207_v28  ;;  %v1969_v40 = vpack.c.bf16 %v213_v33, %v209_v32  ;;  %v1985_v25 = vpack.c.bf16 %v245_v18, %v241_v16  ;;  %v247_v27 = vld [vmem:[%s4069_s2 + $0x6c8] sm:$0xff]  ;;  %v249_v29 = vld [vmem:[%s4069_s2 + $0x6d8] sm:$0xff]  ;;  %v248_v38 = vld [vmem:[%s4069_s2 + $0x6d0] sm:$0xff] }
  0x4a   :  { %872 = vmatprep.mubr.f32.mxu0 %v711_v44  ;;  %1156 = vmatprep.mubr.f32.mxu1 %v711_v44  ;;  %v217_v44 = vld [vmem:[%s4069_s2 + $0x5d8] sm:$0xff]  ;;  %v251_v28 = vld [vmem:[%s4069_s2 + $0x6e8] sm:$0xff] }
  0x4b   :  { %v1973_v52 = vpack.c.bf16 %v221_v45, %v217_v44  ;;  %v253_v32 = vld [vmem:[%s4069_s2 + $0x6f8] sm:$0xff] }
  0x4c   :  { %1696 = vmatpush1.bf16.msra.mxu0 %v1695_v47  ;;  %1952 = vmatpush1.bf16.msra.mxu1 %v1951_v48  ;;  %v1971_v47 = vpack.c.bf16 %v212_v41, %v208_v39  ;;  %v1717_v48 = vpack.c.bf16 %v219_v43, %v215_v42  ;;  %v1989_v39 = vpack.c.bf16 %v253_v32, %v249_v29  ;;  %v255_v41 = vld [vmem:[%s4069_s2 + $0x708] sm:$0xff]  ;;  %v257_v43 = vld [vmem:[%s4069_s2 + $0x718] sm:$0xff] }
  0x4d   :  { %1698 = vmatprep.subr.bf16.mxu0 %v1697_v49  ;;  %1954 = vmatprep.subr.bf16.mxu1 %v1953_v53  ;;  %v214_v49 = vld [vmem:[%s4069_s2 + $0x5c0] sm:$0xff]  ;;  %v220_v53 = vld [vmem:[%s4069_s2 + $0x5f0] sm:$0xff]  ;;  %v259_v42 = vld [vmem:[%s4069_s2 + $0x728] sm:$0xff] }
  0x4e   :  { %v1719_v57 = vpack.c.bf16 %v218_v50, %v214_v49  ;;  %v261_v44 = vld [vmem:[%s4069_s2 + $0x738] sm:$0xff]  ;;  %v258_v49 = vld [vmem:[%s4069_s2 + $0x720] sm:$0xff]  ;;  %v256_v50 = vld [vmem:[%s4069_s2 + $0x710] sm:$0xff] }
  0x4f   :  { %v277_v3 = vld [vmem:[%s4069_s2 + $0x7b8] sm:$0xff] }
  0x50   :  { %1700 = vmatpush1.bf16.msra.mxu0 %v1699_v58  ;;  %1956 = vmatpush1.bf16.msra.mxu1 %v1955_v59  ;;  %v1975_v58 = vpack.c.bf16 %v220_v53, %v216_v51  ;;  %v1721_v59 = vpack.c.bf16 %v227_v54, %v223_v31  ;;  %v1993_v51 = vpack.c.bf16 %v261_v44, %v257_v43  ;;  %v263_v53 = vld [vmem:[%s4069_s2 + $0x748] sm:$0xff]  ;;  %v265_v54 = vld [vmem:[%s4069_s2 + $0x758] sm:$0xff] }
  0x51   :  { %1702 = vmatprep.subr.bf16.mxu0 %v1701_v60  ;;  %1958 = vmatprep.subr.bf16.mxu1 %v1957_v0  ;;  %v222_v60 = vld [vmem:[%s4069_s2 + $0x600] sm:$0xff]  ;;  %v228_v0 = vld [vmem:[%s4069_s2 + $0x630] sm:$0xff]  ;;  %v267_v31 = vld [vmem:[%s4069_s2 + $0x768] sm:$0xff] }
  0x52   :  { %v1723_v6 = vpack.c.bf16 %v226_v61, %v222_v60  ;;  %v266_v60 = vld [vmem:[%s4069_s2 + $0x760] sm:$0xff]  ;;  %v264_v61 = vld [vmem:[%s4069_s2 + $0x750] sm:$0xff]  ;;  %v285_v16 = vld [vmem:[%s4069_s2 + $0x7f8] sm:$0xff] }
  0x53   :  { %v293_v29 = vld [vmem:[%s4069_s2 + $0x838] sm:$0xff] }
  0x54   :  { %1704 = vmatpush1.bf16.msra.mxu0 %v1703_v7  ;;  %1960 = vmatpush1.bf16.msra.mxu1 %v1959_v8  ;;  %v1979_v7 = vpack.c.bf16 %v228_v0, %v224_v62  ;;  %v1725_v8 = vpack.c.bf16 %v235_v2, %v231_v1  ;;  %v1997_v62 = vpack.c.bf16 %v269_v55, %v265_v54  ;;  %v271_v0 = vld [vmem:[%s4069_s2 + $0x788] sm:$0xff]  ;;  %v273_v2 = vld [vmem:[%s4069_s2 + $0x798] sm:$0xff] }
  0x55   :  { %1706 = vmatprep.subr.bf16.mxu0 %v1705_v9  ;;  %1962 = vmatprep.subr.bf16.mxu1 %v1961_v13  ;;  %v230_v9 = vld [vmem:[%s4069_s2 + $0x640] sm:$0xff]  ;;  %v236_v13 = vld [vmem:[%s4069_s2 + $0x670] sm:$0xff]  ;;  %v275_v1 = vld [vmem:[%s4069_s2 + $0x7a8] sm:$0xff] }
  0x56   :  { %v1727_v19 = vpack.c.bf16 %v234_v10, %v230_v9  ;;  %v274_v9 = vld [vmem:[%s4069_s2 + $0x7a0] sm:$0xff]  ;;  %v272_v10 = vld [vmem:[%s4069_s2 + $0x790] sm:$0xff]  ;;  %v301_v43 = vld [vmem:[%s4069_s2 + $0x878] sm:$0xff] }
  0x57   :  { %v307_v54 = vld [vmem:[%s4069_s2 + $0x8a8] sm:$0xff]  ;;  %v305_v55 = vld [vmem:[%s4069_s2 + $0x898] sm:$0xff] }
  0x58   :  { %1708 = vmatpush1.bf16.msra.mxu0 %v1707_v20  ;;  %1964 = vmatpush1.bf16.msra.mxu1 %v1963_v21  ;;  %v1983_v20 = vpack.c.bf16 %v236_v13, %v232_v11  ;;  %v1729_v21 = vpack.c.bf16 %v243_v15, %v239_v14  ;;  %v2001_v11 = vpack.c.bf16 %v277_v3, %v273_v2  ;;  %v279_v13 = vld [vmem:[%s4069_s2 + $0x7c8] sm:$0xff]  ;;  %v281_v15 = vld [vmem:[%s4069_s2 + $0x7d8] sm:$0xff] }
  0x59   :  { %1710 = vmatprep.subr.bf16.mxu0 %v1709_v22  ;;  %1966 = vmatprep.subr.bf16.mxu1 %v1965_v26  ;;  %v238_v22 = vld [vmem:[%s4069_s2 + $0x680] sm:$0xff]  ;;  %v244_v26 = vld [vmem:[%s4069_s2 + $0x6b0] sm:$0xff]  ;;  %v283_v14 = vld [vmem:[%s4069_s2 + $0x7e8] sm:$0xff] }
  0x5a   :  { %v1731_v33 = vpack.c.bf16 %v242_v23, %v238_v22  ;;  %v282_v22 = vld [vmem:[%s4069_s2 + $0x7e0] sm:$0xff]  ;;  %v280_v23 = vld [vmem:[%s4069_s2 + $0x7d0] sm:$0xff]  ;;  %v315_v2 = vld [vmem:[%s4069_s2 + $0x8e8] sm:$0xff] }
  0x5b   :  { %v313_v3 = vld [vmem:[%s4069_s2 + $0x8d8] sm:$0xff] }
  0x5c   :  { %1712 = vmatpush1.bf16.msra.mxu0 %v1711_v34  ;;  %1968 = vmatpush1.bf16.msra.mxu1 %v1967_v35  ;;  %v1987_v34 = vpack.c.bf16 %v244_v26, %v240_v24  ;;  %v1733_v35 = vpack.c.bf16 %v251_v28, %v247_v27  ;;  %v2005_v24 = vpack.c.bf16 %v285_v16, %v281_v15  ;;  %v287_v26 = vld [vmem:[%s4069_s2 + $0x808] sm:$0xff]  ;;  %v289_v28 = vld [vmem:[%s4069_s2 + $0x818] sm:$0xff] }
  0x5d   :  { %1714 = vmatprep.subr.bf16.mxu0 %v1713_v36  ;;  %1970 = vmatprep.subr.bf16.mxu1 %v1969_v40  ;;  %v246_v36 = vld [vmem:[%s4069_s2 + $0x6c0] sm:$0xff]  ;;  %v252_v40 = vld [vmem:[%s4069_s2 + $0x6f0] sm:$0xff]  ;;  %v291_v27 = vld [vmem:[%s4069_s2 + $0x828] sm:$0xff] }
  0x5e   :  { %v1735_v45 = vpack.c.bf16 %v250_v37, %v246_v36  ;;  %v290_v36 = vld [vmem:[%s4069_s2 + $0x820] sm:$0xff]  ;;  %v288_v37 = vld [vmem:[%s4069_s2 + $0x810] sm:$0xff]  ;;  %v323_v15 = vld [vmem:[%s4069_s2 + $0x928] sm:$0xff] }
  0x5f   :  { %v321_v16 = vld [vmem:[%s4069_s2 + $0x918] sm:$0xff] }
  0x60   :  { %1716 = vmatpush1.bf16.msra.mxu0 %v1715_v46  ;;  %1972 = vmatpush1.bf16.msra.mxu1 %v1971_v47  ;;  %v1991_v46 = vpack.c.bf16 %v252_v40, %v248_v38  ;;  %v1737_v47 = vpack.c.bf16 %v259_v42, %v255_v41  ;;  %v2009_v38 = vpack.c.bf16 %v293_v29, %v289_v28  ;;  %v295_v40 = vld [vmem:[%s4069_s2 + $0x848] sm:$0xff]  ;;  %v297_v42 = vld [vmem:[%s4069_s2 + $0x858] sm:$0xff] }
  0x61   :  { %1718 = vmatprep.subr.bf16.mxu0 %v1717_v48  ;;  %1974 = vmatprep.subr.bf16.mxu1 %v1973_v52  ;;  %v254_v48 = vld [vmem:[%s4069_s2 + $0x700] sm:$0xff]  ;;  %v260_v52 = vld [vmem:[%s4069_s2 + $0x730] sm:$0xff]  ;;  %v299_v41 = vld [vmem:[%s4069_s2 + $0x868] sm:$0xff] }
  0x62   :  { %v1739_v56 = vpack.c.bf16 %v258_v49, %v254_v48  ;;  %v294_v48 = vld [vmem:[%s4069_s2 + $0x840] sm:$0xff]  ;;  %v331_v28 = vld [vmem:[%s4069_s2 + $0x968] sm:$0xff]  ;;  %v329_v29 = vld [vmem:[%s4069_s2 + $0x958] sm:$0xff] }
  0x63   :  { %v298_v49 = vld [vmem:[%s4069_s2 + $0x860] sm:$0xff] }
  0x64   :  { %1720 = vmatpush1.bf16.msra.mxu0 %v1719_v57  ;;  %1976 = vmatpush1.bf16.msra.mxu1 %v1975_v58  ;;  %v1995_v57 = vpack.c.bf16 %v260_v52, %v256_v50  ;;  %v1741_v58 = vpack.c.bf16 %v267_v31, %v263_v53  ;;  %v296_v50 = vld [vmem:[%s4069_s2 + $0x850] sm:$0xff]  ;;  %v2013_v52 = vpack.c.bf16 %v301_v43, %v297_v42  ;;  %v303_v31 = vld [vmem:[%s4069_s2 + $0x888] sm:$0xff]  ;;  %v337_v43 = vld [vmem:[%s4069_s2 + $0x998] sm:$0xff] }
  0x65   :  { %1722 = vmatprep.subr.bf16.mxu0 %v1721_v59  ;;  %1978 = vmatprep.subr.bf16.mxu1 %v1977_v63  ;;  %v262_v59 = vld [vmem:[%s4069_s2 + $0x740] sm:$0xff]  ;;  %v268_v63 = vld [vmem:[%s4069_s2 + $0x770] sm:$0xff]  ;;  %v339_v42 = vld [vmem:[%s4069_s2 + $0x9a8] sm:$0xff] }
  0x66   :  { %v1743_v5 = vpack.c.bf16 %v266_v60, %v262_v59  ;;  %v300_v53 = vld [vmem:[%s4069_s2 + $0x870] sm:$0xff]  ;;  %v1761_v60 = vpack.c.bf16 %v307_v54, %v303_v31  ;;  %v343_v54 = vld [vmem:[%s4069_s2 + $0x9c8] sm:$0xff] }
  0x67   :  { %v2015_v59 = vpack.c.bf16 %v300_v53, %v296_v50  ;;  %v338_v50 = vld [vmem:[%s4069_s2 + $0x9a0] sm:$0xff]  ;;  %v340_v31 = vld [vmem:[%s4069_s2 + $0x9b0] sm:$0xff] }
  0x68   :  { %1724 = vmatpush1.bf16.msra.mxu0 %v1723_v6  ;;  %1980 = vmatpush1.bf16.msra.mxu1 %v1979_v7  ;;  %v1999_v6 = vpack.c.bf16 %v268_v63, %v264_v61  ;;  %v1745_v7 = vpack.c.bf16 %v275_v1, %v271_v0  ;;  %v302_v61 = vld [vmem:[%s4069_s2 + $0x880] sm:$0xff]  ;;  %v304_v63 = vld [vmem:[%s4069_s2 + $0x890] sm:$0xff]  ;;  %v311_v1 = vld [vmem:[%s4069_s2 + $0x8c8] sm:$0xff] }
  0x69   :  { %1726 = vmatprep.subr.bf16.mxu0 %v1725_v8  ;;  %1982 = vmatprep.subr.bf16.mxu1 %v1981_v12  ;;  %v270_v8 = vld [vmem:[%s4069_s2 + $0x780] sm:$0xff]  ;;  %v276_v12 = vld [vmem:[%s4069_s2 + $0x7b0] sm:$0xff] }
  0x6a   :  { %v1747_v18 = vpack.c.bf16 %v274_v9, %v270_v8  ;;  %v1765_v8 = vpack.c.bf16 %v315_v2, %v311_v1  ;;  %v310_v9 = vld [vmem:[%s4069_s2 + $0x8c0] sm:$0xff]  ;;  %v351_v1 = vld [vmem:[%s4069_s2 + $0xa08] sm:$0xff] }
  0x6b   :  { %v355_v2 = vld [vmem:[%s4069_s2 + $0xa28] sm:$0xff] }
  0x6c   :  { %1728 = vmatpush1.bf16.msra.mxu0 %v1727_v19  ;;  %1984 = vmatpush1.bf16.msra.mxu1 %v1983_v20  ;;  %v2003_v19 = vpack.c.bf16 %v276_v12, %v272_v10  ;;  %v1749_v20 = vpack.c.bf16 %v283_v14, %v279_v13  ;;  %v314_v10 = vld [vmem:[%s4069_s2 + $0x8e0] sm:$0xff]  ;;  %v316_v13 = vld [vmem:[%s4069_s2 + $0x8f0] sm:$0xff]  ;;  %v319_v14 = vld [vmem:[%s4069_s2 + $0x908] sm:$0xff] }
  0x6d   :  { %1730 = vmatprep.subr.bf16.mxu0 %v1729_v21  ;;  %1986 = vmatprep.subr.bf16.mxu1 %v1985_v25  ;;  %v278_v21 = vld [vmem:[%s4069_s2 + $0x7c0] sm:$0xff]  ;;  %v284_v25 = vld [vmem:[%s4069_s2 + $0x7f0] sm:$0xff] }
  0x6e   :  { %v1751_v32 = vpack.c.bf16 %v282_v22, %v278_v21  ;;  %v1769_v21 = vpack.c.bf16 %v323_v15, %v319_v14  ;;  %v318_v22 = vld [vmem:[%s4069_s2 + $0x900] sm:$0xff]  ;;  %v359_v14 = vld [vmem:[%s4069_s2 + $0xa48] sm:$0xff] }
  0x6f   :  { %v363_v15 = vld [vmem:[%s4069_s2 + $0xa68] sm:$0xff] }
  0x70   :  { %1732 = vmatpush1.bf16.msra.mxu0 %v1731_v33  ;;  %1988 = vmatpush1.bf16.msra.mxu1 %v1987_v34  ;;  %v2007_v33 = vpack.c.bf16 %v284_v25, %v280_v23  ;;  %v1753_v34 = vpack.c.bf16 %v291_v27, %v287_v26  ;;  %v322_v23 = vld [vmem:[%s4069_s2 + $0x920] sm:$0xff]  ;;  %v324_v26 = vld [vmem:[%s4069_s2 + $0x930] sm:$0xff]  ;;  %v327_v27 = vld [vmem:[%s4069_s2 + $0x948] sm:$0xff] }
  0x71   :  { %1734 = vmatprep.subr.bf16.mxu0 %v1733_v35  ;;  %1990 = vmatprep.subr.bf16.mxu1 %v1989_v39  ;;  %v286_v35 = vld [vmem:[%s4069_s2 + $0x800] sm:$0xff]  ;;  %v292_v39 = vld [vmem:[%s4069_s2 + $0x830] sm:$0xff] }
  0x72   :  { %v1755_v44 = vpack.c.bf16 %v290_v36, %v286_v35  ;;  %v1773_v35 = vpack.c.bf16 %v331_v28, %v327_v27  ;;  %v326_v36 = vld [vmem:[%s4069_s2 + $0x940] sm:$0xff]  ;;  %v367_v27 = vld [vmem:[%s4069_s2 + $0xa88] sm:$0xff] }
  0x73   :  { %v371_v28 = vld [vmem:[%s4069_s2 + $0xaa8] sm:$0xff] }
  0x74   :  { %1736 = vmatpush1.bf16.msra.mxu0 %v1735_v45  ;;  %1992 = vmatpush1.bf16.msra.mxu1 %v1991_v46  ;;  %v3110_v45 = vld [vmem:[%s4071_s0 + $0x8] sm:$0xff]  ;;  %v2011_v46 = vpack.c.bf16 %v292_v39, %v288_v37  ;;  %v330_v37 = vld [vmem:[%s4069_s2 + $0x960] sm:$0xff] }
  0x75   :  { %1738 = vmatprep.subr.bf16.mxu0 %v1737_v47  ;;  %1994 = vmatprep.subr.bf16.mxu1 %v1993_v51  ;;  %v1757_v47 = vpack.c.bf16 %v299_v41, %v295_v40  ;;  %v3123_v51 = vrot.slane %v3110_v45, %v2557_v17  ;;  %v332_v40 = vld [vmem:[%s4069_s2 + $0x970] sm:$0xff]  ;;  %v335_v41 = vld [vmem:[%s4069_s2 + $0x988] sm:$0xff] }
  0x78   :  { %1740 = vmatpush1.bf16.msra.mxu0 %v1739_v56  ;;  %1996 = vmatpush1.bf16.msra.mxu1 %v1995_v57  ;;  %v309_v56 = vld [vmem:[%s4069_s2 + $0x8b8] sm:$0xff]  ;;  %v727_v57 = vcombine.high %v3123_v51, %v3123_v51 }
  0x79   :  { %1742 = vmatprep.subr.bf16.mxu0 %v1741_v58  ;;  %1998 = vmatprep.subr.bf16.mxu1 %v1997_v62  ;;  %v1759_v58 = vpack.c.bf16 %v298_v49, %v294_v48  ;;  %v306_v62 = vld [vmem:[%s4069_s2 + $0x8a0] sm:$0xff]  ;;  %v2017_v0 = vpack.c.bf16 %v309_v56, %v305_v55  ;;  %v1777_v48 = vpack.c.bf16 %v339_v42, %v335_v41  ;;  %v347_v55 = vld [vmem:[%s4069_s2 + $0x9e8] sm:$0xff]  ;;  %v345_v56 = vld [vmem:[%s4069_s2 + $0x9d8] sm:$0xff] }
  0x7a   :  { %v334_v49 = vld [vmem:[%s4069_s2 + $0x980] sm:$0xff]  ;;  %v375_v41 = vld [vmem:[%s4069_s2 + $0xac8] sm:$0xff] }
  0x7b   :  { %v379_v42 = vld [vmem:[%s4069_s2 + $0xae8] sm:$0xff] }
  0x7c   :  { %1744 = vmatpush1.bf16.msra.mxu0 %v1743_v5  ;;  %2000 = vmatpush1.bf16.msra.mxu1 %v1999_v6  ;;  %v317_v5 = vld [vmem:[%s4069_s2 + $0x8f8] sm:$0xff]  ;;  %v1763_v6 = vpack.c.bf16 %v306_v62, %v302_v61  ;;  %v342_v61 = vld [vmem:[%s4069_s2 + $0x9c0] sm:$0xff] }
  0x7d   :  { %1746 = vmatprep.subr.bf16.mxu0 %v1745_v7  ;;  %2002 = vmatprep.subr.bf16.mxu1 %v2001_v11  ;;  %v312_v11 = vld [vmem:[%s4069_s2 + $0x8d0] sm:$0xff]  ;;  %v2021_v12 = vpack.c.bf16 %v317_v5, %v313_v3  ;;  %v346_v62 = vld [vmem:[%s4069_s2 + $0x9e0] sm:$0xff]  ;;  %v353_v3 = vld [vmem:[%s4069_s2 + $0xa18] sm:$0xff] }
  0x7e   :  { %v357_v5 = vld [vmem:[%s4069_s2 + $0xa38] sm:$0xff] }
  0x80   :  { %1748 = vmatpush1.bf16.msra.mxu0 %v1747_v18  ;;  %2004 = vmatpush1.bf16.msra.mxu1 %v2003_v19  ;;  %v325_v18 = vld [vmem:[%s4069_s2 + $0x938] sm:$0xff]  ;;  %v1767_v19 = vpack.c.bf16 %v314_v10, %v310_v9  ;;  %v350_v9 = vld [vmem:[%s4069_s2 + $0xa00] sm:$0xff] }
  0x81   :  { %1750 = vmatprep.subr.bf16.mxu0 %v1749_v20  ;;  %2006 = vmatprep.subr.bf16.mxu1 %v2005_v24  ;;  %v2023_v20 = vpack.c.bf16 %v316_v13, %v312_v11  ;;  %v320_v24 = vld [vmem:[%s4069_s2 + $0x910] sm:$0xff]  ;;  %v2025_v25 = vpack.c.bf16 %v325_v18, %v321_v16  ;;  %v354_v10 = vld [vmem:[%s4069_s2 + $0xa20] sm:$0xff]  ;;  %v361_v16 = vld [vmem:[%s4069_s2 + $0xa58] sm:$0xff] }
  0x82   :  { %v352_v11 = vld [vmem:[%s4069_s2 + $0xa10] sm:$0xff]  ;;  %v365_v18 = vld [vmem:[%s4069_s2 + $0xa78] sm:$0xff] }
  0x83   :  { %v356_v13 = vld [vmem:[%s4069_s2 + $0xa30] sm:$0xff] }
  0x84   :  { %1752 = vmatpush1.bf16.msra.mxu0 %v1751_v32  ;;  %2008 = vmatpush1.bf16.msra.mxu1 %v2007_v33  ;;  %v333_v32 = vld [vmem:[%s4069_s2 + $0x978] sm:$0xff]  ;;  %v1771_v33 = vpack.c.bf16 %v322_v23, %v318_v22  ;;  %v358_v22 = vld [vmem:[%s4069_s2 + $0xa40] sm:$0xff] }
  0x85   :  { %1754 = vmatprep.subr.bf16.mxu0 %v1753_v34  ;;  %2010 = vmatprep.subr.bf16.mxu1 %v2009_v38  ;;  %v2027_v34 = vpack.c.bf16 %v324_v26, %v320_v24  ;;  %v328_v38 = vld [vmem:[%s4069_s2 + $0x950] sm:$0xff]  ;;  %v2029_v39 = vpack.c.bf16 %v333_v32, %v329_v29  ;;  %v362_v23 = vld [vmem:[%s4069_s2 + $0xa60] sm:$0xff]  ;;  %v369_v29 = vld [vmem:[%s4069_s2 + $0xa98] sm:$0xff] }
  0x86   :  { %v360_v24 = vld [vmem:[%s4069_s2 + $0xa50] sm:$0xff]  ;;  %v373_v32 = vld [vmem:[%s4069_s2 + $0xab8] sm:$0xff] }
  0x87   :  { %873 = vmatmul.mubr.f32.vlgmr.msra.gmra.mrb[0].mxu0 %v2711_v30  ;;  %1157 = vmatmul.mubr.f32.vlgmr.msra.gmra.mrb[0].mxu1 %v2711_v30  ;;  %v308_v30 = vld [vmem:[%s4069_s2 + $0x8b0] sm:$0xff] }
  0x88   :  { %1756 = vmatpush1.bf16.msra.mxu0 %v1755_v44  ;;  %2012 = vmatpush1.bf16.msra.mxu1 %v2011_v46  ;;  %v2019_v7 = vpack.c.bf16 %v308_v30, %v304_v63  ;;  %v341_v44 = vld [vmem:[%s4069_s2 + $0x9b8] sm:$0xff]  ;;  %v1775_v46 = vpack.c.bf16 %v330_v37, %v326_v36  ;;  %v344_v63 = vld [vmem:[%s4069_s2 + $0x9d0] sm:$0xff]  ;;  %v366_v36 = vld [vmem:[%s4069_s2 + $0xa80] sm:$0xff] }
  0x89   :  { %1758 = vmatprep.subr.bf16.mxu0 %v1757_v47  ;;  %2014 = vmatprep.subr.bf16.mxu1 %v2013_v52  ;;  %v2031_v47 = vpack.c.bf16 %v332_v40, %v328_v38  ;;  %v336_v52 = vld [vmem:[%s4069_s2 + $0x990] sm:$0xff]  ;;  %v2033_v53 = vpack.c.bf16 %v341_v44, %v337_v43  ;;  %v370_v37 = vld [vmem:[%s4069_s2 + $0xaa0] sm:$0xff]  ;;  %v377_v43 = vld [vmem:[%s4069_s2 + $0xad8] sm:$0xff] }
  0x8a   :  { %943 = vmatprep.mubr.f32.mxu0 %v727_v57  ;;  %1227 = vmatprep.mubr.f32.mxu1 %v727_v57  ;;  %v349_v57 = vld [vmem:[%s4069_s2 + $0x9f8] sm:$0xff]  ;;  %v348_v30 = vld [vmem:[%s4069_s2 + $0x9f0] sm:$0xff] }
  0x8b   :  { %v364_v26 = vld [vmem:[%s4069_s2 + $0xa70] sm:$0xff]  ;;  %v381_v44 = vld [vmem:[%s4069_s2 + $0xaf8] sm:$0xff] }
  0x8c   :  { %1760 = vmatpush1.bf16.msra.mxu0 %v1759_v58  ;;  %2016 = vmatpush1.bf16.msra.mxu1 %v2015_v59  ;;  %v1779_v58 = vpack.c.bf16 %v338_v50, %v334_v49  ;;  %v2035_v59 = vpack.c.bf16 %v340_v31, %v336_v52  ;;  %v368_v38 = vld [vmem:[%s4069_s2 + $0xa90] sm:$0xff]  ;;  %v374_v49 = vld [vmem:[%s4069_s2 + $0xac0] sm:$0xff] }
  0x8d   :  { %1762 = vmatprep.subr.bf16.mxu0 %v1761_v60  ;;  %2018 = vmatprep.subr.bf16.mxu1 %v2017_v0  ;;  %v1781_v60 = vpack.c.bf16 %v347_v55, %v343_v54  ;;  %v2037_v0 = vpack.c.bf16 %v349_v57, %v345_v56  ;;  %v372_v40 = vld [vmem:[%s4069_s2 + $0xab0] sm:$0xff]  ;;  %v378_v50 = vld [vmem:[%s4069_s2 + $0xae0] sm:$0xff]  ;;  %v383_v54 = vld [vmem:[%s4069_s2 + $0xb08] sm:$0xff] }
  0x8e   :  { %v376_v52 = vld [vmem:[%s4069_s2 + $0xad0] sm:$0xff]  ;;  %v387_v55 = vld [vmem:[%s4069_s2 + $0xb28] sm:$0xff]  ;;  %v385_v56 = vld [vmem:[%s4069_s2 + $0xb18] sm:$0xff] }
  0x8f   :  { %v380_v31 = vld [vmem:[%s4069_s2 + $0xaf0] sm:$0xff]  ;;  %v389_v57 = vld [vmem:[%s4069_s2 + $0xb38] sm:$0xff] }
  0x90   :  { %1764 = vmatpush1.bf16.msra.mxu0 %v1763_v6  ;;  %2020 = vmatpush1.bf16.msra.mxu1 %v2019_v7  ;;  %v1783_v6 = vpack.c.bf16 %v346_v62, %v342_v61  ;;  %v2039_v7 = vpack.c.bf16 %v348_v30, %v344_v63  ;;  %v382_v61 = vld [vmem:[%s4069_s2 + $0xb00] sm:$0xff]  ;;  %v384_v63 = vld [vmem:[%s4069_s2 + $0xb10] sm:$0xff] }
  0x91   :  { %1766 = vmatprep.subr.bf16.mxu0 %v1765_v8  ;;  %2022 = vmatprep.subr.bf16.mxu1 %v2021_v12  ;;  %v1785_v8 = vpack.c.bf16 %v355_v2, %v351_v1  ;;  %v2041_v12 = vpack.c.bf16 %v357_v5, %v353_v3  ;;  %v386_v62 = vld [vmem:[%s4069_s2 + $0xb20] sm:$0xff]  ;;  %v388_v30 = vld [vmem:[%s4069_s2 + $0xb30] sm:$0xff]  ;;  %v391_v1 = vld [vmem:[%s4069_s2 + $0xb48] sm:$0xff] }
  0x92   :  { %v395_v2 = vld [vmem:[%s4069_s2 + $0xb68] sm:$0xff]  ;;  %v393_v3 = vld [vmem:[%s4069_s2 + $0xb58] sm:$0xff] }
  0x93   :  { %v397_v5 = vld [vmem:[%s4069_s2 + $0xb78] sm:$0xff] }
  0x94   :  { %1768 = vmatpush1.bf16.msra.mxu0 %v1767_v19  ;;  %2024 = vmatpush1.bf16.msra.mxu1 %v2023_v20  ;;  %v1787_v19 = vpack.c.bf16 %v354_v10, %v350_v9  ;;  %v2043_v20 = vpack.c.bf16 %v356_v13, %v352_v11  ;;  %v390_v9 = vld [vmem:[%s4069_s2 + $0xb40] sm:$0xff]  ;;  %v392_v11 = vld [vmem:[%s4069_s2 + $0xb50] sm:$0xff] }
  0x95   :  { %1770 = vmatprep.subr.bf16.mxu0 %v1769_v21  ;;  %2026 = vmatprep.subr.bf16.mxu1 %v2025_v25  ;;  %v1789_v21 = vpack.c.bf16 %v363_v15, %v359_v14  ;;  %v2045_v25 = vpack.c.bf16 %v365_v18, %v361_v16  ;;  %v394_v10 = vld [vmem:[%s4069_s2 + $0xb60] sm:$0xff]  ;;  %v396_v13 = vld [vmem:[%s4069_s2 + $0xb70] sm:$0xff]  ;;  %v399_v14 = vld [vmem:[%s4069_s2 + $0xb88] sm:$0xff] }
  0x96   :  { %v403_v15 = vld [vmem:[%s4069_s2 + $0xba8] sm:$0xff]  ;;  %v401_v16 = vld [vmem:[%s4069_s2 + $0xb98] sm:$0xff] }
  0x97   :  { %v405_v18 = vld [vmem:[%s4069_s2 + $0xbb8] sm:$0xff] }
  0x98   :  { %1772 = vmatpush1.bf16.msra.mxu0 %v1771_v33  ;;  %2028 = vmatpush1.bf16.msra.mxu1 %v2027_v34  ;;  %v1791_v33 = vpack.c.bf16 %v362_v23, %v358_v22  ;;  %v2047_v34 = vpack.c.bf16 %v364_v26, %v360_v24  ;;  %v398_v22 = vld [vmem:[%s4069_s2 + $0xb80] sm:$0xff]  ;;  %v400_v24 = vld [vmem:[%s4069_s2 + $0xb90] sm:$0xff] }
  0x99   :  { %1774 = vmatprep.subr.bf16.mxu0 %v1773_v35  ;;  %2030 = vmatprep.subr.bf16.mxu1 %v2029_v39  ;;  %v1793_v35 = vpack.c.bf16 %v371_v28, %v367_v27  ;;  %v2049_v39 = vpack.c.bf16 %v373_v32, %v369_v29  ;;  %v402_v23 = vld [vmem:[%s4069_s2 + $0xba0] sm:$0xff]  ;;  %v404_v26 = vld [vmem:[%s4069_s2 + $0xbb0] sm:$0xff]  ;;  %v407_v27 = vld [vmem:[%s4069_s2 + $0xbc8] sm:$0xff] }
  0x9a   :  { %v411_v28 = vld [vmem:[%s4069_s2 + $0xbe8] sm:$0xff]  ;;  %v409_v29 = vld [vmem:[%s4069_s2 + $0xbd8] sm:$0xff] }
  0x9b   :  { %v413_v32 = vld [vmem:[%s4069_s2 + $0xbf8] sm:$0xff] }
  0x9c   :  { %1776 = vmatpush1.bf16.msra.mxu0 %v1775_v46  ;;  %2032 = vmatpush1.bf16.msra.mxu1 %v2031_v47  ;;  %v1795_v46 = vpack.c.bf16 %v370_v37, %v366_v36  ;;  %v2051_v47 = vpack.c.bf16 %v372_v40, %v368_v38  ;;  %v406_v36 = vld [vmem:[%s4069_s2 + $0xbc0] sm:$0xff]  ;;  %v408_v38 = vld [vmem:[%s4069_s2 + $0xbd0] sm:$0xff] }
  0x9d   :  { %1778 = vmatprep.subr.bf16.mxu0 %v1777_v48  ;;  %2034 = vmatprep.subr.bf16.mxu1 %v2033_v53  ;;  %v1797_v48 = vpack.c.bf16 %v379_v42, %v375_v41  ;;  %v2053_v53 = vpack.c.bf16 %v381_v44, %v377_v43  ;;  %v410_v37 = vld [vmem:[%s4069_s2 + $0xbe0] sm:$0xff]  ;;  %v412_v40 = vld [vmem:[%s4069_s2 + $0xbf0] sm:$0xff]  ;;  %v415_v41 = vld [vmem:[%s4069_s2 + $0xc08] sm:$0xff]  ;;  %v712_v43 = vcombine.high %v3110_v45, %v3110_v45 }
  0x9e   :  { %v419_v42 = vld [vmem:[%s4069_s2 + $0xc28] sm:$0xff]  ;;  %v417_v44 = vld [vmem:[%s4069_s2 + $0xc18] sm:$0xff]  ;;  %v418_v45 = vld [vmem:[%s4069_s2 + $0xc20] sm:$0xff] }
  0xa0   :  { %1780 = vmatpush1.bf16.msra.mxu0 %v1779_v58  ;;  %2036 = vmatpush1.bf16.msra.mxu1 %v2035_v59  ;;  %v1799_v58 = vpack.c.bf16 %v378_v50, %v374_v49  ;;  %v2055_v59 = vpack.c.bf16 %v380_v31, %v376_v52  ;;  %v1817_v49 = vpack.c.bf16 %v419_v42, %v415_v41  ;;  %v414_v50 = vld [vmem:[%s4069_s2 + $0xc00] sm:$0xff]  ;;  %v416_v52 = vld [vmem:[%s4069_s2 + $0xc10] sm:$0xff]  ;;  %v455_v41 = vld [vmem:[%s4069_s2 + $0xd48] sm:$0xff] }
  0xa1   :  { %1782 = vmatprep.subr.bf16.mxu0 %v1781_v60  ;;  %2038 = vmatprep.subr.bf16.mxu1 %v2037_v0  ;;  %v1801_v60 = vpack.c.bf16 %v387_v55, %v383_v54  ;;  %v2057_v0 = vpack.c.bf16 %v389_v57, %v385_v56  ;;  %v420_v31 = vld [vmem:[%s4069_s2 + $0xc30] sm:$0xff]  ;;  %v423_v54 = vld [vmem:[%s4069_s2 + $0xc48] sm:$0xff]  ;;  %v3501_v56 = vrot.slane %v712_v43, %v2557_v17  ;;  %v425_v57 = vld [vmem:[%s4069_s2 + $0xc58] sm:$0xff] }
  0xa2   :  { %v427_v55 = vld [vmem:[%s4069_s2 + $0xc68] sm:$0xff]  ;;  %v426_v17 = vld [vmem:[%s4069_s2 + $0xc60] sm:$0xff]  ;;  %v457_v43 = vld [vmem:[%s4069_s2 + $0xd58] sm:$0xff] }
  0xa3   :  { %v459_v42 = vld [vmem:[%s4069_s2 + $0xd68] sm:$0xff] }
  0xa4   :  { %1784 = vmatpush1.bf16.msra.mxu0 %v1783_v6  ;;  %2040 = vmatpush1.bf16.msra.mxu1 %v2039_v7  ;;  %v1803_v6 = vpack.c.bf16 %v386_v62, %v382_v61  ;;  %v2059_v7 = vpack.c.bf16 %v388_v30, %v384_v63  ;;  %v1821_v61 = vpack.c.bf16 %v427_v55, %v423_v54  ;;  %v422_v62 = vld [vmem:[%s4069_s2 + $0xc40] sm:$0xff]  ;;  %v424_v63 = vld [vmem:[%s4069_s2 + $0xc50] sm:$0xff]  ;;  %v467_v54 = vld [vmem:[%s4069_s2 + $0xda8] sm:$0xff] }
  0xa5   :  { %1786 = vmatprep.subr.bf16.mxu0 %v1785_v8  ;;  %2042 = vmatprep.subr.bf16.mxu1 %v2041_v12  ;;  %v1805_v8 = vpack.c.bf16 %v395_v2, %v391_v1  ;;  %v2061_v12 = vpack.c.bf16 %v397_v5, %v393_v3  ;;  %v428_v30 = vld [vmem:[%s4069_s2 + $0xc70] sm:$0xff]  ;;  %v431_v1 = vld [vmem:[%s4069_s2 + $0xc88] sm:$0xff]  ;;  %v728_v3 = vcombine.high %v3501_v56, %v3501_v56  ;;  %v433_v5 = vld [vmem:[%s4069_s2 + $0xc98] sm:$0xff] }
  0xa6   :  { %v435_v2 = vld [vmem:[%s4069_s2 + $0xca8] sm:$0xff]  ;;  %v465_v55 = vld [vmem:[%s4069_s2 + $0xd98] sm:$0xff] }
  0xa8   :  { %1788 = vmatpush1.bf16.msra.mxu0 %v1787_v19  ;;  %2044 = vmatpush1.bf16.msra.mxu1 %v2043_v20  ;;  %v1807_v19 = vpack.c.bf16 %v394_v10, %v390_v9  ;;  %v2063_v20 = vpack.c.bf16 %v396_v13, %v392_v11  ;;  %v1825_v9 = vpack.c.bf16 %v435_v2, %v431_v1  ;;  %v430_v10 = vld [vmem:[%s4069_s2 + $0xc80] sm:$0xff]  ;;  %v475_v1 = vld [vmem:[%s4069_s2 + $0xde8] sm:$0xff]  ;;  %v473_v2 = vld [vmem:[%s4069_s2 + $0xdd8] sm:$0xff] }
  0xa9   :  { %1790 = vmatprep.subr.bf16.mxu0 %v1789_v21  ;;  %2046 = vmatprep.subr.bf16.mxu1 %v2045_v25  ;;  %v1809_v21 = vpack.c.bf16 %v403_v15, %v399_v14  ;;  %v2065_v25 = vpack.c.bf16 %v405_v18, %v401_v16  ;;  %v434_v11 = vld [vmem:[%s4069_s2 + $0xca0] sm:$0xff]  ;;  %v439_v14 = vld [vmem:[%s4069_s2 + $0xcc8] sm:$0xff]  ;;  %v441_v16 = vld [vmem:[%s4069_s2 + $0xcd8] sm:$0xff] }
  0xaa   :  { %v443_v15 = vld [vmem:[%s4069_s2 + $0xce8] sm:$0xff]  ;;  %v445_v18 = vld [vmem:[%s4069_s2 + $0xcf8] sm:$0xff] }
  0xac   :  { %1792 = vmatpush1.bf16.msra.mxu0 %v1791_v33  ;;  %2048 = vmatpush1.bf16.msra.mxu1 %v2047_v34  ;;  %v1811_v33 = vpack.c.bf16 %v402_v23, %v398_v22  ;;  %v2067_v34 = vpack.c.bf16 %v404_v26, %v400_v24  ;;  %v438_v22 = vld [vmem:[%s4069_s2 + $0xcc0] sm:$0xff]  ;;  %v440_v24 = vld [vmem:[%s4069_s2 + $0xcd0] sm:$0xff] }
  0xad   :  { %1794 = vmatprep.subr.bf16.mxu0 %v1793_v35  ;;  %2050 = vmatprep.subr.bf16.mxu1 %v2049_v39  ;;  %v1813_v35 = vpack.c.bf16 %v411_v28, %v407_v27  ;;  %v2069_v39 = vpack.c.bf16 %v413_v32, %v409_v29  ;;  %v442_v23 = vld [vmem:[%s4069_s2 + $0xce0] sm:$0xff]  ;;  %v444_v26 = vld [vmem:[%s4069_s2 + $0xcf0] sm:$0xff]  ;;  %v447_v27 = vld [vmem:[%s4069_s2 + $0xd08] sm:$0xff] }
  0xae   :  { %v451_v28 = vld [vmem:[%s4069_s2 + $0xd28] sm:$0xff]  ;;  %v449_v29 = vld [vmem:[%s4069_s2 + $0xd18] sm:$0xff] }
  0xaf   :  { %v453_v32 = vld [vmem:[%s4069_s2 + $0xd38] sm:$0xff] }
  0xb0   :  { %1796 = vmatpush1.bf16.msra.mxu0 %v1795_v46  ;;  %2052 = vmatpush1.bf16.msra.mxu1 %v2051_v47  ;;  %v421_v46 = vld [vmem:[%s4069_s2 + $0xc38] sm:$0xff]  ;;  %v1815_v47 = vpack.c.bf16 %v410_v37, %v406_v36  ;;  %v446_v36 = vld [vmem:[%s4069_s2 + $0xd00] sm:$0xff] }
  0xb1   :  { %1798 = vmatprep.subr.bf16.mxu0 %v1797_v48  ;;  %2054 = vmatprep.subr.bf16.mxu1 %v2053_v53  ;;  %v2071_v48 = vpack.c.bf16 %v412_v40, %v408_v38  ;;  %v2073_v53 = vpack.c.bf16 %v421_v46, %v417_v44  ;;  %v450_v37 = vld [vmem:[%s4069_s2 + $0xd20] sm:$0xff]  ;;  %v448_v38 = vld [vmem:[%s4069_s2 + $0xd10] sm:$0xff]  ;;  %v461_v44 = vld [vmem:[%s4069_s2 + $0xd78] sm:$0xff] }
  0xb2   :  { %v452_v40 = vld [vmem:[%s4069_s2 + $0xd30] sm:$0xff]  ;;  %v1835_v46 = vpack.c.bf16 %v450_v37, %v446_v36 }
  0xb3   :  { %v488_v36 = vld [vmem:[%s4069_s2 + $0xe50] sm:$0xff] }
  0xb4   :  { %1800 = vmatpush1.bf16.msra.mxu0 %v1799_v58  ;;  %2056 = vmatpush1.bf16.msra.mxu1 %v2055_v59  ;;  %v429_v58 = vld [vmem:[%s4069_s2 + $0xc78] sm:$0xff]  ;;  %v1819_v59 = vpack.c.bf16 %v418_v45, %v414_v50  ;;  %v458_v50 = vld [vmem:[%s4069_s2 + $0xd60] sm:$0xff]  ;;  %v456_v45 = vld [vmem:[%s4069_s2 + $0xd50] sm:$0xff] }
  0xb5   :  { %1802 = vmatprep.subr.bf16.mxu0 %v1801_v60  ;;  %2058 = vmatprep.subr.bf16.mxu1 %v2057_v0  ;;  %v2075_v60 = vpack.c.bf16 %v420_v31, %v416_v52  ;;  %v2077_v0 = vpack.c.bf16 %v429_v58, %v425_v57  ;;  %v2093_v52 = vpack.c.bf16 %v461_v44, %v457_v43  ;;  %v463_v31 = vld [vmem:[%s4069_s2 + $0xd88] sm:$0xff]  ;;  %v469_v57 = vld [vmem:[%s4069_s2 + $0xdb8] sm:$0xff] }
  0xb8   :  { %1804 = vmatpush1.bf16.msra.mxu0 %v1803_v6  ;;  %2060 = vmatpush1.bf16.msra.mxu1 %v2059_v7  ;;  %v437_v6 = vld [vmem:[%s4069_s2 + $0xcb8] sm:$0xff]  ;;  %v1823_v7 = vpack.c.bf16 %v426_v17, %v422_v62  ;;  %v466_v62 = vld [vmem:[%s4069_s2 + $0xda0] sm:$0xff]  ;;  %v464_v17 = vld [vmem:[%s4069_s2 + $0xd90] sm:$0xff] }
  0xb9   :  { %1806 = vmatprep.subr.bf16.mxu0 %v1805_v8  ;;  %2062 = vmatprep.subr.bf16.mxu1 %v2061_v12  ;;  %v2079_v8 = vpack.c.bf16 %v428_v30, %v424_v63  ;;  %v432_v12 = vld [vmem:[%s4069_s2 + $0xc90] sm:$0xff]  ;;  %v2081_v13 = vpack.c.bf16 %v437_v6, %v433_v5  ;;  %v2097_v63 = vpack.c.bf16 %v469_v57, %v465_v55  ;;  %v471_v30 = vld [vmem:[%s4069_s2 + $0xdc8] sm:$0xff] }
  0xbc   :  { %1808 = vmatpush1.bf16.msra.mxu0 %v1807_v19  ;;  %2064 = vmatpush1.bf16.msra.mxu1 %v2063_v20  ;;  %v1827_v19 = vpack.c.bf16 %v434_v11, %v430_v10  ;;  %v472_v10 = vld [vmem:[%s4069_s2 + $0xdd0] sm:$0xff] }
  0xbd   :  { %1810 = vmatprep.subr.bf16.mxu0 %v1809_v21  ;;  %2066 = vmatprep.subr.bf16.mxu1 %v2065_v25  ;;  %v1829_v21 = vpack.c.bf16 %v443_v15, %v439_v14  ;;  %v2085_v25 = vpack.c.bf16 %v445_v18, %v441_v16  ;;  %v481_v14 = vld [vmem:[%s4069_s2 + $0xe18] sm:$0xff] }
  0xbe   :  { %v485_v15 = vld [vmem:[%s4069_s2 + $0xe38] sm:$0xff] }
  0xc0   :  { %1812 = vmatpush1.bf16.msra.mxu0 %v1811_v33  ;;  %2068 = vmatpush1.bf16.msra.mxu1 %v2067_v34  ;;  %v1831_v33 = vpack.c.bf16 %v442_v23, %v438_v22  ;;  %v2087_v34 = vpack.c.bf16 %v444_v26, %v440_v24  ;;  %v480_v22 = vld [vmem:[%s4069_s2 + $0xe10] sm:$0xff]  ;;  %v2105_v23 = vpack.c.bf16 %v485_v15, %v481_v14  ;;  %v491_v26 = vld [vmem:[%s4069_s2 + $0xe68] sm:$0xff] }
  0xc1   :  { %1814 = vmatprep.subr.bf16.mxu0 %v1813_v35  ;;  %2070 = vmatprep.subr.bf16.mxu1 %v2069_v39  ;;  %v1833_v35 = vpack.c.bf16 %v451_v28, %v447_v27  ;;  %v2089_v39 = vpack.c.bf16 %v453_v32, %v449_v29  ;;  %v484_v24 = vld [vmem:[%s4069_s2 + $0xe30] sm:$0xff]  ;;  %v489_v27 = vld [vmem:[%s4069_s2 + $0xe58] sm:$0xff] }
  0xc2   :  { %v493_v28 = vld [vmem:[%s4069_s2 + $0xe78] sm:$0xff]  ;;  %v2107_v32 = vpack.c.bf16 %v484_v24, %v480_v22  ;;  %v524_v22 = vld [vmem:[%s4069_s2 + $0xf70] sm:$0xff]  ;;  %v531_v24 = vld [vmem:[%s4069_s2 + $0xfa8] sm:$0xff] }
  0xc3   :  { %v2109_v37 = vpack.c.bf16 %v493_v28, %v489_v27 }
  0xc4   :  { %1816 = vmatpush1.bf16.msra.mxu0 %v1815_v47  ;;  %2072 = vmatpush1.bf16.msra.mxu1 %v2071_v48  ;;  %v2091_v47 = vpack.c.bf16 %v452_v40, %v448_v38  ;;  %v1837_v48 = vpack.c.bf16 %v459_v42, %v455_v41  ;;  %v492_v38 = vld [vmem:[%s4069_s2 + $0xe70] sm:$0xff]  ;;  %v499_v40 = vld [vmem:[%s4069_s2 + $0xea8] sm:$0xff]  ;;  %v497_v41 = vld [vmem:[%s4069_s2 + $0xe98] sm:$0xff] }
  0xc5   :  { %1818 = vmatprep.subr.bf16.mxu0 %v1817_v49  ;;  %2074 = vmatprep.subr.bf16.mxu1 %v2073_v53  ;;  %v454_v49 = vld [vmem:[%s4069_s2 + $0xd40] sm:$0xff]  ;;  %v460_v53 = vld [vmem:[%s4069_s2 + $0xd70] sm:$0xff]  ;;  %v501_v42 = vld [vmem:[%s4069_s2 + $0xeb8] sm:$0xff]  ;;  %v2111_v44 = vpack.c.bf16 %v492_v38, %v488_v36 }
  0xc6   :  { %v1839_v58 = vpack.c.bf16 %v458_v50, %v454_v49  ;;  %v496_v49 = vld [vmem:[%s4069_s2 + $0xe90] sm:$0xff]  ;;  %v2113_v50 = vpack.c.bf16 %v501_v42, %v497_v41  ;;  %v539_v38 = vld [vmem:[%s4069_s2 + $0xfe8] sm:$0xff] }
  0xc7   :  { %944 = vmatmul.mubr.f32.vlgmr.msra.gmra.mrb[0].mxu0 %v3123_v51  ;;  %1228 = vmatmul.mubr.f32.vlgmr.msra.gmra.mrb[0].mxu1 %v3123_v51  ;;  %v436_v51 = vld [vmem:[%s4069_s2 + $0xcb0] sm:$0xff] }
  0xc8   :  { %1820 = vmatpush1.bf16.msra.mxu0 %v1819_v59  ;;  %2076 = vmatpush1.bf16.msra.mxu1 %v2075_v60  ;;  %v2083_v20 = vpack.c.bf16 %v436_v51, %v432_v12  ;;  %v2095_v59 = vpack.c.bf16 %v460_v53, %v456_v45  ;;  %v1841_v60 = vpack.c.bf16 %v467_v54, %v463_v31  ;;  %v476_v12 = vld [vmem:[%s4069_s2 + $0xdf0] sm:$0xff]  ;;  %v483_v51 = vld [vmem:[%s4069_s2 + $0xe28] sm:$0xff]  ;;  %v505_v31 = vld [vmem:[%s4069_s2 + $0xed8] sm:$0xff] }
  0xc9   :  { %1822 = vmatprep.subr.bf16.mxu0 %v1821_v61  ;;  %2078 = vmatprep.subr.bf16.mxu1 %v2077_v0  ;;  %v462_v61 = vld [vmem:[%s4069_s2 + $0xd80] sm:$0xff]  ;;  %v468_v0 = vld [vmem:[%s4069_s2 + $0xdb0] sm:$0xff]  ;;  %v2103_v18 = vpack.c.bf16 %v476_v12, %v472_v10  ;;  %v507_v53 = vld [vmem:[%s4069_s2 + $0xee8] sm:$0xff] }
  0xca   :  { %1014 = vmatprep.mubr.f32.mxu0 %v728_v3  ;;  %1298 = vmatprep.mubr.f32.mxu1 %v728_v3  ;;  %v477_v3 = vld [vmem:[%s4069_s2 + $0xdf8] sm:$0xff]  ;;  %v1843_v5 = vpack.c.bf16 %v466_v62, %v462_v61  ;;  %v2099_v6 = vpack.c.bf16 %v468_v0, %v464_v17  ;;  %v500_v45 = vld [vmem:[%s4069_s2 + $0xeb0] sm:$0xff]  ;;  %v515_v0 = vld [vmem:[%s4069_s2 + $0xf28] sm:$0xff] }
  0xcb   :  { %v2101_v11 = vpack.c.bf16 %v477_v3, %v473_v2  ;;  %v509_v54 = vld [vmem:[%s4069_s2 + $0xef8] sm:$0xff]  ;;  %v2115_v57 = vpack.c.bf16 %v500_v45, %v496_v49  ;;  %v504_v61 = vld [vmem:[%s4069_s2 + $0xed0] sm:$0xff]  ;;  %v523_v12 = vld [vmem:[%s4069_s2 + $0xf68] sm:$0xff] }
  0xcc   :  { %1824 = vmatpush1.bf16.msra.mxu0 %v1823_v7  ;;  %2080 = vmatpush1.bf16.msra.mxu1 %v2079_v8  ;;  %v1845_v7 = vpack.c.bf16 %v475_v1, %v471_v30  ;;  %v470_v8 = vld [vmem:[%s4069_s2 + $0xdc0] sm:$0xff]  ;;  %v2117_v62 = vpack.c.bf16 %v509_v54, %v505_v31  ;;  %v508_v17 = vld [vmem:[%s4069_s2 + $0xef0] sm:$0xff]  ;;  %v513_v30 = vld [vmem:[%s4069_s2 + $0xf18] sm:$0xff] }
  0xcd   :  { %1826 = vmatprep.subr.bf16.mxu0 %v1825_v9  ;;  %2082 = vmatprep.subr.bf16.mxu1 %v2081_v13  ;;  %v474_v9 = vld [vmem:[%s4069_s2 + $0xde0] sm:$0xff]  ;;  %v479_v13 = vld [vmem:[%s4069_s2 + $0xe08] sm:$0xff]  ;;  %v517_v1 = vld [vmem:[%s4069_s2 + $0xf38] sm:$0xff]  ;;  %v2119_v3 = vpack.c.bf16 %v508_v17, %v504_v61 }
  0xce   :  { %v1847_v16 = vpack.c.bf16 %v474_v9, %v470_v8  ;;  %v512_v8 = vld [vmem:[%s4069_s2 + $0xf10] sm:$0xff]  ;;  %v2121_v9 = vpack.c.bf16 %v517_v1, %v513_v30  ;;  %v1352_v45 = vld [vmem:[%s4072_s5 + $0x88] sm:$0xff]  ;;  %v1354_v17 = vld [vmem:[%s4072_s5 + $0x98] sm:$0xff] }
  0xcf   :  { %v516_v10 = vld [vmem:[%s4069_s2 + $0xf30] sm:$0xff]  ;;  %v1368_v61 = vld [vmem:[%s4072_s5 + $0x108] sm:$0xff] }
  0xd0   :  { %1828 = vmatpush1.bf16.msra.mxu0 %v1827_v19  ;;  %2084 = vmatpush1.bf16.msra.mxu1 %v2083_v20  ;;  %v1849_v19 = vpack.c.bf16 %v483_v51, %v479_v13  ;;  %v478_v20 = vld [vmem:[%s4069_s2 + $0xe00] sm:$0xff]  ;;  %v521_v13 = vld [vmem:[%s4069_s2 + $0xf58] sm:$0xff]  ;;  %v2123_v15 = vpack.c.bf16 %v516_v10, %v512_v8  ;;  %v532_v36 = vld [vmem:[%s4069_s2 + $0xfb0] sm:$0xff] }
  0xd1   :  { %1830 = vmatprep.subr.bf16.mxu0 %v1829_v21  ;;  %2086 = vmatprep.subr.bf16.mxu1 %v2085_v25  ;;  %v482_v21 = vld [vmem:[%s4069_s2 + $0xe20] sm:$0xff]  ;;  %v487_v25 = vld [vmem:[%s4069_s2 + $0xe48] sm:$0xff]  ;;  %v525_v51 = vld [vmem:[%s4069_s2 + $0xf78] sm:$0xff] }
  0xd2   :  { %v1851_v29 = vpack.c.bf16 %v482_v21, %v478_v20  ;;  %v520_v20 = vld [vmem:[%s4069_s2 + $0xf50] sm:$0xff]  ;;  %v2125_v21 = vpack.c.bf16 %v525_v51, %v521_v13  ;;  %v1370_v8 = vld [vmem:[%s4072_s5 + $0x118] sm:$0xff]  ;;  %v1356_v10 = vld [vmem:[%s4072_s5 + $0xa8] sm:$0xff] }
  0xd3   :  { %v2127_v28 = vpack.c.bf16 %v524_v22, %v520_v20  ;;  %v540_v49 = vld [vmem:[%s4069_s2 + $0xff0] sm:$0xff] }
  0xd4   :  { %1832 = vmatpush1.bf16.msra.mxu0 %v1831_v33  ;;  %2088 = vmatpush1.bf16.msra.mxu1 %v2087_v34  ;;  %v1853_v33 = vpack.c.bf16 %v491_v26, %v487_v25  ;;  %v486_v34 = vld [vmem:[%s4069_s2 + $0xe40] sm:$0xff]  ;;  %v529_v25 = vld [vmem:[%s4069_s2 + $0xf98] sm:$0xff]  ;;  %v1357_v20 = vld [vmem:[%s4072_s5 + $0xb0] sm:$0xff] }
  0xd5   :  { %1834 = vmatprep.subr.bf16.mxu0 %v1833_v35  ;;  %2090 = vmatprep.subr.bf16.mxu1 %v2089_v39  ;;  %v490_v35 = vld [vmem:[%s4069_s2 + $0xe60] sm:$0xff]  ;;  %v495_v39 = vld [vmem:[%s4069_s2 + $0xe88] sm:$0xff]  ;;  %v533_v26 = vld [vmem:[%s4069_s2 + $0xfb8] sm:$0xff] }
  0xd6   :  { %v1855_v43 = vpack.c.bf16 %v490_v35, %v486_v34  ;;  %v528_v34 = vld [vmem:[%s4069_s2 + $0xf90] sm:$0xff]  ;;  %v2129_v35 = vpack.c.bf16 %v533_v26, %v529_v25 }
  0xd7   :  { %v2131_v42 = vpack.c.bf16 %v532_v36, %v528_v34  ;;  %v1389_v22 = vld [vmem:[%s4072_s5 + $0x1b0] sm:$0xff]  ;;  %v1359_v34 = vld [vmem:[%s4072_s5 + $0xc0] sm:$0xff] }
  0xd8   :  { %1836 = vmatpush1.bf16.msra.mxu0 %v1835_v46  ;;  %2092 = vmatpush1.bf16.msra.mxu1 %v2091_v47  ;;  %v1857_v46 = vpack.c.bf16 %v499_v40, %v495_v39  ;;  %v494_v47 = vld [vmem:[%s4069_s2 + $0xe80] sm:$0xff]  ;;  %v537_v39 = vld [vmem:[%s4069_s2 + $0xfd8] sm:$0xff] }
  0xd9   :  { %1838 = vmatprep.subr.bf16.mxu0 %v1837_v48  ;;  %2094 = vmatprep.subr.bf16.mxu1 %v2093_v52  ;;  %v498_v48 = vld [vmem:[%s4069_s2 + $0xea0] sm:$0xff]  ;;  %v503_v52 = vld [vmem:[%s4069_s2 + $0xec8] sm:$0xff]  ;;  %v541_v40 = vld [vmem:[%s4069_s2 + $0xff8] sm:$0xff] }
  0xda   :  { %v1859_v55 = vpack.c.bf16 %v498_v48, %v494_v47  ;;  %v536_v47 = vld [vmem:[%s4069_s2 + $0xfd0] sm:$0xff]  ;;  %v2133_v48 = vpack.c.bf16 %v541_v40, %v537_v39  ;;  %v1391_v36 = vld [vmem:[%s4072_s5 + $0x1c0] sm:$0xff] }
  0xdb   :  { %v2135_v54 = vpack.c.bf16 %v540_v49, %v536_v47  ;;  %v1361_v47 = vld [vmem:[%s4072_s5 + $0xd0] sm:$0xff] }
  0xdc   :  { %1840 = vmatpush1.bf16.msra.mxu0 %v1839_v58  ;;  %2096 = vmatpush1.bf16.msra.mxu1 %v2095_v59  ;;  %v1861_v58 = vpack.c.bf16 %v507_v53, %v503_v52  ;;  %v502_v59 = vld [vmem:[%s4069_s2 + $0xec0] sm:$0xff]  ;;  %v1384_v53 = vld [vmem:[%s4072_s5 + $0x188] sm:$0xff]  ;;  %v1393_v49 = vld [vmem:[%s4072_s5 + $0x1d0] sm:$0xff] }
  0xdd   :  { %1842 = vmatprep.subr.bf16.mxu0 %v1841_v60  ;;  %2098 = vmatprep.subr.bf16.mxu1 %v2097_v63  ;;  %v506_v60 = vld [vmem:[%s4069_s2 + $0xee0] sm:$0xff]  ;;  %v511_v63 = vld [vmem:[%s4069_s2 + $0xf08] sm:$0xff] }
  0xde   :  { %v1863_v2 = vpack.c.bf16 %v506_v60, %v502_v59  ;;  %v1383_v52 = vld [vmem:[%s4072_s5 + $0x180] sm:$0xff] }
  0xdf   :  { %v1367_v59 = vld [vmem:[%s4072_s5 + $0x100] sm:$0xff]  ;;  %v2169_v60 = vpack.c.bf16 %v1384_v53, %v1383_v52 }
  0xe0   :  { %1844 = vmatpush1.bf16.msra.mxu0 %v1843_v5  ;;  %2100 = vmatpush1.bf16.msra.mxu1 %v2099_v6  ;;  %v1865_v5 = vpack.c.bf16 %v515_v0, %v511_v63  ;;  %v510_v6 = vld [vmem:[%s4069_s2 + $0xf00] sm:$0xff]  ;;  %v1385_v63 = vld [vmem:[%s4072_s5 + $0x190] sm:$0xff]  ;;  %v1386_v0 = vld [vmem:[%s4072_s5 + $0x198] sm:$0xff]  ;;  %v2171_v1 = vpack.c.bf16 %v1368_v61, %v1367_v59 }
  0xe1   :  { %1846 = vmatprep.subr.bf16.mxu0 %v1845_v7  ;;  %2102 = vmatprep.subr.bf16.mxu1 %v2101_v11  ;;  %v514_v7 = vld [vmem:[%s4069_s2 + $0xf20] sm:$0xff]  ;;  %v519_v11 = vld [vmem:[%s4069_s2 + $0xf48] sm:$0xff] }
  0xe2   :  { %v1867_v14 = vpack.c.bf16 %v514_v7, %v510_v6  ;;  %v1369_v6 = vld [vmem:[%s4072_s5 + $0x110] sm:$0xff]  ;;  %v2173_v7 = vpack.c.bf16 %v1386_v0, %v1385_v63  ;;  %v1363_v59 = vld [vmem:[%s4072_s5 + $0xe0] sm:$0xff] }
  0xe3   :  { %v2175_v51 = vpack.c.bf16 %v1370_v8, %v1369_v6  ;;  %v1395_v61 = vld [vmem:[%s4072_s5 + $0x1e0] sm:$0xff]  ;;  %v1380_v6 = vld [vmem:[%s4072_s5 + $0x168] sm:$0xff]  ;;  %v1365_v8 = vld [vmem:[%s4072_s5 + $0xf0] sm:$0xff] }
  0xe4   :  { %1848 = vmatpush1.bf16.msra.mxu0 %v1847_v16  ;;  %2104 = vmatpush1.bf16.msra.mxu1 %v2103_v18  ;;  %v1869_v16 = vpack.c.bf16 %v523_v12, %v519_v11  ;;  %v518_v18 = vld [vmem:[%s4069_s2 + $0xf40] sm:$0xff]  ;;  %v1388_v12 = vld [vmem:[%s4072_s5 + $0x1a8] sm:$0xff] }
  0xe5   :  { %1850 = vmatprep.subr.bf16.mxu0 %v1849_v19  ;;  %2106 = vmatprep.subr.bf16.mxu1 %v2105_v23  ;;  %v522_v19 = vld [vmem:[%s4069_s2 + $0xf60] sm:$0xff]  ;;  %v527_v23 = vld [vmem:[%s4069_s2 + $0xf88] sm:$0xff] }
  0xe6   :  { %v1871_v27 = vpack.c.bf16 %v522_v19, %v518_v18  ;;  %v1387_v11 = vld [vmem:[%s4072_s5 + $0x1a0] sm:$0xff]  ;;  %v1372_v19 = vld [vmem:[%s4072_s5 + $0x128] sm:$0xff] }
  0xe7   :  { %v1371_v18 = vld [vmem:[%s4072_s5 + $0x120] sm:$0xff] }
  0xe8   :  { %1852 = vmatpush1.bf16.msra.mxu0 %v1851_v29  ;;  %2108 = vmatpush1.bf16.msra.mxu1 %v2107_v32  ;;  %v1873_v29 = vpack.c.bf16 %v531_v24, %v527_v23  ;;  %v526_v32 = vld [vmem:[%s4069_s2 + $0xf80] sm:$0xff]  ;;  %v1390_v23 = vld [vmem:[%s4072_s5 + $0x1b8] sm:$0xff]  ;;  %v2179_v25 = vpack.c.bf16 %v1372_v19, %v1371_v18  ;;  %v1309_v19 = vsub.s32 0, %v2530_v4 }
  0xe9   :  { %1854 = vmatprep.subr.bf16.mxu0 %v1853_v33  ;;  %2110 = vmatprep.subr.bf16.mxu1 %v2109_v37  ;;  %v530_v33 = vld [vmem:[%s4069_s2 + $0xfa0] sm:$0xff]  ;;  %v535_v37 = vld [vmem:[%s4069_s2 + $0xfc8] sm:$0xff]  ;;  %v1382_v18 = vld [vmem:[%s4072_s5 + $0x178] sm:$0xff] }
  0xea   :  { %v1875_v41 = vpack.c.bf16 %v530_v33, %v526_v32  ;;  %v2181_v32 = vpack.c.bf16 %v1390_v23, %v1389_v22  ;;  %v1374_v33 = vld [vmem:[%s4072_s5 + $0x138] sm:$0xff]  ;;  %v1313_v22 = vsub.s32 1, %v2530_v4  ;;  %v1321_v23 = vsub.s32 3, %v2530_v4 }
  0xec   :  { %1856 = vmatpush1.bf16.msra.mxu0 %v1855_v43  ;;  %2112 = vmatpush1.bf16.msra.mxu1 %v2111_v44  ;;  %v1877_v43 = vpack.c.bf16 %v539_v38, %v535_v37  ;;  %v534_v44 = vld [vmem:[%s4069_s2 + $0xfc0] sm:$0xff]  ;;  %v1392_v37 = vld [vmem:[%s4072_s5 + $0x1c8] sm:$0xff] }
  0xed   :  { %1858 = vmatprep.subr.bf16.mxu0 %v1857_v46  ;;  %2114 = vmatprep.subr.bf16.mxu1 %v2113_v50  ;;  %v538_v46 = vld [vmem:[%s4069_s2 + $0xfe0] sm:$0xff] }
  0xee   :  { %v1351_v50 = vld [vmem:[%s4072_s5 + $0x80] sm:$0xff]  ;;  %v1879_v31 = vpack.c.bf16 %v538_v46, %v534_v44  ;;  %v2185_v44 = vpack.c.bf16 %v1392_v37, %v1391_v36  ;;  %v1376_v46 = vld [vmem:[%s4072_s5 + $0x148] sm:$0xff] }
  0xf0   :  { %1860 = vmatpush1.bf16.msra.mxu0 %v1859_v55  ;;  %2116 = vmatpush1.bf16.msra.mxu1 %v2115_v57  ;;  %v2137_v55 = vpack.c.bf16 %v1352_v45, %v1351_v50  ;;  %v1335_v57 = vld [vmem:[%s4072_s5] sm:$0xff]  ;;  %v1394_v50 = vld [vmem:[%s4072_s5 + $0x1d8] sm:$0xff] }
  0xf1   :  { %1862 = vmatprep.subr.bf16.mxu0 %v1861_v58  ;;  %2118 = vmatprep.subr.bf16.mxu1 %v2117_v62  ;;  %v1336_v58 = vld [vmem:[%s4072_s5 + $0x8] sm:$0xff]  ;;  %v1353_v62 = vld [vmem:[%s4072_s5 + $0x90] sm:$0xff] }
  0xf2   :  { %v2139_v30 = vpack.c.bf16 %v1336_v58, %v1335_v57  ;;  %v2189_v57 = vpack.c.bf16 %v1394_v50, %v1393_v49  ;;  %v1378_v58 = vld [vmem:[%s4072_s5 + $0x158] sm:$0xff] }
  0xf4   :  { %1864 = vmatpush1.bf16.msra.mxu0 %v1863_v2  ;;  %2120 = vmatpush1.bf16.msra.mxu1 %v2119_v3  ;;  %v2141_v2 = vpack.c.bf16 %v1354_v17, %v1353_v62  ;;  %v1337_v3 = vld [vmem:[%s4072_s5 + $0x10] sm:$0xff]  ;;  %v1396_v62 = vld [vmem:[%s4072_s5 + $0x1e8] sm:$0xff] }
  0xf5   :  { %1866 = vmatprep.subr.bf16.mxu0 %v1865_v5  ;;  %2122 = vmatprep.subr.bf16.mxu1 %v2121_v9  ;;  %v1338_v5 = vld [vmem:[%s4072_s5 + $0x18] sm:$0xff]  ;;  %v1355_v9 = vld [vmem:[%s4072_s5 + $0xa0] sm:$0xff] }
  0xf6   :  { %v2143_v13 = vpack.c.bf16 %v1338_v5, %v1337_v3  ;;  %v1379_v3 = vld [vmem:[%s4072_s5 + $0x160] sm:$0xff] }
  0xf8   :  { %1868 = vmatpush1.bf16.msra.mxu0 %v1867_v14  ;;  %2124 = vmatpush1.bf16.msra.mxu1 %v2123_v15  ;;  %v2145_v14 = vpack.c.bf16 %v1356_v10, %v1355_v9  ;;  %v1339_v15 = vld [vmem:[%s4072_s5 + $0x20] sm:$0xff]  ;;  %v1366_v9 = vld [vmem:[%s4072_s5 + $0xf8] sm:$0xff]  ;;  %v1397_v10 = vld [vmem:[%s4072_s5 + $0x1f0] sm:$0xff] }
  0xf9   :  { %1870 = vmatprep.subr.bf16.mxu0 %v1869_v16  ;;  %2126 = vmatprep.subr.bf16.mxu1 %v2125_v21  ;;  %v1340_v16 = vld [vmem:[%s4072_s5 + $0x28] sm:$0xff]  ;;  %v1358_v21 = vld [vmem:[%s4072_s5 + $0xb8] sm:$0xff] }
  0xfa   :  { %v2147_v24 = vpack.c.bf16 %v1340_v16, %v1339_v15  ;;  %v2149_v26 = vpack.c.bf16 %v1358_v21, %v1357_v20  ;;  %v1381_v16 = vld [vmem:[%s4072_s5 + $0x170] sm:$0xff]  ;;  %v1305_v20 = vld [vmem:[%s4073_s4] sm:$0xf]  ;;  %v1317_v21 = vsub.s32 2, %v2530_v4  ;;  %v12_v4 = vstv %s4074_s6 }
  0xfb   :  { %13 = vst [vmem:[#allocation2] sm:$0x1] %v12_v4 }
  0xfc   :  { %1872 = vmatpush1.bf16.msra.mxu0 %v1871_v27  ;;  %2128 = vmatpush1.bf16.msra.mxu1 %v2127_v28  ;;  %v1341_v27 = vld [vmem:[%s4072_s5 + $0x30] sm:$0xff]  ;;  %v1342_v28 = vld [vmem:[%s4072_s5 + $0x38] sm:$0xff] }
  0xfd   :  { %1874 = vmatprep.subr.bf16.mxu0 %v1873_v29  ;;  %2130 = vmatprep.subr.bf16.mxu1 %v2129_v35  ;;  %v1373_v29 = vld [vmem:[%s4072_s5 + $0x130] sm:$0xff]  ;;  %v1360_v35 = vld [vmem:[%s4072_s5 + $0xc8] sm:$0xff]  ;;  %v2151_v38 = vpack.c.bf16 %v1342_v28, %v1341_v27  ;;  %v1322_v27 = vrot.slane %v1305_v20, %v1321_v23 }
  0xfe   :  { %v2183_v39 = vpack.c.bf16 %v1374_v33, %v1373_v29  ;;  %v2153_v40 = vpack.c.bf16 %v1360_v35, %v1359_v34 }
 0x100   :  { %1876 = vmatpush1.bf16.msra.mxu0 %v1875_v41  ;;  %2132 = vmatpush1.bf16.msra.mxu1 %v2131_v42  ;;  %v1343_v41 = vld [vmem:[%s4072_s5 + $0x40] sm:$0xff]  ;;  %v1344_v42 = vld [vmem:[%s4072_s5 + $0x48] sm:$0xff] }
 0x101   :  { %1878 = vmatprep.subr.bf16.mxu0 %v1877_v43  ;;  %2134 = vmatprep.subr.bf16.mxu1 %v2133_v48  ;;  %v1375_v43 = vld [vmem:[%s4072_s5 + $0x140] sm:$0xff]  ;;  %v1362_v48 = vld [vmem:[%s4072_s5 + $0xd8] sm:$0xff]  ;;  %v2155_v45 = vpack.c.bf16 %v1344_v42, %v1343_v41 }
 0x102   :  { %v2187_v52 = vpack.c.bf16 %v1376_v46, %v1375_v43  ;;  %v2157_v53 = vpack.c.bf16 %v1362_v48, %v1361_v47 }
 0x104   :  { %1880 = vmatpush1.bf16.msra.mxu0 %v1879_v31  ;;  %2136 = vmatpush1.bf16.msra.mxu1 %v2135_v54  ;;  %v1345_v31 = vld [vmem:[%s4072_s5 + $0x50] sm:$0xff]  ;;  %v1346_v54 = vld [vmem:[%s4072_s5 + $0x58] sm:$0xff] }
 0x105   :  { %2138 = vmatprep.subr.bf16.mxu0 %v2137_v55  ;;  %2170 = vmatprep.subr.bf16.mxu1 %v2169_v60  ;;  %v1377_v55 = vld [vmem:[%s4072_s5 + $0x150] sm:$0xff]  ;;  %v1364_v60 = vld [vmem:[%s4072_s5 + $0xe8] sm:$0xff]  ;;  %v2159_v17 = vpack.c.bf16 %v1346_v54, %v1345_v31 }
 0x106   :  { %v2191_v63 = vpack.c.bf16 %v1378_v58, %v1377_v55  ;;  %v2161_v0 = vpack.c.bf16 %v1364_v60, %v1363_v59 }
 0x107   :  { %1015 = vmatmul.mubr.f32.vlgmr.msra.gmra.mrb[0].mxu0 %v3501_v56  ;;  %1299 = vmatmul.mubr.f32.vlgmr.msra.gmra.mrb[0].mxu1 %v3501_v56  ;;  %v2177_v56 = vpack.c.bf16 %v1388_v12, %v1387_v11  ;;  %v2165_v11 = vpack.c.bf16 %v1366_v9, %v1365_v8  ;;  %v1398_v12 = vld [vmem:[%s4072_s5 + $0x1f8] sm:$0xff] }
 0x108   :  { %2140 = vmatpush3.bf16.msra.mxu0 %v2139_v30  ;;  %2172 = vmatpush3.bf16.msra.mxu1 %v2171_v1  ;;  %v2193_v30 = vpack.c.bf16 %v1396_v62, %v1395_v61  ;;  %v1347_v1 = vld [vmem:[%s4072_s5 + $0x60] sm:$0xff] }
 0x109   :  { %2142 = vmatprep.subr.bf16.mxu0 %v2141_v2  ;;  %2174 = vmatprep.subr.bf16.mxu1 %v2173_v7  ;;  %v1348_v2 = vld [vmem:[%s4072_s5 + $0x68] sm:$0xff]  ;;  %v2195_v7 = vpack.c.bf16 %v1380_v6, %v1379_v3 }
 0x10a   :  { %v2163_v5 = vpack.c.bf16 %v1348_v2, %v1347_v1 }
 0x10c   :  { %2144 = vmatpush3.bf16.msra.mxu0 %v2143_v13  ;;  %2176 = vmatpush3.bf16.msra.mxu1 %v2175_v51  ;;  %v1349_v13 = vld [vmem:[%s4072_s5 + $0x70] sm:$0xff]  ;;  %v1350_v51 = vld [vmem:[%s4072_s5 + $0x78] sm:$0xff] }
 0x10d   :  { %2146 = vmatprep.subr.bf16.mxu0 %v2145_v14  ;;  %2178 = vmatprep.subr.bf16.mxu1 %v2177_v56  ;;  %v2197_v14 = vpack.c.bf16 %v1398_v12, %v1397_v10  ;;  %v2167_v15 = vpack.c.bf16 %v1350_v51, %v1349_v13  ;;  %v2199_v56 = vpack.c.bf16 %v1382_v18, %v1381_v16 }
 0x110   :  { %2148 = vmatpush3.bf16.msra.mxu0 %v2147_v24  ;;  %2180 = vmatpush3.bf16.msra.mxu1 %v2179_v25  ;;  %v1310_v24 = vrot.slane %v1305_v20, %v1309_v19  ;;  %v1318_v25 = vrot.slane %v1305_v20, %v1317_v21 }
 0x111   :  { %2150 = vmatprep.subr.bf16.mxu0 %v2149_v26  ;;  %2182 = vmatprep.subr.bf16.mxu1 %v2181_v32  ;;  %v1314_v26 = vrot.slane %v1305_v20, %v1313_v22 }
 0x114   :  { %2152 = vmatpush3.bf16.msra.mxu0 %v2151_v38  ;;  %2184 = vmatpush3.bf16.msra.mxu1 %v2183_v39 }
 0x115   :  { %2154 = vmatprep.subr.bf16.mxu0 %v2153_v40  ;;  %2186 = vmatprep.subr.bf16.mxu1 %v2185_v44  ;;  %v1554_v44 = vld [vmem:[#allocation2] ss:$0 sm:$0xff] }
 0x118   :  { %2156 = vmatpush3.bf16.msra.mxu0 %v2155_v45  ;;  %2188 = vmatpush3.bf16.msra.mxu1 %v2187_v52 }
 0x119   :  { %2158 = vmatprep.subr.bf16.mxu0 %v2157_v53  ;;  %2190 = vmatprep.subr.bf16.mxu1 %v2189_v57 }
 0x11c   :  { %2160 = vmatpush3.bf16.msra.mxu0 %v2159_v17  ;;  %2192 = vmatpush3.bf16.msra.mxu1 %v2191_v63 }
 0x11d   :  { %2162 = vmatprep.subr.bf16.mxu0 %v2161_v0  ;;  %2194 = vmatprep.subr.bf16.mxu1 %v2193_v30 }
 0x120   :  { %2164 = vmatpush3.bf16.msra.mxu0 %v2163_v5  ;;  %2196 = vmatpush3.bf16.msra.mxu1 %v2195_v7 }
 0x121   :  { %2166 = vmatprep.subr.bf16.mxu0 %v2165_v11  ;;  %2198 = vmatprep.subr.bf16.mxu1 %v2197_v14 }
 0x124   :  { %2168 = vmatpush3.bf16.msra.mxu0 %v2167_v15  ;;  %2200 = vmatpush3.bf16.msra.mxu1 %v2199_v56 }
 0x1da   :  { %v1016_v28 = vpop.f32.mrb[0].mxu0  ;;  %v1300_v32 = vpop.f32.mrb[0].mxu1 }
 0x1db   :  { %v1327_v29 = vadd.f32 %v1310_v24, %v1016_v28  ;;  %v1018_v33 = vpop.f32.mrb[1].mxu0  ;;  %v1329_v34 = vadd.f32 %v1318_v25, %v1300_v32  ;;  %v1302_v36 = vpop.f32.mrb[1].mxu1 }
 0x1dc   :  { %v1328_v35 = vadd.f32 %v1314_v26, %v1018_v33  ;;  %v1330_v37 = vadd.f32 %v1322_v27, %v1302_v36 }
 0x1dd   :  { %v1331_v39 = vmax.f32 %v1327_v29, 0.0  ;;  %v1333_v41 = vmax.f32 %v1329_v34, 0.0 }
 0x1de   :  { %v1332_v38 = vmax.f32 %v1328_v35, 0.0  ;;  %v1334_v40 = vmax.f32 %v1330_v37, 0.0 }
 0x1e0   :  { %1470 = vmatprep.mubr.f32.mxu0 %v1332_v38  ;;  %1540 = vmatprep.mubr.f32.mxu1 %v1334_v40 }
 0x1e1   :  { %1471 = vmatmul.mubr.f32.vlgmr.msra.gmra.mrb[2].mxu0 %v1331_v39  ;;  %1541 = vmatmul.mubr.f32.vlgmr.msra.gmra.mrb[2].mxu1 %v1333_v41 }
 0x2b4   :  { %v1587_v42 = vpop.f32.mrb[2].mxu0  ;;  %v1622_v43 = vpop.f32.mrb[2].mxu1 }
 0x2b5   :  { %v1588_v46 = vpop.f32.mrb[3].mxu0  ;;  %v1623_v48 = vpop.f32.mrb[3].mxu1 }
 0x2b6   :  { %v1589_v47 = vadd.f32 %v1588_v46, %v1587_v42  ;;  %v1624_v49 = vadd.f32 %v1623_v48, %v1622_v43 }
 0x2b8   :  { %v1473_v50 = vadd.f32 %v1589_v47, %v1554_v44 }
 0x2ba   :  { %v1543_v45 = vadd.f32 %v1624_v49, %v1473_v50 }
 0x2bc   :  { %1547 = vst.msk [vmem:[%s4075_s7] sm:$0x3] %vm1546_vm1, %v1543_v45 }

</bundles_post_ra>
